<compile_context>
chip_gen: v6e
topology: v6e:2x2x1
jax: 0.10.0
libtpu: 0.0.40
codegen_flags: <defaults>
</compile_context>

<pallas_src>
import math
from functools import partial

import jax
import jax.numpy as jnp
from jax.experimental import pallas as pl
from jax.experimental.pallas import tpu as pltpu

DTYPE = jnp.bfloat16
VMEM_LIMIT = 32 * 1024 * 1024  # explicit scoped-VMEM budget (safe on v5e/v6e/v7x)


# ------------------------------ tiling helper ------------------------------ #

def _pick_tile(dim, target, align):
    """Largest tile <= target that divides dim and respects alignment; else full dim."""
    if dim <= target:
        return dim
    t = (target // align) * align
    while t >= align:
        if dim % t == 0:
            return t
        t -= align
    return dim


# ---------------------- fused RMSNorm + QKV projection --------------------- #

def _rms_qkv_kernel(x_ref, g_ref, w_ref, o_ref, *, eps):
    x = x_ref[...].astype(jnp.float32)
    ms = jnp.mean(x * x, axis=-1, keepdims=True)
    xn = (x * jax.lax.rsqrt(ms + eps)
          * g_ref[...].astype(jnp.float32)).astype(x_ref.dtype)
    o_ref[...] = jnp.dot(xn, w_ref[...],
                         preferred_element_type=jnp.float32).astype(o_ref.dtype)


def rms_qkv(x, gamma, w_t, eps, *, tm=256):
    """x: (M, C); w_t: (C, Nqkv). Returns RMSNorm(x; gamma) @ w_t as (M, Nqkv)."""
    M, C = x.shape
    N = w_t.shape[1]
    tm = _pick_tile(M, tm, 16)
    return pl.pallas_call(
        partial(_rms_qkv_kernel, eps=eps),
        out_shape=jax.ShapeDtypeStruct((M, N), x.dtype),
        grid=(M // tm,),
        in_specs=[pl.BlockSpec((tm, C), lambda i: (i, 0)),
                  pl.BlockSpec((1, C), lambda i: (0, 0)),
                  pl.BlockSpec((C, N), lambda i: (0, 0))],
        out_specs=pl.BlockSpec((tm, N), lambda i: (i, 0)),
        compiler_params=pltpu.CompilerParams(
            dimension_semantics=("parallel",),
            vmem_limit_bytes=VMEM_LIMIT),
    )(x, gamma.reshape(1, C), w_t)


# ----------------------- flash causal GQA attention ------------------------ #

def _flash_attn_kernel(q_ref, k_ref, v_ref, cq_ref, sq_ref, ck_ref, sk_ref,
                       o_ref, qp_ref, m_ref, l_ref, acc_ref,
                       *, scale, group, hd, tq, tk):
    qi = pl.program_id(2)
    kj = pl.program_id(3)
    dtype = q_ref.dtype
    half = hd // 2
    neg = -1e30

    @pl.when(kj == 0)
    def _init():
        # RoPE on q (softmax scale folded in), packed to (group*tq, hd) once per q tile.
        cos = cq_ref[...]                       # (tq, hd) f32
        sin = sq_ref[...]                       # sign-folded: rotate_half via roll
        q = q_ref[...].astype(jnp.float32)      # (tq, group*hd)
        parts = []
        for g in range(group):
            qg = q[:, g * hd:(g + 1) * hd]
            parts.append(qg * cos + pltpu.roll(qg, half, 1) * sin)
        qp = jnp.concatenate(parts, axis=0) * scale
        qp_ref[...] = qp.astype(dtype)
        m_ref[...] = jnp.full((group * tq, 1), neg, jnp.float32)
        l_ref[...] = jnp.zeros((group * tq, 1), jnp.float32)
        acc_ref[...] = jnp.zeros((group * tq, hd), jnp.float32)

    # Skip KV tiles that are entirely above the causal diagonal.
    @pl.when(kj * tk <= qi * tq + (tq - 1))
    def _step():
        cos = ck_ref[...]                       # (tk, hd) f32
        sin = sk_ref[...]
        kf = k_ref[...].astype(jnp.float32)
        kf = kf * cos + pltpu.roll(kf, half, 1) * sin
        kb = kf.astype(dtype)
        qp = qp_ref[...]                        # (group*tq, hd) bf16, pre-scaled
        s = jax.lax.dot_general(qp, kb, (((1,), (1,)), ((), ())),
                                preferred_element_type=jnp.float32)  # (group*tq, tk)
        r = jax.lax.broadcasted_iota(jnp.int32, (group * tq, tk), 0) % tq
        c = jax.lax.broadcasted_iota(jnp.int32, (group * tq, tk), 1)
        s = jnp.where((r + (qi * tq - kj * tk)) >= c, s, neg)
        m_prev = m_ref[...]
        m_new = jnp.maximum(m_prev, jnp.max(s, axis=-1, keepdims=True))
        alpha = jnp.exp(m_prev - m_new)
        p = jnp.exp(s - m_new)
        l_ref[...] = alpha * l_ref[...] + jnp.sum(p, axis=-1, keepdims=True)
        acc_ref[...] = alpha * acc_ref[...] + jnp.dot(
            p.astype(dtype), v_ref[...], preferred_element_type=jnp.float32)
        m_ref[...] = m_new

    @pl.when(kj == pl.num_programs(3) - 1)
    def _done():
        out = acc_ref[...] / l_ref[...]          # exact reciprocal for softmax
        cols = [out[g * tq:(g + 1) * tq, :] for g in range(group)]
        o_ref[...] = jnp.concatenate(cols, axis=1).astype(o_ref.dtype)


def flash_attention(qkv, cos, sin, *, B, T, nh, nkv, hd, tq=128, tk=128):
    """Causal GQA attention reading q/k/v directly from the fused QKV buffer.

    qkv: (B*T, (nh + 2*nkv) * hd) laid out [q | k | v]; cos/sin: (T, hd) f32
    (sin already multiplied by the rotate_half sign). Returns (B*T, nh*hd).
    """
    group = nh // nkv
    ghd = group * hd
    C = nh * hd
    M = B * T
    tq = _pick_tile(T, tq, 8)
    tk = _pick_tile(T, tk, 8)
    qt, kt = T // tq, T // tk
    scale = 1.0 / math.sqrt(hd)
    return pl.pallas_call(
        partial(_flash_attn_kernel, scale=scale, group=group, hd=hd, tq=tq, tk=tk),
        out_shape=jax.ShapeDtypeStruct((M, C), qkv.dtype),
        grid=(B, nkv, qt, kt),
        in_specs=[
            pl.BlockSpec((tq, ghd), lambda b, h, qi, kj: (b * qt + qi, h)),
            pl.BlockSpec((tk, hd), lambda b, h, qi, kj: (b * kt + kj, nh + h)),
            pl.BlockSpec((tk, hd), lambda b, h, qi, kj: (b * kt + kj, nh + nkv + h)),
            pl.BlockSpec((tq, hd), lambda b, h, qi, kj: (qi, 0)),
            pl.BlockSpec((tq, hd), lambda b, h, qi, kj: (qi, 0)),
            pl.BlockSpec((tk, hd), lambda b, h, qi, kj: (kj, 0)),
            pl.BlockSpec((tk, hd), lambda b, h, qi, kj: (kj, 0)),
        ],
        out_specs=pl.BlockSpec((tq, ghd), lambda b, h, qi, kj: (b * qt + qi, h)),
        scratch_shapes=[
            pltpu.VMEM((group * tq, hd), qkv.dtype),    # packed, roped, scaled q
            pltpu.VMEM((group * tq, 1), jnp.float32),   # running max
            pltpu.VMEM((group * tq, 1), jnp.float32),   # running sum
            pltpu.VMEM((group * tq, hd), jnp.float32),  # output accumulator
        ],
        compiler_params=pltpu.CompilerParams(
            dimension_semantics=("parallel", "parallel", "parallel", "arbitrary"),
            vmem_limit_bytes=VMEM_LIMIT),
    )(qkv, qkv, qkv, cos, sin, cos, sin)


# ------------------------- o_proj + residual add --------------------------- #

def _matmul_res_kernel(x_ref, w_ref, r_ref, o_ref):
    acc = jnp.dot(x_ref[...], w_ref[...], preferred_element_type=jnp.float32)
    o_ref[...] = (acc + r_ref[...].astype(jnp.float32)).astype(o_ref.dtype)


def matmul_residual(x, w_t, res, *, tm=256, tn=512):
    M, K = x.shape
    N = w_t.shape[1]
    tm = _pick_tile(M, tm, 16)
    tn = _pick_tile(N, tn, 128)
    return pl.pallas_call(
        _matmul_res_kernel,
        out_shape=jax.ShapeDtypeStruct((M, N), res.dtype),
        grid=(M // tm, N // tn),
        in_specs=[pl.BlockSpec((tm, K), lambda i, j: (i, 0)),
                  pl.BlockSpec((K, tn), lambda i, j: (0, j)),
                  pl.BlockSpec((tm, tn), lambda i, j: (i, j))],
        out_specs=pl.BlockSpec((tm, tn), lambda i, j: (i, j)),
        compiler_params=pltpu.CompilerParams(
            dimension_semantics=("parallel", "parallel"),
            vmem_limit_bytes=VMEM_LIMIT),
    )(x, w_t, res)


# --------------- fused RMSNorm + SwiGLU MLP + residual (H-tiled) ----------- #

def _ffn_kernel(x_ref, g_ref, wg_ref, wu_ref, wd_ref, o_ref, xn_ref, acc_ref, *, eps):
    hj = pl.program_id(1)

    @pl.when(hj == 0)
    def _init():
        x = x_ref[...].astype(jnp.float32)
        ms = jnp.mean(x * x, axis=-1, keepdims=True)
        xn_ref[...] = (x * jax.lax.rsqrt(ms + eps)
                       * g_ref[...].astype(jnp.float32)).astype(xn_ref.dtype)
        acc_ref[...] = x                     # residual pre-loaded into accumulator

    xn = xn_ref[...]
    g = jnp.dot(xn, wg_ref[...], preferred_element_type=jnp.float32)
    u = jnp.dot(xn, wu_ref[...], preferred_element_type=jnp.float32)
    hsw = (g * (1.0 / (1.0 + jnp.exp(-g)))) * u   # exact SiLU
    acc_ref[...] += jnp.dot(hsw.astype(xn.dtype), wd_ref[...],
                            preferred_element_type=jnp.float32)

    @pl.when(hj == pl.num_programs(1) - 1)
    def _done():
        o_ref[...] = acc_ref[...].astype(o_ref.dtype)


def ffn_block(x, gamma, wg_t, wu_t, wd_t, eps, *, tm=256, th=512):
    M, C = x.shape
    H = wg_t.shape[1]
    tm = _pick_tile(M, tm, 16)
    th = _pick_tile(H, th, 128)
    return pl.pallas_call(
        partial(_ffn_kernel, eps=eps),
        out_shape=jax.ShapeDtypeStruct((M, C), x.dtype),
        grid=(M // tm, H // th),
        in_specs=[pl.BlockSpec((tm, C), lambda i, h: (i, 0)),
                  pl.BlockSpec((1, C), lambda i, h: (0, 0)),
                  pl.BlockSpec((C, th), lambda i, h: (0, h)),
                  pl.BlockSpec((C, th), lambda i, h: (0, h)),
                  pl.BlockSpec((th, C), lambda i, h: (h, 0))],
        out_specs=pl.BlockSpec((tm, C), lambda i, h: (i, 0)),
        scratch_shapes=[pltpu.VMEM((tm, C), x.dtype),       # normalized x
                        pltpu.VMEM((tm, C), jnp.float32)],  # down-proj accumulator
        compiler_params=pltpu.CompilerParams(
            dimension_semantics=("parallel", "arbitrary"),
            vmem_limit_bytes=VMEM_LIMIT),
    )(x, gamma.reshape(1, C), wg_t, wu_t, wd_t)


# --------------- fused final RMSNorm + tied lm_head (vocab-tiled) ---------- #

def _rms_head_kernel(x_ref, g_ref, w_ref, o_ref, xn_ref, *, eps):
    @pl.when(pl.program_id(1) == 0)          # hoist the norm: once per M tile
    def _norm():
        x = x_ref[...].astype(jnp.float32)
        ms = jnp.mean(x * x, axis=-1, keepdims=True)
        xn_ref[...] = (x * jax.lax.rsqrt(ms + eps)
                       * g_ref[...].astype(jnp.float32)).astype(xn_ref.dtype)
    o_ref[...] = jnp.dot(xn_ref[...], w_ref[...],
                         preferred_element_type=jnp.float32).astype(o_ref.dtype)


def rms_head(x, gamma, w_t, eps, *, tm=256, tn=1024):
    M, C = x.shape
    V = w_t.shape[1]
    tm = _pick_tile(M, tm, 16)
    tn = _pick_tile(V, tn, 128)
    return pl.pallas_call(
        partial(_rms_head_kernel, eps=eps),
        out_shape=jax.ShapeDtypeStruct((M, V), x.dtype),
        grid=(M // tm, V // tn),
        in_specs=[pl.BlockSpec((tm, C), lambda i, j: (i, 0)),
                  pl.BlockSpec((1, C), lambda i, j: (0, 0)),
                  pl.BlockSpec((C, tn), lambda i, j: (0, j))],
        out_specs=pl.BlockSpec((tm, tn), lambda i, j: (i, j)),
        scratch_shapes=[pltpu.VMEM((tm, C), x.dtype)],
        compiler_params=pltpu.CompilerParams(
            dimension_semantics=("parallel", "arbitrary"),
            vmem_limit_bytes=VMEM_LIMIT),
    )(x, gamma.reshape(1, C), w_t)


# ------------------------------- model glue -------------------------------- #

def precompute_rope(block_size, head_dim, theta):
    pos = jnp.arange(block_size, dtype=jnp.float32)
    th = 1.0 / (theta ** (jnp.arange(0, head_dim, 2, dtype=jnp.float32) / head_dim))
    pt = jnp.outer(pos, th)
    pt = jnp.concatenate([pt, pt], axis=-1)
    cos = jnp.cos(pt)
    # Fold the rotate_half sign into sin: cat(-x2, x1)*sin == roll(x, hd/2)*sin_signed.
    sign = jnp.concatenate([-jnp.ones((head_dim // 2,), jnp.float32),
                            jnp.ones((head_dim // 2,), jnp.float32)])
    sin = jnp.sin(pt) * sign
    return cos, sin        # kept in f32 for angle precision (tables are tiny)


def init_params(key, cfg):
    C = cfg["n_embd"]; H = cfg["n_hidden"]; V = cfg["vocab_size"]
    nkv = cfg["n_kv_heads"]; nh = cfg["n_head"]; hd = C // nh
    kvdim = nkv * hd

    def norm(k, shape):
        return (0.02 * jax.random.normal(k, shape, dtype=jnp.float32)).astype(DTYPE)

    keys = jax.random.split(key, 1 + cfg["n_layer"])
    wte = norm(keys[0], (V, C))
    params = {
        "wte": wte,                     # (V, C) for embedding gather
        "wte_t": jnp.transpose(wte),    # (C, V) tied lm_head, pre-transposed once
        "norm_w": jnp.ones((C,), DTYPE),
    }
    layers = []
    for l in range(cfg["n_layer"]):
        ks = jax.random.split(keys[1 + l], 7)
        wq = norm(ks[0], (C, C))
        wk = norm(ks[1], (kvdim, C))
        wv = norm(ks[2], (kvdim, C))
        layers.append({
            # all linear weights stored pre-transposed as (in, out); QKV fused
            "wqkv_t": jnp.concatenate([wq.T, wk.T, wv.T], axis=1),   # (C, C+2*kvdim)
            "wo_t": jnp.transpose(norm(ks[3], (C, C))),
            "ln1": jnp.ones((C,), DTYPE),
            "ln2": jnp.ones((C,), DTYPE),
            "wg_t": jnp.transpose(norm(ks[4], (H, C))),
            "wu_t": jnp.transpose(norm(ks[5], (H, C))),
            "wd_t": jnp.transpose(norm(ks[6], (C, H))),
        })
    params["layers"] = layers
    cos, sin = precompute_rope(cfg["block_size"], hd, cfg["rope_theta"])
    params["cos"] = cos
    params["sin"] = sin
    return params


def smollm2_forward(params, tokens, cfg):
    B, T = tokens.shape
    C = cfg["n_embd"]; nh = cfg["n_head"]; nkv = cfg["n_kv_heads"]
    hd = C // nh; eps = cfg["norm_eps"]
    M = B * T

    h = params["wte"][tokens].reshape(M, C)   # embedding gather (XLA glue)
    cos = params["cos"][:T]
    sin = params["sin"][:T]

    for layer in params["layers"]:
        qkv = rms_qkv(h, layer["ln1"], layer["wqkv_t"], eps)
        attn = flash_attention(qkv, cos, sin, B=B, T=T, nh=nh, nkv=nkv, hd=hd,
                               tq=cfg.get("attn_tq", 128), tk=cfg.get("attn_tk", 128))
        h = matmul_residual(attn, layer["wo_t"], h)
        h = ffn_block(h, layer["ln2"], layer["wg_t"], layer["wu_t"], layer["wd_t"],
                      eps, th=cfg.get("ffn_th", 512))

    logits = rms_head(h, params["norm_w"], params["wte_t"], eps,
                      tn=cfg.get("lm_tn", 1024))
    return logits.reshape(B, T, cfg["vocab_size"])


if __name__ == "__main__":
    # Small but tiling-exercising config: 2 q-tiles x 2 kv-tiles per (batch,
    # kv-head) in attention, 2 hidden tiles in the FFN, 2 vocab tiles in lm_head.
    cfg = dict(n_embd=512, n_hidden=1024, n_head=4, n_kv_heads=2, n_layer=2,
               norm_eps=1e-5, block_size=64, rope_theta=100000, vocab_size=2048,
               attn_tq=32, attn_tk=32, ffn_th=512, lm_tn=1024)
    key = jax.random.PRNGKey(0)
    kp, kt = jax.random.split(key)
    params = init_params(kp, cfg)
    tokens = jax.random.randint(kt, (2, 64), 0, cfg["vocab_size"], dtype=jnp.int32)

    logits = smollm2_forward(params, tokens, cfg)
    jax.block_until_ready(logits)
    assert logits.shape == (2, 64, cfg["vocab_size"]) and logits.dtype == DTYPE
    assert bool(jnp.isfinite(logits.astype(jnp.float32)).all())
    print("KERNEL_OK")
</pallas_src>

<mosaic_0001>
module attributes {stable_mosaic.version = 11 : i64} {
  func.func @_rms_qkv_kernel(%arg0: i32, %arg1: memref<128x512xbf16, #tpu.memory_space<vmem>>, %arg2: memref<1x512xbf16, #tpu.memory_space<vmem>>, %arg3: memref<512x1024xbf16, #tpu.memory_space<vmem>>, %arg4: memref<128x1024xbf16, #tpu.memory_space<vmem>>) attributes {dimension_semantics = [#tpu.dimension_semantics<parallel>], iteration_bounds = array<i64: 1>, scalar_prefetch = 0 : i64, scratch_operands = 0 : i64, tpu.core_type = #tpu.core_type<tc>, window_params = [{transform_indices = @transform_0, window_bounds = array<i64: 128, 512>}, {pipeline_mode = #tpu.pipeline_mode<synchronous>, transform_indices = @transform_1, window_bounds = array<i64: 1, 512>}, {pipeline_mode = #tpu.pipeline_mode<synchronous>, transform_indices = @transform_2, window_bounds = array<i64: 512, 1024>}, {transform_indices = @transform_3, window_bounds = array<i64: 128, 1024>}]} {
    %c0 = arith.constant 0 : index
    %c0_0 = arith.constant 0 : index
    %0 = vector.load %arg1[%c0, %c0_0] : memref<128x512xbf16, #tpu.memory_space<vmem>>, vector<128x512xbf16>
    %1 = arith.extf %0 : vector<128x512xbf16> to vector<128x512xf32>
    %2 = arith.mulf %1, %1 : vector<128x512xf32>
    %cst = arith.constant dense<0.000000e+00> : vector<128xf32>
    %3 = vector.multi_reduction <add>, %2, %cst [1] : vector<128x512xf32> to vector<128xf32>
    %4 = vector.shape_cast %3 : vector<128xf32> to vector<128x1xf32>
    %cst_1 = arith.constant 5.120000e+02 : f32
    %5 = vector.broadcast %cst_1 : f32 to vector<128x1xf32>
    %6 = arith.divf %4, %5 : vector<128x1xf32>
    %cst_2 = arith.constant 9.99999974E-6 : f32
    %7 = vector.broadcast %cst_2 : f32 to vector<128x1xf32>
    %8 = arith.addf %6, %7 : vector<128x1xf32>
    %9 = math.rsqrt %8 : vector<128x1xf32>
    %10 = vector.broadcast %9 : vector<128x1xf32> to vector<128x512xf32>
    %11 = arith.mulf %1, %10 : vector<128x512xf32>
    %c0_3 = arith.constant 0 : index
    %c0_4 = arith.constant 0 : index
    %12 = vector.load %arg2[%c0_3, %c0_4] : memref<1x512xbf16, #tpu.memory_space<vmem>>, vector<1x512xbf16>
    %13 = arith.extf %12 : vector<1x512xbf16> to vector<1x512xf32>
    %14 = vector.broadcast %13 : vector<1x512xf32> to vector<128x512xf32>
    %15 = arith.mulf %11, %14 : vector<128x512xf32>
    %16 = arith.truncf %15 : vector<128x512xf32> to vector<128x512xbf16>
    %c0_5 = arith.constant 0 : index
    %c0_6 = arith.constant 0 : index
    %17 = vector.load %arg3[%c0_5, %c0_6] : memref<512x1024xbf16, #tpu.memory_space<vmem>>, vector<512x1024xbf16>
    %cst_7 = arith.constant dense<0.000000e+00> : vector<128x1024xf32>
    %18 = tpu.matmul %16, %17, %cst_7 {dimension_numbers = #tpu.dot_dimension_numbers<[1], [0], [0], [1], [0, 0, 1, 1], [], []>} : vector<128x512xbf16>, vector<512x1024xbf16>, vector<128x1024xf32> -> vector<128x1024xf32>
    %19 = arith.truncf %18 : vector<128x1024xf32> to vector<128x1024xbf16>
    %c0_8 = arith.constant 0 : index
    %c0_9 = arith.constant 0 : index
    %20 = vector.load %arg4[%c0_8, %c0_9] : memref<128x1024xbf16, #tpu.memory_space<vmem>>, vector<128x1024xbf16>
    tpu.vector_store %arg4[%c0_8, %c0_9], %19 {strides = array<i32>} : memref<128x1024xbf16, #tpu.memory_space<vmem>>, vector<128x1024xbf16>,
    return
  }
  func.func @transform_0(%arg0: i32) -> (i32, i32) {
    %c0_i32 = arith.constant 0 : i32
    %c0_i32_0 = arith.constant 0 : i32
    return %arg0, %c0_i32 : i32, i32
  }
  func.func @transform_1(%arg0: i32) -> (i32, i32) {
    %c0_i32 = arith.constant 0 : i32
    %c0_i32_0 = arith.constant 0 : i32
    %c0_i32_1 = arith.constant 0 : i32
    return %c0_i32, %c0_i32_0 : i32, i32
  }
  func.func @transform_2(%arg0: i32) -> (i32, i32) {
    %c0_i32 = arith.constant 0 : i32
    %c0_i32_0 = arith.constant 0 : i32
    %c0_i32_1 = arith.constant 0 : i32
    return %c0_i32, %c0_i32_0 : i32, i32
  }
  func.func @transform_3(%arg0: i32) -> (i32, i32) {
    %c0_i32 = arith.constant 0 : i32
    %c0_i32_0 = arith.constant 0 : i32
    return %arg0, %c0_i32 : i32, i32
  }
}

</mosaic_0001>

<bundles_post_ra>
// kernel: tpu_custom_call.1
= control target key start
LH: loop header
LB: loop body
LE: loop exit
PB: predicated region body
PF: predicated region fallthrough
CT: control target
= control target key end

     0   :  { %8 = vsyncpa [#allocation3], 0  ;;  %s4876_s0 = inlined_call_operand.hbm [shape: bf16[128,512], index: 0, kind: input, shape index: {}]   ;;  %s4877_s1 = inlined_call_operand.hbm [shape: bf16[1,512], index: 1, kind: input, shape index: {}]   ;;  %s4878_s2 = inlined_call_operand.hbm [shape: bf16[512,1024], index: 2, kind: input, shape index: {}]   ;;  %s4879_s3 = inlined_call_operand.hbm [shape: bf16[128,1024], index: 3, kind: output, shape index: {}]  }
   0x1   :  { %9 = vsyncpa [#allocation6], 0 }
   0x2   :  { %10 = vsyncpa [#allocation4], 0  ;;  %s3958_s12 = smov [#allocation5]   ;;  %s3959_s14 = smov [#allocation2]  }
   0x3   :  { %s29_s13 = sshll.u32 %s3958_s12, 4  ;;  %s16_s15 = sshll.u32 %s3959_s14, 4  ;;  %s30_s13 = int_to_ptr.vmem [resolvable:$true] %s29_s13  ;;  %s17_s15 = int_to_ptr.vmem [resolvable:$true] %s16_s15 }
   0x4   :  { %s3880_s16 = scalar_lea.vmem %s30_s13, 64  ;;  %p3885_p1 = scmp.lt.s32.totalorder %s30_s13, %s30_s13 }
   0x5   :  { %p3881_p0 = scmp.ne.s32.totalorder %s30_s13, %s3880_s16  ;;  %p3886_p2 = scmp.lt.s32.totalorder %s3880_s16, %s3880_s16 }
   0x7   :  { %p3887_p3 = por %p3886_p2, %p3885_p1 }
   0x9   :  { %p3888_p4 = pnand %p3887_p3, %p3881_p0 }
   0xb   :  { %3891 = shalt.err (!%p3888_p4)
}
   0xc   :  { %32 = dma.hbm_to_vmem [thread:$0]  %s4877_s1, 64, %s30_s13, [#allocation6]  }
   0xd   :  { %s3900_s19 = scalar_lea.vmem %s17_s15, 4096  ;;  %p3905_p6 = scmp.lt.s32.totalorder %s17_s15, %s17_s15 }
   0xe   :  { %p3901_p5 = scmp.ne.s32.totalorder %s17_s15, %s3900_s19  ;;  %p3906_p7 = scmp.lt.s32.totalorder %s3900_s19, %s3900_s19 }
  0x10   :  { %p3907_p8 = por %p3906_p7, %p3905_p6 }
  0x12   :  { %p3908_p9 = pnand %p3907_p8, %p3901_p5 }
  0x14   :  { %3911 = shalt.err (!%p3908_p9)
}
  0x15   :  { %s3960_s20 = smov 256   ;;  %s3961_s21 = smov 16  }
  0x16   :  { %22 = dma.hbm_to_vmem [thread:$0]  %s4876_s0, 4096, %s17_s15, [#allocation3], %s3960_s20, %s3960_s20, %s3961_s21  }
  0x17   :  { %s3962_s24 = smov [#allocation7]  }
  0x18   :  { %s38_s25 = sshll.u32 %s3962_s24, 4  ;;  %s39_s25 = int_to_ptr.vmem [resolvable:$true] %s38_s25 }
  0x19   :  { %s3920_s26 = scalar_lea.vmem %s39_s25, 32768  ;;  %p3925_p11 = scmp.lt.s32.totalorder %s39_s25, %s39_s25 }
  0x1a   :  { %p3921_p10 = scmp.ne.s32.totalorder %s39_s25, %s3920_s26  ;;  %p3926_p12 = scmp.lt.s32.totalorder %s3920_s26, %s3920_s26 }
  0x1c   :  { %p3927_p13 = por %p3926_p12, %p3925_p11 }
  0x1e   :  { %p3928_p0 = pnand %p3927_p13, %p3921_p10 }
  0x20   :  { %3931 = shalt.err (!%p3928_p0)
}
  0x21   :  { %s3963_s1 = smov 512   ;;  %s3964_s27 = smov 32  }
  0x22   :  { %44 = dma.hbm_to_vmem [thread:$0]  %s4878_s2, 32768, %s39_s25, [#allocation6], %s3963_s1, %s3963_s1, %s3964_s27  }
  0x23   :  { %3952 = dma.done.wait [#allocation3], 4096  }
  0x24   :  { %3953 = vsyncadd [#allocation3], 4294963200 }
  0x25   :  { %3954 = dma.done.wait [#allocation6], 32832  }
  0x26   :  { %3955 = vsyncadd [#allocation6], 4294934464  ;;  %v54_v0 = vld [vmem:[#allocation2] sm:$0xff]  ;;  %v55_v1 = vld [vmem:[#allocation2 + $0x8] sm:$0xff]  ;;  %s3965_s0 = smov [#allocation8]  }
  0x27   :  { %v58_v2 = vld [vmem:[#allocation2 + $0x20] sm:$0xff]  ;;  %v3998_v3 = vunpack.c.l.bf16 %v54_v0  ;;  %v4000_v4 = vunpack.c.h.bf16 %v54_v0  ;;  %v4002_v5 = vunpack.c.l.bf16 %v55_v1  ;;  %v4004_v6 = vunpack.c.h.bf16 %v55_v1  ;;  %v59_v7 = vld [vmem:[#allocation2 + $0x28] sm:$0xff]  ;;  %v56_v12 = vld [vmem:[#allocation2 + $0x10] sm:$0xff]  ;;  %s3435_s2 = sshll.u32 %s3965_s0, 4  ;;  %s3436_s2 = int_to_ptr.vmem [resolvable:$true] %s3435_s2 }
  0x28   :  { %v4006_v8 = vunpack.c.l.bf16 %v58_v2  ;;  %v4008_v9 = vunpack.c.h.bf16 %v58_v2  ;;  %v4010_v10 = vunpack.c.l.bf16 %v59_v7  ;;  %v4012_v11 = vunpack.c.h.bf16 %v59_v7  ;;  %v57_v13 = vld [vmem:[#allocation2 + $0x18] sm:$0xff]  ;;  %v60_v18 = vld [vmem:[#allocation2 + $0x30] sm:$0xff]  ;;  %v62_v46 = vld [vmem:[#allocation2 + $0x40] sm:$0xff]  ;;  %s3932_s30 = scalar_lea.vmem %s3436_s2, 8192  ;;  %p3937_p2 = scmp.lt.s32.totalorder %s3436_s2, %s3436_s2 }
  0x29   :  { %v150_v14 = vmul.f32 %v3998_v3, %v3998_v3  ;;  %v151_v15 = vmul.f32 %v4000_v4, %v4000_v4  ;;  %v152_v16 = vmul.f32 %v4002_v5, %v4002_v5  ;;  %v153_v17 = vmul.f32 %v4004_v6, %v4004_v6  ;;  %v61_v27 = vld [vmem:[#allocation2 + $0x38] sm:$0xff]  ;;  %v64_v36 = vld [vmem:[#allocation2 + $0x50] sm:$0xff]  ;;  %v63_v55 = vld [vmem:[#allocation2 + $0x48] sm:$0xff]  ;;  %p3933_p1 = scmp.ne.s32.totalorder %s3436_s2, %s3932_s30  ;;  %p3938_p3 = scmp.lt.s32.totalorder %s3932_s30, %s3932_s30 }
  0x2a   :  { %v158_v19 = vmul.f32 %v4006_v8, %v4006_v8  ;;  %v159_v20 = vmul.f32 %v4008_v9, %v4008_v9  ;;  %v160_v21 = vmul.f32 %v4010_v10, %v4010_v10  ;;  %v161_v22 = vmul.f32 %v4012_v11, %v4012_v11  ;;  %v65_v41 = vld [vmem:[#allocation2 + $0x58] sm:$0xff]  ;;  %v68_v60 = vld [vmem:[#allocation2 + $0x70] sm:$0xff] }
  0x2b   :  { %v214_v23 = vadd.f32 %v151_v15, %v150_v14  ;;  %v4030_v24 = vunpack.c.l.bf16 %v56_v12  ;;  %v4032_v25 = vunpack.c.h.bf16 %v56_v12  ;;  %v4034_v26 = vunpack.c.l.bf16 %v57_v13  ;;  %v69_v1 = vld [vmem:[#allocation2 + $0x78] sm:$0xff]  ;;  %p3939_p4 = por %p3938_p3, %p3937_p2 }
  0x2c   :  { %v224_v28 = vadd.f32 %v159_v20, %v158_v19  ;;  %v4036_v29 = vunpack.c.h.bf16 %v57_v13  ;;  %v4038_v30 = vunpack.c.l.bf16 %v60_v18  ;;  %v4040_v31 = vunpack.c.h.bf16 %v60_v18  ;;  %v66_v18 = vld [vmem:[#allocation2 + $0x60] sm:$0xff] }
  0x2d   :  { %v215_v32 = vadd.f32 %v214_v23, %v152_v16  ;;  %v154_v33 = vmul.f32 %v4030_v24, %v4030_v24  ;;  %v155_v34 = vmul.f32 %v4032_v25, %v4032_v25  ;;  %v156_v35 = vmul.f32 %v4034_v26, %v4034_v26  ;;  %v67_v23 = vld [vmem:[#allocation2 + $0x68] sm:$0xff]  ;;  %p3940_p5 = pnand %p3939_p4, %p3933_p1 }
  0x2e   :  { %v225_v37 = vadd.f32 %v224_v28, %v160_v21  ;;  %v157_v38 = vmul.f32 %v4036_v29, %v4036_v29  ;;  %v4050_v39 = vunpack.c.l.bf16 %v61_v27  ;;  %v4052_v40 = vunpack.c.h.bf16 %v61_v27 }
  0x2f   :  { %v216_v42 = vadd.f32 %v215_v32, %v153_v17  ;;  %v219_v43 = vadd.f32 %v155_v34, %v154_v33  ;;  %v162_v44 = vmul.f32 %v4038_v30, %v4038_v30  ;;  %v163_v45 = vmul.f32 %v4040_v31, %v4040_v31 }
  0x30   :  { %v226_v47 = vadd.f32 %v225_v37, %v161_v22  ;;  %v164_v48 = vmul.f32 %v4050_v39, %v4050_v39  ;;  %v165_v49 = vmul.f32 %v4052_v40, %v4052_v40  ;;  %v4062_v50 = vunpack.c.l.bf16 %v64_v36 }
  0x31   :  { %217 = vadd.xlane.f32.xlu0 %v216_v42  ;;  %v220_v51 = vadd.f32 %v219_v43, %v156_v35  ;;  %v229_v52 = vadd.f32 %v163_v45, %v162_v44  ;;  %v4064_v53 = vunpack.c.h.bf16 %v64_v36  ;;  %v4066_v54 = vunpack.c.l.bf16 %v65_v41  ;;  %v73_v45 = vld [vmem:[#allocation2 + $0x98] sm:$0xff] }
  0x32   :  { %227 = vadd.xlane.f32.xlu1 %v226_v47  ;;  %v4068_v56 = vunpack.c.h.bf16 %v65_v41  ;;  %v170_v57 = vmul.f32 %v4062_v50, %v4062_v50  ;;  %v4072_v58 = vunpack.c.l.bf16 %v62_v46  ;;  %v4074_v59 = vunpack.c.h.bf16 %v62_v46 }
  0x33   :  { %v221_v61 = vadd.f32 %v220_v51, %v157_v38  ;;  %v230_v62 = vadd.f32 %v229_v52, %v164_v48  ;;  %v171_v63 = vmul.f32 %v4064_v53, %v4064_v53  ;;  %v172_v0 = vmul.f32 %v4066_v54, %v4066_v54  ;;  %v72_v38 = vld [vmem:[#allocation2 + $0x90] sm:$0xff]  ;;  %v70_v51 = vld [vmem:[#allocation2 + $0x80] sm:$0xff] }
  0x34   :  { %v173_v2 = vmul.f32 %v4068_v56, %v4068_v56  ;;  %v4082_v7 = vunpack.c.l.bf16 %v63_v55  ;;  %v4084_v12 = vunpack.c.h.bf16 %v63_v55  ;;  %v166_v13 = vmul.f32 %v4072_v58, %v4072_v58 }
  0x35   :  { %222 = vadd.xlane.f32.xlu0 %v221_v61  ;;  %v231_v14 = vadd.f32 %v230_v62, %v165_v49  ;;  %v239_v15 = vadd.f32 %v171_v63, %v170_v57  ;;  %v167_v16 = vmul.f32 %v4074_v59, %v4074_v59  ;;  %v4090_v17 = vunpack.c.l.bf16 %v68_v60 }
  0x36   :  { %v168_v19 = vmul.f32 %v4082_v7, %v4082_v7  ;;  %v169_v20 = vmul.f32 %v4084_v12, %v4084_v12  ;;  %v4096_v21 = vunpack.c.h.bf16 %v68_v60  ;;  %v4098_v22 = vunpack.c.l.bf16 %v69_v1 }
  0x37   :  { %4935 = vst [vmem:[#allocation12_spill] sm:$0xff] %v4090_v17  ;;  %232 = vadd.xlane.f32.xlu1 %v231_v14  ;;  %v240_v27 = vadd.f32 %v239_v15, %v172_v0  ;;  %v234_v28 = vadd.f32 %v167_v16, %v166_v13  ;;  %v4100_v32 = vunpack.c.h.bf16 %v69_v1  ;;  %v178_v33 = vmul.f32 %v4090_v17, %v4090_v17  ;;  %v71_v1 = vld [vmem:[#allocation2 + $0x88] sm:$0xff]  ;;  %v76_v16 = vld [vmem:[#allocation2 + $0xb0] sm:$0xff] }
  0x38   :  { %4936 = vst [vmem:[#allocation13_spill] sm:$0xff] %v4098_v22  ;;  %v179_v34 = vmul.f32 %v4096_v21, %v4096_v21  ;;  %v180_v35 = vmul.f32 %v4098_v22, %v4098_v22  ;;  %v4108_v36 = vunpack.c.l.bf16 %v66_v18  ;;  %v4110_v37 = vunpack.c.h.bf16 %v66_v18  ;;  %v4328_v22 = vld [vmem:[#allocation7 + $0xa8] sm:$0xff] }
  0x39   :  { %4937 = vst [vmem:[#allocation14_spill] sm:$0xff] %v4100_v32  ;;  %v241_v41 = vadd.f32 %v240_v27, %v173_v2  ;;  %v235_v42 = vadd.f32 %v234_v28, %v168_v19  ;;  %v181_v43 = vmul.f32 %v4100_v32, %v4100_v32  ;;  %v4114_v44 = vunpack.c.l.bf16 %v67_v23  ;;  %4977 = vst [vmem:[#allocation54_spill] sm:$0xff] %v4328_v22 }
  0x3a   :  { %4938 = vst [vmem:[#allocation15_spill] sm:$0xff] %v4108_v36  ;;  %v249_v46 = vadd.f32 %v179_v34, %v178_v33  ;;  %v4116_v47 = vunpack.c.h.bf16 %v67_v23  ;;  %v174_v48 = vmul.f32 %v4108_v36, %v4108_v36  ;;  %v175_v49 = vmul.f32 %v4110_v37, %v4110_v37 }
  0x3b   :  { %4939 = vst [vmem:[#allocation16_spill] sm:$0xff] %v4114_v44  ;;  %242 = vadd.xlane.f32.xlu1 %v241_v41  ;;  %v236_v52 = vadd.f32 %v235_v42, %v169_v20  ;;  %v176_v55 = vmul.f32 %v4114_v44, %v4114_v44  ;;  %v4124_v57 = vunpack.c.l.bf16 %v72_v38  ;;  %v4126_v60 = vunpack.c.h.bf16 %v72_v38  ;;  %v4346_v44 = vld [vmem:[#allocation7 + $0x48] sm:$0xff] }
  0x3c   :  { %v250_v61 = vadd.f32 %v249_v46, %v180_v35  ;;  %v177_v62 = vmul.f32 %v4116_v47, %v4116_v47  ;;  %v244_v63 = vadd.f32 %v175_v49, %v174_v48  ;;  %v4130_v0 = vunpack.c.l.bf16 %v73_v45  ;;  %v77_v35 = vld [vmem:[#allocation2 + $0xb8] sm:$0xff]  ;;  %4979 = vst [vmem:[#allocation56_spill] sm:$0xff] %v4346_v44 }
  0x3d   :  { %4940 = vst [vmem:[#allocation17_spill] sm:$0xff] %v4124_v57  ;;  %4941 = vst [vmem:[#allocation18_spill] sm:$0xff] %v4126_v60  ;;  %237 = vadd.xlane.f32.xlu0 %v236_v52  ;;  %v4132_v2 = vunpack.c.h.bf16 %v73_v45  ;;  %v186_v13 = vmul.f32 %v4124_v57, %v4124_v57  ;;  %v187_v14 = vmul.f32 %v4126_v60, %v4126_v60  ;;  %v4138_v15 = vunpack.c.l.bf16 %v70_v51  ;;  %v74_v45 = vld [vmem:[#allocation2 + $0xa0] sm:$0xff]  ;;  %v75_v52 = vld [vmem:[#allocation2 + $0xa8] sm:$0xff] }
  0x3e   :  { %4942 = vst [vmem:[#allocation19_spill] sm:$0xff] %v4130_v0  ;;  %v251_v18 = vadd.f32 %v250_v61, %v181_v43  ;;  %v245_v19 = vadd.f32 %v244_v63, %v176_v55  ;;  %v188_v20 = vmul.f32 %v4130_v0, %v4130_v0  ;;  %v4142_v23 = vunpack.c.h.bf16 %v70_v51  ;;  %v722_v0 = vld [vmem:[#allocation7 + $0x5a0] sm:$0xff] }
  0x3f   :  { %4943 = vst [vmem:[#allocation20_spill] sm:$0xff] %v4132_v2  ;;  %4944 = vst [vmem:[#allocation21_spill] sm:$0xff] %v4138_v15  ;;  %v189_v27 = vmul.f32 %v4132_v2, %v4132_v2  ;;  %v259_v28 = vadd.f32 %v187_v14, %v186_v13  ;;  %v4146_v33 = vunpack.c.l.bf16 %v71_v1  ;;  %v4148_v34 = vunpack.c.h.bf16 %v71_v1  ;;  %v710_v60 = vld [vmem:[#allocation7 + $0x540] sm:$0xff] }
  0x40   :  { %4945 = vst [vmem:[#allocation22_spill] sm:$0xff] %v4142_v23  ;;  %252 = vadd.xlane.f32.xlu1 %v251_v18  ;;  %v246_v38 = vadd.f32 %v245_v19, %v177_v62  ;;  %v182_v41 = vmul.f32 %v4138_v15, %v4138_v15  ;;  %v183_v42 = vmul.f32 %v4142_v23, %v4142_v23  ;;  %v4154_v43 = vunpack.c.l.bf16 %v76_v16 }
  0x41   :  { %4946 = vst [vmem:[#allocation23_spill] sm:$0xff] %v4146_v33  ;;  %4947 = vst [vmem:[#allocation24_spill] sm:$0xff] %v4148_v34  ;;  %v260_v46 = vadd.f32 %v259_v28, %v188_v20  ;;  %v184_v48 = vmul.f32 %v4146_v33, %v4146_v33  ;;  %v185_v49 = vmul.f32 %v4148_v34, %v4148_v34  ;;  %v4160_v51 = vunpack.c.h.bf16 %v76_v16  ;;  %v80_v16 = vld [vmem:[#allocation2 + $0xd0] sm:$0xff] }
  0x42   :  { %4948 = vst [vmem:[#allocation25_spill] sm:$0xff] %v4154_v43  ;;  %247 = vadd.xlane.f32.xlu0 %v246_v38  ;;  %v254_v55 = vadd.f32 %v183_v42, %v182_v41  ;;  %v4162_v61 = vunpack.c.l.bf16 %v77_v35  ;;  %v4164_v62 = vunpack.c.h.bf16 %v77_v35  ;;  %v194_v63 = vmul.f32 %v4154_v43, %v4154_v43  ;;  %v81_v38 = vld [vmem:[#allocation2 + $0xd8] sm:$0xff] }
  0x43   :  { %4949 = vst [vmem:[#allocation26_spill] sm:$0xff] %v4160_v51  ;;  %v261_v1 = vadd.f32 %v260_v46, %v189_v27  ;;  %v195_v13 = vmul.f32 %v4160_v51, %v4160_v51  ;;  %v4170_v14 = vunpack.c.l.bf16 %v74_v45  ;;  %v4172_v18 = vunpack.c.h.bf16 %v74_v45  ;;  %v78_v46 = vld [vmem:[#allocation2 + $0xc0] sm:$0xff]  ;;  %v85_v51 = vld [vmem:[#allocation2 + $0xf8] sm:$0xff] }
  0x44   :  { %4950 = vst [vmem:[#allocation27_spill] sm:$0xff] %v4162_v61  ;;  %4951 = vst [vmem:[#allocation28_spill] sm:$0xff] %v4164_v62  ;;  %v255_v19 = vadd.f32 %v254_v55, %v184_v48  ;;  %v196_v20 = vmul.f32 %v4162_v61, %v4162_v61  ;;  %v197_v28 = vmul.f32 %v4164_v62, %v4164_v62  ;;  %v4178_v35 = vunpack.c.l.bf16 %v75_v52 }
  0x45   :  { %4952 = vst [vmem:[#allocation29_spill] sm:$0xff] %v4170_v14  ;;  %4953 = vst [vmem:[#allocation30_spill] sm:$0xff] %v4172_v18  ;;  %262 = vadd.xlane.f32.xlu1 %v261_v1  ;;  %v269_v27 = vadd.f32 %v195_v13, %v194_v63  ;;  %v4180_v41 = vunpack.c.h.bf16 %v75_v52  ;;  %v190_v42 = vmul.f32 %v4170_v14, %v4170_v14  ;;  %v4188_v61 = vunpack.c.l.bf16 %v80_v16  ;;  %v79_v13 = vld [vmem:[#allocation2 + $0xc8] sm:$0xff] }
  0x46   :  { %4954 = vst [vmem:[#allocation31_spill] sm:$0xff] %v4178_v35  ;;  %v191_v45 = vmul.f32 %v4172_v18, %v4172_v18  ;;  %v256_v48 = vadd.f32 %v255_v19, %v185_v49  ;;  %v192_v55 = vmul.f32 %v4178_v35, %v4178_v35  ;;  %v4190_v43 = vunpack.c.h.bf16 %v80_v16  ;;  %v84_v16 = vld [vmem:[#allocation2 + $0xf0] sm:$0xff] }
  0x47   :  { %4955 = vst [vmem:[#allocation32_spill] sm:$0xff] %v4180_v41  ;;  %4956 = vst [vmem:[#allocation33_spill] sm:$0xff] %v4188_v61  ;;  %v270_v62 = vadd.f32 %v269_v27, %v196_v20  ;;  %v193_v52 = vmul.f32 %v4180_v41, %v4180_v41  ;;  %v4194_v1 = vunpack.c.l.bf16 %v81_v38  ;;  %v4196_v14 = vunpack.c.h.bf16 %v81_v38 }
  0x48   :  { %4957 = vst [vmem:[#allocation34_spill] sm:$0xff] %v4190_v43  ;;  %v264_v63 = vadd.f32 %v191_v45, %v190_v42  ;;  %257 = vadd.xlane.f32.xlu0 %v256_v48  ;;  %v202_v49 = vmul.f32 %v4188_v61, %v4188_v61  ;;  %v203_v19 = vmul.f32 %v4190_v43, %v4190_v43  ;;  %v4202_v35 = vunpack.c.l.bf16 %v78_v46 }
  0x49   :  { %4958 = vst [vmem:[#allocation35_spill] sm:$0xff] %v4194_v1  ;;  %4959 = vst [vmem:[#allocation36_spill] sm:$0xff] %v4196_v14  ;;  %v271_v20 = vadd.f32 %v270_v62, %v197_v28  ;;  %v204_v42 = vmul.f32 %v4194_v1, %v4194_v1  ;;  %v4206_v45 = vunpack.c.h.bf16 %v78_v46  ;;  %v205_v38 = vmul.f32 %v4196_v14, %v4196_v14  ;;  %v82_v46 = vld [vmem:[#allocation2 + $0xe0] sm:$0xff] }
  0x4a   :  { %4960 = vst [vmem:[#allocation37_spill] sm:$0xff] %v4202_v35  ;;  %v265_v27 = vadd.f32 %v264_v63, %v192_v55  ;;  %v279_v48 = vadd.f32 %v203_v19, %v202_v49  ;;  %v4210_v41 = vunpack.c.l.bf16 %v79_v13  ;;  %v4212_v61 = vunpack.c.h.bf16 %v79_v13  ;;  %v598_v14 = vld [vmem:[#allocation7 + $0x1c0] sm:$0xff] }
  0x4b   :  { %4961 = vst [vmem:[#allocation38_spill] sm:$0xff] %v4206_v45  ;;  %272 = vadd.xlane.f32.xlu1 %v271_v20  ;;  %v198_v62 = vmul.f32 %v4202_v35, %v4202_v35  ;;  %v199_v28 = vmul.f32 %v4206_v45, %v4206_v45  ;;  %v4218_v55 = vunpack.c.l.bf16 %v84_v16  ;;  %v4224_v19 = vunpack.c.h.bf16 %v84_v16  ;;  %v83_v20 = vld [vmem:[#allocation2 + $0xe8] sm:$0xff] }
  0x4c   :  { %4962 = vst [vmem:[#allocation39_spill] sm:$0xff] %v4210_v41  ;;  %4963 = vst [vmem:[#allocation40_spill] sm:$0xff] %v4212_v61  ;;  %v266_v43 = vadd.f32 %v265_v27, %v193_v52  ;;  %v280_v63 = vadd.f32 %v279_v48, %v204_v42  ;;  %v200_v49 = vmul.f32 %v4210_v41, %v4210_v41  ;;  %v4226_v27 = vunpack.c.l.bf16 %v85_v51  ;;  %v602_v16 = vld [vmem:[#allocation7 + $0x1e0] sm:$0xff] }
  0x4d   :  { %4964 = vst [vmem:[#allocation41_spill] sm:$0xff] %v4218_v55  ;;  %v201_v13 = vmul.f32 %v4212_v61, %v4212_v61  ;;  %4965 = vst [vmem:[#allocation42_spill] sm:$0xff] %v4224_v19  ;;  %v274_v52 = vadd.f32 %v199_v28, %v198_v62  ;;  %v4228_v1 = vunpack.c.h.bf16 %v85_v51  ;;  %v210_v35 = vmul.f32 %v4218_v55, %v4218_v55  ;;  %v726_v45 = vld [vmem:[#allocation7 + $0x5c0] sm:$0xff] }
  0x4e   :  { %267 = vadd.xlane.f32.xlu0 %v266_v43  ;;  %4966 = vst [vmem:[#allocation43_spill] sm:$0xff] %v4226_v27  ;;  %v281_v42 = vadd.f32 %v280_v63, %v205_v38  ;;  %v211_v48 = vmul.f32 %v4224_v19, %v4224_v19  ;;  %v4234_v41 = vunpack.c.l.bf16 %v82_v46  ;;  %v4236_v61 = vunpack.c.h.bf16 %v82_v46  ;;  %v730_v43 = vld [vmem:[#allocation7 + $0x5e0] sm:$0xff] }
  0x4f   :  { %4967 = vst [vmem:[#allocation44_spill] sm:$0xff] %v4228_v1  ;;  %v275_v62 = vadd.f32 %v274_v52, %v200_v49  ;;  %v212_v51 = vmul.f32 %v4226_v27, %v4226_v27  ;;  %v213_v28 = vmul.f32 %v4228_v1, %v4228_v1  ;;  %v4242_v55 = vunpack.c.l.bf16 %v83_v20  ;;  %v590_v38 = vld [vmem:[#allocation7 + $0x180] sm:$0xff] }
  0x50   :  { %4968 = vst [vmem:[#allocation45_spill] sm:$0xff] %v4234_v41  ;;  %4969 = vst [vmem:[#allocation46_spill] sm:$0xff] %v4236_v61  ;;  %282 = vadd.xlane.f32.xlu1 %v281_v42  ;;  %v289_v63 = vadd.f32 %v211_v48, %v210_v35  ;;  %v4244_v19 = vunpack.c.h.bf16 %v83_v20  ;;  %v206_v46 = vmul.f32 %v4234_v41, %v4234_v41  ;;  %v594_v49 = vld [vmem:[#allocation7 + $0x1a0] sm:$0xff] }
  0x51   :  { %4970 = vst [vmem:[#allocation47_spill] sm:$0xff] %v4242_v55  ;;  %v207_v18 = vmul.f32 %v4236_v61, %v4236_v61  ;;  %v718_v52 = vld [vmem:[#allocation7 + $0x580] sm:$0xff]  ;;  %v276_v27 = vadd.f32 %v275_v62, %v201_v13  ;;  %v208_v1 = vmul.f32 %v4242_v55, %v4242_v55  ;;  %v3505_v33 = vcombine.high %v598_v14, %v602_v16 }
  0x52   :  { %4971 = vst [vmem:[#allocation48_spill] sm:$0xff] %v4244_v19  ;;  %v3633_v57 = vcombine.high %v726_v45, %v730_v43  ;;  %v290_v15 = vadd.f32 %v289_v63, %v212_v51  ;;  %v209_v35 = vmul.f32 %v4244_v19, %v4244_v19  ;;  %v3504_v42 = vcombine.low %v598_v14, %v602_v16  ;;  %v582_v48 = vld [vmem:[#allocation7 + $0x140] sm:$0xff] }
  0x53   :  { %v284_v20 = vadd.f32 %v207_v18, %v206_v46  ;;  %v586_v41 = vld [vmem:[#allocation7 + $0x160] sm:$0xff]  ;;  %277 = vadd.xlane.f32.xlu0 %v276_v27  ;;  %2078 = vmatprep.subr.bf16.mxu0 %v3505_v33  ;;  %v3632_v61 = vcombine.low %v726_v45, %v730_v43  ;;  %v3497_v2 = vcombine.high %v590_v38, %v594_v49 }
  0x54   :  { %v3625_v34 = vcombine.high %v718_v52, %v722_v0  ;;  %v714_v13 = vld [vmem:[#allocation7 + $0x560] sm:$0xff]  ;;  %v291_v62 = vadd.f32 %v290_v15, %v213_v28  ;;  %2191 = vmatprep.subr.bf16.mxu1 %v3633_v57  ;;  %2079 = vmatpush1.bf16.msra.mxu0 %v3504_v42  ;;  %v3496_v55 = vcombine.low %v590_v38, %v594_v49 }
  0x55   :  { %v285_v23 = vadd.f32 %v284_v20, %v208_v1  ;;  %2192 = vmatpush1.bf16.msra.mxu1 %v3632_v61  ;;  %2080 = vmatprep.subr.bf16.mxu0 %v3497_v2  ;;  %v3624_v51 = vcombine.low %v718_v52, %v722_v0  ;;  %v3489_v63 = vcombine.high %v582_v48, %v586_v41  ;;  %v574_v27 = vld [vmem:[#allocation7 + $0x100] sm:$0xff] }
  0x56   :  { %292 = vadd.xlane.f32.xlu1 %v291_v62  ;;  %2193 = vmatprep.subr.bf16.mxu1 %v3625_v34  ;;  %v3617_v18 = vcombine.high %v710_v60, %v714_v13  ;;  %v578_v33 = vld [vmem:[#allocation7 + $0x120] sm:$0xff]  ;;  %v3488_v43 = vcombine.low %v582_v48, %v586_v41  ;;  %v3616_v57 = vcombine.low %v710_v60, %v714_v13 }
  0x57   :  { %v286_v14 = vadd.f32 %v285_v23, %v209_v35  ;;  %v702_v45 = vld [vmem:[#allocation7 + $0x500] sm:$0xff]  ;;  %v3481_v15 = vcombine.high %v574_v27, %v578_v33  ;;  %v3480_v23 = vcombine.low %v574_v27, %v578_v33  ;;  %v4260_v27 = vld [vmem:[#allocation7 + $0x5e8] sm:$0xff] }
  0x58   :  { %v706_v16 = vld [vmem:[#allocation7 + $0x520] sm:$0xff]  ;;  %2081 = vmatpush1.bf16.msra.mxu0 %v3496_v55 }
  0x59   :  { %287 = vadd.xlane.f32.xlu0 %v286_v14  ;;  %2194 = vmatpush1.bf16.msra.mxu1 %v3624_v51  ;;  %v3609_v61 = vcombine.high %v702_v45, %v706_v16  ;;  %v566_v2 = vld [vmem:[#allocation7 + $0xc0] sm:$0xff]  ;;  %v3608_v34 = vcombine.low %v702_v45, %v706_v16  ;;  %v4254_v51 = vld [vmem:[#allocation7 + $0x1c8] sm:$0xff] }
  0x5a   :  { %2082 = vmatprep.subr.bf16.mxu0 %v3489_v63  ;;  %2195 = vmatprep.subr.bf16.mxu1 %v3617_v18  ;;  %v570_v0 = vld [vmem:[#allocation7 + $0xe0] sm:$0xff]  ;;  %v4256_v63 = vld [vmem:[#allocation7 + $0x1e8] sm:$0xff] }
  0x5b   :  { %v694_v1 = vld [vmem:[#allocation7 + $0x4c0] sm:$0xff]  ;;  %v3473_v38 = vcombine.high %v566_v2, %v570_v0  ;;  %v3472_v60 = vcombine.low %v566_v2, %v570_v0  ;;  %v4258_v18 = vld [vmem:[#allocation7 + $0x5c8] sm:$0xff] }
  0x5c   :  { %v698_v28 = vld [vmem:[#allocation7 + $0x4e0] sm:$0xff]  ;;  %2083 = vmatpush1.bf16.msra.mxu0 %v3488_v43  ;;  %v4318_v2 = vld [vmem:[#allocation7 + $0x4c8] sm:$0xff] }
  0x5d   :  { %2196 = vmatpush1.bf16.msra.mxu1 %v3616_v57  ;;  %2084 = vmatprep.subr.bf16.mxu0 %v3481_v15  ;;  %v3601_v46 = vcombine.high %v694_v1, %v698_v28  ;;  %v558_v55 = vld [vmem:[#allocation7 + $0x80] sm:$0xff]  ;;  %v3600_v35 = vcombine.low %v694_v1, %v698_v28 }
  0x5e   :  { %2197 = vmatprep.subr.bf16.mxu1 %v3609_v61  ;;  %v562_v41 = vld [vmem:[#allocation7 + $0xa0] sm:$0xff] }
  0x5f   :  { %v686_v49 = vld [vmem:[#allocation7 + $0x480] sm:$0xff]  ;;  %v3465_v20 = vcombine.high %v558_v55, %v562_v41  ;;  %v3464_v33 = vcombine.low %v558_v55, %v562_v41 }
  0x60   :  { %v690_v52 = vld [vmem:[#allocation7 + $0x4a0] sm:$0xff]  ;;  %2085 = vmatpush1.bf16.msra.mxu0 %v3480_v23 }
  0x61   :  { %2198 = vmatpush1.bf16.msra.mxu1 %v3608_v34  ;;  %2086 = vmatprep.subr.bf16.mxu0 %v3473_v38  ;;  %v550_v42 = vld [vmem:[#allocation7 + $0x40] sm:$0xff]  ;;  %v3593_v13 = vcombine.high %v686_v49, %v690_v52  ;;  %v3592_v45 = vcombine.low %v686_v49, %v690_v52 }
  0x62   :  { %v554_v48 = vld [vmem:[#allocation7 + $0x60] sm:$0xff]  ;;  %2199 = vmatprep.subr.bf16.mxu1 %v3601_v46 }
  0x63   :  { %v678_v62 = vld [vmem:[#allocation7 + $0x440] sm:$0xff]  ;;  %v3457_v16 = vcombine.high %v550_v42, %v554_v48  ;;  %v3456_v28 = vcombine.low %v550_v42, %v554_v48 }
  0x64   :  { %v682_v14 = vld [vmem:[#allocation7 + $0x460] sm:$0xff]  ;;  %2087 = vmatpush1.bf16.msra.mxu0 %v3472_v60 }
  0x65   :  { %2200 = vmatpush1.bf16.msra.mxu1 %v3600_v35  ;;  %2088 = vmatprep.subr.bf16.mxu0 %v3465_v20  ;;  %v3585_v57 = vcombine.high %v678_v62, %v682_v14  ;;  %v542_v15 = vld [vmem:[#allocation7] sm:$0xff]  ;;  %v3584_v23 = vcombine.low %v678_v62, %v682_v14 }
  0x66   :  { %2201 = vmatprep.subr.bf16.mxu1 %v3593_v13  ;;  %v546_v61 = vld [vmem:[#allocation7 + $0x20] sm:$0xff] }
  0x67   :  { %v670_v0 = vld [vmem:[#allocation7 + $0x400] sm:$0xff]  ;;  %v3449_v34 = vcombine.high %v542_v15, %v546_v61  ;;  %v3448_v52 = vcombine.low %v542_v15, %v546_v61 }
  0x68   :  { %v674_v1 = vld [vmem:[#allocation7 + $0x420] sm:$0xff]  ;;  %2089 = vmatpush1.bf16.msra.mxu0 %v3464_v33 }
  0x69   :  { %2202 = vmatpush1.bf16.msra.mxu1 %v3592_v45  ;;  %2090 = vmatprep.subr.bf16.mxu0 %v3457_v16  ;;  %v3577_v38 = vcombine.high %v670_v0, %v674_v1  ;;  %v662_v46 = vld [vmem:[#allocation7 + $0x3c0] sm:$0xff]  ;;  %v3576_v60 = vcombine.low %v670_v0, %v674_v1 }
  0x6a   :  { %2203 = vmatprep.subr.bf16.mxu1 %v3585_v57  ;;  %v666_v55 = vld [vmem:[#allocation7 + $0x3e0] sm:$0xff] }
  0x6b   :  { %v790_v41 = vld [vmem:[#allocation7 + $0x7c0] sm:$0xff]  ;;  %v3569_v35 = vcombine.high %v662_v46, %v666_v55  ;;  %v3568_v62 = vcombine.low %v662_v46, %v666_v55 }
  0x6c   :  { %v794_v49 = vld [vmem:[#allocation7 + $0x7e0] sm:$0xff]  ;;  %2091 = vmatpush1.bf16.msra.mxu0 %v3456_v28 }
  0x6d   :  { %2204 = vmatpush1.bf16.msra.mxu1 %v3584_v23  ;;  %2092 = vmatprep.subr.bf16.mxu0 %v3449_v34  ;;  %v3697_v20 = vcombine.high %v790_v41, %v794_v49  ;;  %v654_v13 = vld [vmem:[#allocation7 + $0x380] sm:$0xff]  ;;  %v3696_v14 = vcombine.low %v790_v41, %v794_v49 }
  0x6e   :  { %2205 = vmatprep.subr.bf16.mxu1 %v3577_v38  ;;  %v658_v42 = vld [vmem:[#allocation7 + $0x3a0] sm:$0xff] }
  0x6f   :  { %v782_v48 = vld [vmem:[#allocation7 + $0x780] sm:$0xff]  ;;  %v3561_v45 = vcombine.high %v654_v13, %v658_v42  ;;  %v3560_v0 = vcombine.low %v654_v13, %v658_v42 }
  0x70   :  { %v786_v33 = vld [vmem:[#allocation7 + $0x7a0] sm:$0xff]  ;;  %2093 = vmatpush1.bf16.msra.mxu0 %v3448_v52 }
  0x71   :  { %2206 = vmatpush1.bf16.msra.mxu1 %v3576_v60  ;;  %2094 = vmatprep.subr.bf16.mxu0 %v3569_v35  ;;  %v3689_v16 = vcombine.high %v782_v48, %v786_v33  ;;  %v646_v57 = vld [vmem:[#allocation7 + $0x340] sm:$0xff]  ;;  %v3688_v1 = vcombine.low %v782_v48, %v786_v33 }
  0x72   :  { %2207 = vmatprep.subr.bf16.mxu1 %v3697_v20  ;;  %v650_v15 = vld [vmem:[#allocation7 + $0x360] sm:$0xff] }
  0x73   :  { %v774_v61 = vld [vmem:[#allocation7 + $0x740] sm:$0xff]  ;;  %v3553_v23 = vcombine.high %v646_v57, %v650_v15  ;;  %v3552_v41 = vcombine.low %v646_v57, %v650_v15 }
  0x74   :  { %v778_v28 = vld [vmem:[#allocation7 + $0x760] sm:$0xff]  ;;  %2095 = vmatpush2.bf16.msra.mxu0 %v3568_v62 }
  0x75   :  { %2208 = vmatpush2.bf16.msra.mxu1 %v3696_v14  ;;  %2096 = vmatprep.subr.bf16.mxu0 %v3561_v45  ;;  %v3681_v34 = vcombine.high %v774_v61, %v778_v28  ;;  %v638_v38 = vld [vmem:[#allocation7 + $0x300] sm:$0xff]  ;;  %v3680_v49 = vcombine.low %v774_v61, %v778_v28 }
  0x76   :  { %2209 = vmatprep.subr.bf16.mxu1 %v3689_v16  ;;  %v642_v46 = vld [vmem:[#allocation7 + $0x320] sm:$0xff] }
  0x77   :  { %v766_v55 = vld [vmem:[#allocation7 + $0x700] sm:$0xff]  ;;  %v3545_v60 = vcombine.high %v638_v38, %v642_v46  ;;  %v3544_v48 = vcombine.low %v638_v38, %v642_v46 }
  0x78   :  { %v770_v52 = vld [vmem:[#allocation7 + $0x720] sm:$0xff]  ;;  %2097 = vmatpush2.bf16.msra.mxu0 %v3560_v0 }
  0x79   :  { %2210 = vmatpush2.bf16.msra.mxu1 %v3688_v1  ;;  %2098 = vmatprep.subr.bf16.mxu0 %v3553_v23  ;;  %v3673_v35 = vcombine.high %v766_v55, %v770_v52  ;;  %v630_v20 = vld [vmem:[#allocation7 + $0x2c0] sm:$0xff]  ;;  %v3672_v33 = vcombine.low %v766_v55, %v770_v52 }
  0x7a   :  { %2211 = vmatprep.subr.bf16.mxu1 %v3681_v34  ;;  %v634_v13 = vld [vmem:[#allocation7 + $0x2e0] sm:$0xff] }
  0x7b   :  { %v758_v42 = vld [vmem:[#allocation7 + $0x6c0] sm:$0xff]  ;;  %v3537_v14 = vcombine.high %v630_v20, %v634_v13  ;;  %v3536_v61 = vcombine.low %v630_v20, %v634_v13 }
  0x7c   :  { %v762_v62 = vld [vmem:[#allocation7 + $0x6e0] sm:$0xff]  ;;  %2099 = vmatpush2.bf16.msra.mxu0 %v3552_v41 }
  0x7d   :  { %2212 = vmatpush2.bf16.msra.mxu1 %v3680_v49  ;;  %2100 = vmatprep.subr.bf16.mxu0 %v3545_v60  ;;  %v3665_v45 = vcombine.high %v758_v42, %v762_v62  ;;  %v622_v16 = vld [vmem:[#allocation7 + $0x280] sm:$0xff]  ;;  %v3664_v28 = vcombine.low %v758_v42, %v762_v62 }
  0x7e   :  { %2213 = vmatprep.subr.bf16.mxu1 %v3673_v35  ;;  %v626_v57 = vld [vmem:[#allocation7 + $0x2a0] sm:$0xff] }
  0x7f   :  { %v750_v15 = vld [vmem:[#allocation7 + $0x680] sm:$0xff]  ;;  %v3529_v1 = vcombine.high %v622_v16, %v626_v57  ;;  %v3528_v55 = vcombine.low %v622_v16, %v626_v57  ;;  %v3507_v57 = vcombine.high %v4254_v51, %v4256_v63 }
  0x80   :  { %v754_v0 = vld [vmem:[#allocation7 + $0x6a0] sm:$0xff]  ;;  %2101 = vmatpush2.bf16.msra.mxu0 %v3544_v48 }
  0x81   :  { %2214 = vmatpush2.bf16.msra.mxu1 %v3672_v33  ;;  %2102 = vmatprep.subr.bf16.mxu0 %v3537_v14  ;;  %v3657_v23 = vcombine.high %v750_v15, %v754_v0  ;;  %v614_v34 = vld [vmem:[#allocation7 + $0x240] sm:$0xff]  ;;  %v3656_v52 = vcombine.low %v750_v15, %v754_v0  ;;  %v3635_v15 = vcombine.high %v4258_v18, %v4260_v27  ;;  %v410_v0 = vlaneseq }
  0x82   :  { %2215 = vmatprep.subr.bf16.mxu1 %v3665_v45  ;;  %v618_v38 = vld [vmem:[#allocation7 + $0x260] sm:$0xff] }
  0x83   :  { %v742_v46 = vld [vmem:[#allocation7 + $0x640] sm:$0xff]  ;;  %v3521_v49 = vcombine.high %v614_v34, %v618_v38  ;;  %v3520_v42 = vcombine.low %v614_v34, %v618_v38 }
  0x84   :  { %v746_v41 = vld [vmem:[#allocation7 + $0x660] sm:$0xff]  ;;  %2103 = vmatpush2.bf16.msra.mxu0 %v3536_v61  ;;  %v407_v61 = vld [vmem:[#allocation5] sm:$0xf] }
  0x85   :  { %2216 = vmatpush2.bf16.msra.mxu1 %v3664_v28  ;;  %2104 = vmatprep.subr.bf16.mxu0 %v3529_v1  ;;  %v3649_v60 = vcombine.high %v742_v46, %v746_v41  ;;  %v606_v35 = vld [vmem:[#allocation7 + $0x200] sm:$0xff]  ;;  %v3648_v62 = vcombine.low %v742_v46, %v746_v41  ;;  %v411_v28 = vshrl.u32 %v410_v0, 7  ;;  %v408_v38 = vunpack.c.l.bf16 %v407_v61  ;;  %v4274_v0 = vld [vmem:[#allocation7 + $0x588] sm:$0xff] }
  0x86   :  { %2217 = vmatprep.subr.bf16.mxu1 %v3657_v23  ;;  %v610_v20 = vld [vmem:[#allocation7 + $0x220] sm:$0xff]  ;;  %v4276_v61 = vld [vmem:[#allocation7 + $0x5a8] sm:$0xff] }
  0x87   :  { %v734_v13 = vld [vmem:[#allocation7 + $0x600] sm:$0xff]  ;;  %v3513_v33 = vcombine.high %v606_v35, %v610_v20  ;;  %v3512_v45 = vcombine.low %v606_v35, %v610_v20  ;;  %v412_v41 = vsub.s32 0, %v411_v28  ;;  %v420_v20 = vsub.s32 4, %v411_v28 }
  0x88   :  { %v738_v48 = vld [vmem:[#allocation7 + $0x620] sm:$0xff]  ;;  %2105 = vmatpush2.bf16.msra.mxu0 %v3528_v55  ;;  %v416_v55 = vsub.s32 2, %v411_v28 }
  0x89   :  { %2218 = vmatpush2.bf16.msra.mxu1 %v3656_v52  ;;  %2106 = vmatprep.subr.bf16.mxu0 %v3521_v49  ;;  %v3641_v14 = vcombine.high %v734_v13, %v738_v48  ;;  %v3640_v16 = vcombine.low %v734_v13, %v738_v48  ;;  %v424_v52 = vsub.s32 6, %v411_v28 }
  0x8a   :  { %2219 = vmatprep.subr.bf16.mxu1 %v3649_v60 }
  0x8c   :  { %2107 = vmatpush2.bf16.msra.mxu0 %v3520_v42  ;;  %v417_v42 = vrot.slane %v408_v38, %v416_v55 }
  0x8d   :  { %2220 = vmatpush2.bf16.msra.mxu1 %v3648_v62  ;;  %2108 = vmatprep.subr.bf16.mxu0 %v3513_v33  ;;  %v425_v62 = vrot.slane %v408_v38, %v424_v52  ;;  %v413_v33 = vrot.slane %v408_v38, %v412_v41 }
  0x8e   :  { %2221 = vmatprep.subr.bf16.mxu1 %v3641_v14 }
  0x8f   :  { %v4284_v55 = vrot.slane %v425_v62, %v412_v41  ;;  %v4286_v52 = vrot.slane %v413_v33, %v412_v41  ;;  %v4302_v62 = vld [vmem:[#allocation7 + $0x508] sm:$0xff] }
  0x90   :  { %2109 = vmatpush2.bf16.msra.mxu0 %v3512_v45  ;;  %v4304_v33 = vld [vmem:[#allocation7 + $0x528] sm:$0xff] }
  0x91   :  { %2222 = vmatpush2.bf16.msra.mxu1 %v3640_v16  ;;  %2304 = vmatprep.subr.bf16.mxu0 %v3507_v57  ;;  %v4270_v16 = vld [vmem:[#allocation7 + $0x188] sm:$0xff]  ;;  %4973 = vst [vmem:[#allocation50_spill] sm:$0xff] %v4304_v33 }
  0x92   :  { %2417 = vmatprep.subr.bf16.mxu1 %v3635_v15  ;;  %v4272_v57 = vld [vmem:[#allocation7 + $0x1a8] sm:$0xff]  ;;  %v421_v15 = vrot.slane %v408_v38, %v420_v20 }
  0x93   :  { %v4324_v38 = vld [vmem:[#allocation7 + $0x4e8] sm:$0xff] }
  0x94   :  { %4976 = vst [vmem:[#allocation53_spill] sm:$0xff] %v4324_v38 }
  0xba   :  { %v218_v1 = vpop.xlane.xlu0 %217 }
  0xbb   :  { %v295_v23 = vmul.f32 0.001953125, %v218_v1  ;;  %v228_v34 = vpop.xlane.xlu1 %227  ;;  %v4278_v1 = vld [vmem:[#allocation7 + $0x148] sm:$0xff] }
  0xbc   :  { %v297_v46 = vmul.f32 0.001953125, %v228_v34 }
  0xbd   :  { %v311_v49 = vadd.f32 1e-05, %v295_v23  ;;  %v4280_v23 = vld [vmem:[#allocation7 + $0x168] sm:$0xff] }
  0xbe   :  { %v313_v60 = vadd.f32 1e-05, %v297_v46  ;;  %v223_v35 = vpop.xlane.xlu0 %222  ;;  %v4282_v46 = vrot.slane %v417_v42, %v412_v41  ;;  %v4300_v42 = vld [vmem:[#allocation7 + $0x128] sm:$0xff] }
  0xbf   :  { %3840 = vrsqrt.f32 %v311_v49  ;;  %v296_v13 = vmul.f32 0.001953125, %v223_v35  ;;  %v4290_v49 = vld [vmem:[#allocation7 + $0x548] sm:$0xff]  ;;  %4972 = vst [vmem:[#allocation49_spill] sm:$0xff] %v4300_v42 }
  0xc0   :  { %3842 = vrsqrt.f32 %v313_v60  ;;  %v233_v48 = vpop.xlane.xlu1 %232  ;;  %v4292_v60 = vld [vmem:[#allocation7 + $0x568] sm:$0xff] }
  0xc1   :  { %v312_v14 = vadd.f32 1e-05, %v296_v13  ;;  %v298_v45 = vmul.f32 0.001953125, %v233_v48  ;;  %v4294_v35 = vld [vmem:[#allocation7 + $0x108] sm:$0xff] }
  0xc2   :  { %v4314_v13 = vld [vmem:[#allocation7 + $0xc8] sm:$0xff] }
  0xc3   :  { %3844 = vrsqrt.f32 %v312_v14  ;;  %v314_v28 = vadd.f32 1e-05, %v298_v45  ;;  %v4306_v45 = vrot.slane %v421_v15, %v412_v41  ;;  %4974 = vst [vmem:[#allocation51_spill] sm:$0xff] %v4314_v13  ;;  %v4316_v48 = vld [vmem:[#allocation7 + $0xe8] sm:$0xff] }
  0xc4   :  { %v243_v34 = vpop.xlane.xlu1 %242  ;;  %4975 = vst [vmem:[#allocation52_spill] sm:$0xff] %v4316_v48  ;;  %v4338_v41 = vld [vmem:[#allocation7 + $0x488] sm:$0xff] }
  0xc5   :  { %3846 = vrsqrt.f32 %v314_v28  ;;  %v300_v20 = vmul.f32 0.001953125, %v243_v34  ;;  %v4326_v28 = vld [vmem:[#allocation7 + $0x88] sm:$0xff] }
  0xc6   :  { %v238_v14 = vpop.xlane.xlu0 %237  ;;  %v4340_v15 = vld [vmem:[#allocation7 + $0x4a8] sm:$0xff] }
  0xc7   :  { %v316_v43 = vadd.f32 1e-05, %v300_v20  ;;  %v299_v19 = vmul.f32 0.001953125, %v238_v14  ;;  %4978 = vst [vmem:[#allocation55_spill] sm:$0xff] %v4340_v15  ;;  %v4348_v42 = vld [vmem:[#allocation7 + $0x68] sm:$0xff] }
  0xc8   :  { %4980 = vst [vmem:[#allocation57_spill] sm:$0xff] %v4348_v42 }
  0xc9   :  { %3848 = vrsqrt.f32 %v316_v43  ;;  %v315_v17 = vadd.f32 1e-05, %v299_v19  ;;  %v253_v36 = vpop.xlane.xlu1 %252 }
  0xca   :  { %v302_v20 = vmul.f32 0.001953125, %v253_v36 }
  0xcb   :  { %3850 = vrsqrt.f32 %v315_v17  ;;  %v248_v43 = vpop.xlane.xlu0 %247 }
  0xcc   :  { %v3841_v48 = vpop.eup %3840  ;;  %v318_v13 = vadd.f32 1e-05, %v302_v20  ;;  %v301_v14 = vmul.f32 0.001953125, %v248_v43 }
  0xcd   :  { %v3843_v17 = vpop.eup %3842  ;;  %v344_v38 = vmul.f32 %v3841_v48, %v4000_v4  ;;  %v346_v32 = vmul.f32 %v3841_v48, %v4004_v6  ;;  %v343_v22 = vmul.f32 %v3841_v48, %v3998_v3  ;;  %v345_v34 = vmul.f32 %v3841_v48, %v4002_v5 }
  0xce   :  { %3852 = vrsqrt.f32 %v318_v13  ;;  %v317_v36 = vadd.f32 1e-05, %v301_v14  ;;  %v352_v20 = vmul.f32 %v3843_v17, %v4008_v9  ;;  %v354_v43 = vmul.f32 %v3843_v17, %v4012_v11  ;;  %v263_v15 = vpop.xlane.xlu1 %262 }
  0xcf   :  { %v447_v33 = vmul.f32 %v4282_v46, %v344_v38  ;;  %v449_v19 = vmul.f32 %v4284_v55, %v346_v32  ;;  %v446_v42 = vmul.f32 %v4286_v52, %v343_v22  ;;  %v448_v4 = vmul.f32 %v4306_v45, %v345_v34 }
  0xd0   :  { %v3845_v6 = vpop.eup %3844  ;;  %3854 = vrsqrt.f32 %v317_v36  ;;  %v455_v3 = vmul.f32 %v4282_v46, %v352_v20  ;;  %v457_v5 = vmul.f32 %v4284_v55, %v354_v43  ;;  %v304_v13 = vmul.f32 0.001953125, %v263_v15 }
  0xd1   :  { %v348_v9 = vmul.f32 %v3845_v6, %v4032_v25  ;;  %v350_v11 = vmul.f32 %v3845_v6, %v4036_v29  ;;  %v347_v48 = vmul.f32 %v3845_v6, %v4030_v24  ;;  %v349_v38 = vmul.f32 %v3845_v6, %v4034_v26  ;;  %v258_v32 = vpop.xlane.xlu0 %257 }
  0xd2   :  { %v3847_v14 = vpop.eup %3846  ;;  %v320_v22 = vadd.f32 1e-05, %v304_v13  ;;  %v303_v44 = vmul.f32 0.001953125, %v258_v32  ;;  %v351_v34 = vmul.f32 %v3843_v17, %v4006_v8  ;;  %v353_v36 = vmul.f32 %v3843_v17, %v4010_v10 }
  0xd3   :  { %v451_v20 = vmul.f32 %v4282_v46, %v348_v9  ;;  %v453_v15 = vmul.f32 %v4284_v55, %v350_v11  ;;  %v450_v25 = vmul.f32 %v4286_v52, %v347_v48  ;;  %v452_v29 = vmul.f32 %v4306_v45, %v349_v38 }
  0xd4   :  { %v356_v24 = vmul.f32 %v3847_v14, %v4040_v31  ;;  %v358_v26 = vmul.f32 %v3847_v14, %v4052_v40  ;;  %3856 = vrsqrt.f32 %v320_v22  ;;  %v319_v43 = vadd.f32 1e-05, %v303_v44  ;;  %v273_v6 = vpop.xlane.xlu1 %272 }
  0xd5   :  { %v4390_v13 = vpack.c.bf16 %v451_v20, %v447_v33  ;;  %v4392_v8 = vpack.c.bf16 %v453_v15, %v449_v19  ;;  %v4394_v10 = vpack.c.bf16 %v450_v25, %v446_v42  ;;  %v4396_v17 = vpack.c.bf16 %v452_v29, %v448_v4 }
  0xd6   :  { %v3849_v9 = vpop.eup %3848  ;;  %v459_v11 = vmul.f32 %v4282_v46, %v356_v24  ;;  %v461_v48 = vmul.f32 %v4284_v55, %v358_v26  ;;  %3858 = vrsqrt.f32 %v319_v43  ;;  %v355_v31 = vmul.f32 %v3847_v14, %v4038_v30 }
  0xd7   :  { %v268_v40 = vpop.xlane.xlu0 %267  ;;  %2110 = vmatprep.mubr.bf16.mxu0 %v4390_v13  ;;  %2223 = vmatprep.mubr.bf16.mxu1 %v4392_v8  ;;  %v454_v44 = vmul.f32 %v4286_v52, %v351_v34  ;;  %v357_v42 = vmul.f32 %v3847_v14, %v4050_v39  ;;  %v456_v33 = vmul.f32 %v4306_v45, %v353_v36  ;;  %v306_v19 = vmul.f32 0.001953125, %v273_v6 }
  0xd8   :  { %v3851_v4 = vpop.eup %3850  ;;  %2111 = vmatmul.mubr.bf16.vlgmr.msra.gmra.mxu0 %v4394_v10  ;;  %2224 = vmatmul.mubr.bf16.vlgmr.msra.gmra.mxu1 %v4396_v17  ;;  %v4408_v38 = vpack.c.bf16 %v459_v11, %v455_v3  ;;  %v4410_v30 = vpack.c.bf16 %v461_v48, %v457_v5  ;;  %v458_v32 = vmul.f32 %v4286_v52, %v355_v31  ;;  %v305_v22 = vmul.f32 0.001953125, %v268_v40 }
  0xd9   :  { %v4981_v34 = vcombine.low %v4254_v51, %v4256_v63  ;;  %v4982_v39 = vcombine.low %v4258_v18, %v4260_v27  ;;  %v460_v14 = vmul.f32 %v4306_v45, %v357_v42  ;;  %v322_v36 = vadd.f32 1e-05, %v306_v19  ;;  %v283_v18 = vpop.xlane.xlu1 %282 }
  0xda   :  { %v360_v20 = vmul.f32 %v3851_v4, %v4074_v59  ;;  %v364_v3 = vmul.f32 %v3849_v9, %v4064_v53  ;;  %2120 = vmatprep.mubr.bf16.mxu0 %v4408_v38  ;;  %2233 = vmatprep.mubr.bf16.mxu1 %v4410_v30  ;;  %v4424_v5 = vpack.c.bf16 %v458_v32, %v454_v44  ;;  %v321_v15 = vadd.f32 1e-05, %v305_v22 }
  0xdb   :  { %2305 = vmatpush1.bf16.msra.mxu0 %v4981_v34  ;;  %2418 = vmatpush1.bf16.msra.mxu1 %v4982_v39  ;;  %v362_v51 = vmul.f32 %v3851_v4, %v4084_v12  ;;  %v366_v63 = vmul.f32 %v3849_v9, %v4068_v56  ;;  %v3853_v27 = vpop.eup %3852  ;;  %v4983_v25 = vcombine.high %v4270_v16, %v4272_v57  ;;  %3860 = vrsqrt.f32 %v322_v36 }
  0xdc   :  { %v4984_v53 = vcombine.high %v4274_v0, %v4276_v61  ;;  %v4434_v59 = vpack.c.bf16 %v460_v14, %v456_v33  ;;  %v463_v29 = vmul.f32 %v4282_v46, %v360_v20  ;;  %v467_v24 = vmul.f32 %v4282_v46, %v364_v3  ;;  %v278_v43 = vpop.xlane.xlu0 %277  ;;  %v4459_v33 = vld [vmem:[#allocation7 + $0x448] sm:$0xff]  ;;  %v4991_v3 = vld [vmem:[#allocation14_spill] sm:$0xff] }
  0xdd   :  { %2306 = vmatprep.subr.bf16.mxu0 %v4983_v25  ;;  %v465_v12 = vmul.f32 %v4284_v55, %v362_v51  ;;  %v469_v56 = vmul.f32 %v4284_v55, %v366_v63  ;;  %v359_v26 = vmul.f32 %v3851_v4, %v4072_v58  ;;  %v3855_v6 = vpop.eup %3854  ;;  %v4985_v11 = vcombine.low %v4270_v16, %v4272_v57  ;;  %v4994_v63 = vld [vmem:[#allocation50_spill] sm:$0xff]  ;;  %v4497_v25 = vld [vmem:[#allocation7 + $0x28] sm:$0xff] }
  0xde   :  { %2419 = vmatprep.subr.bf16.mxu1 %v4984_v53  ;;  %v4986_v48 = vcombine.low %v4274_v0, %v4276_v61  ;;  %3862 = vrsqrt.f32 %v321_v15  ;;  %v363_v31 = vmul.f32 %v3849_v9, %v4062_v50  ;;  %v361_v40 = vmul.f32 %v3851_v4, %v4082_v7  ;;  %v4461_v50 = vld [vmem:[#allocation7 + $0x468] sm:$0xff] }
  0xdf   :  { %2307 = vmatpush1.bf16.msra.mxu0 %v4985_v11  ;;  %v308_v44 = vmul.f32 0.001953125, %v283_v18  ;;  %v4987_v42 = vcombine.high %v4278_v1, %v4280_v23  ;;  %v4988_v58 = vcombine.high %v4290_v49, %v4292_v60  ;;  %v4455_v16 = vpack.c.bf16 %v467_v24, %v463_v29  ;;  %v4495_v18 = vld [vmem:[#allocation7 + $0x8] sm:$0xff]  ;;  %v293_v53 = vpop.xlane.xlu1 %292 }
  0xe0   :  { %2420 = vmatpush1.bf16.msra.mxu1 %v4986_v48  ;;  %v462_v57 = vmul.f32 %v4286_v52, %v359_v26  ;;  %v365_v0 = vmul.f32 %v3849_v9, %v4066_v54  ;;  %v307_v61 = vmul.f32 0.001953125, %v278_v43  ;;  %v4463_v7 = vpack.c.bf16 %v469_v56, %v465_v12  ;;  %2121 = vmatmul.mubr.bf16.gmra.mxu0 %v4424_v5  ;;  %v4996_v12 = vld [vmem:[#allocation15_spill] sm:$0xff]  ;;  %v4997_v26 = vld [vmem:[#allocation12_spill] sm:$0xff] }
  0xe1   :  { %2308 = vmatprep.subr.bf16.mxu0 %v4987_v42  ;;  %2421 = vmatprep.subr.bf16.mxu1 %v4988_v58  ;;  %v466_v19 = vmul.f32 %v4286_v52, %v363_v31  ;;  %v464_v4 = vmul.f32 %v4306_v45, %v361_v40  ;;  %v368_v32 = vmul.f32 %v3855_v6, %v4110_v37  ;;  %v324_v54 = vadd.f32 1e-05, %v308_v44  ;;  %v4473_v39 = vpop.eup %3856  ;;  %v4998_v31 = vld [vmem:[#allocation16_spill] sm:$0xff]  ;;  %v4999_v44 = vld [vmem:[#allocation13_spill] sm:$0xff] }
  0xe2   :  { %2234 = vmatmul.mubr.bf16.gmra.mxu1 %v4434_v59  ;;  %v468_v22 = vmul.f32 %v4306_v45, %v365_v0  ;;  %v372_v9 = vmul.f32 %v3853_v27, %v4096_v21  ;;  %v370_v34 = vmul.f32 %v3855_v6, %v4116_v47  ;;  %v4989_v14 = vcombine.low %v4278_v1, %v4280_v23  ;;  %v4992_v47 = vld [vmem:[#allocation49_spill] sm:$0xff]  ;;  %v288_v11 = vpop.xlane.xlu0 %287 }
  0xe3   :  { %v4990_v37 = vcombine.low %v4290_v49, %v4292_v60  ;;  %v4481_v36 = vpack.c.bf16 %v466_v19, %v462_v57  ;;  %v323_v20 = vadd.f32 1e-05, %v307_v61  ;;  %v374_v15 = vmul.f32 %v3853_v27, %v4991_v3  ;;  %v3859_v29 = vpop.eup %3858  ;;  %2130 = vmatprep.mubr.bf16.mxu0 %v4455_v16  ;;  %2243 = vmatprep.mubr.bf16.mxu1 %v4463_v7  ;;  %v4533_v3 = vld [vmem:[#allocation7 + $0x428] sm:$0xff] }
  0xe4   :  { %2309 = vmatpush1.bf16.msra.mxu0 %v4989_v14  ;;  %v3586_v21 = vcombine.low %v4459_v33, %v4461_v50  ;;  %v4993_v51 = vcombine.high %v4294_v35, %v4992_v47  ;;  %v4995_v1 = vcombine.high %v4302_v62, %v4994_v63  ;;  %v471_v23 = vmul.f32 %v4282_v46, %v368_v32 }
  0xe5   :  { %2422 = vmatpush1.bf16.msra.mxu1 %v4990_v37  ;;  %v475_v49 = vmul.f32 %v4282_v46, %v372_v9  ;;  %v473_v60 = vmul.f32 %v4284_v55, %v370_v34  ;;  %v477_v24 = vmul.f32 %v4284_v55, %v374_v15  ;;  %v367_v56 = vmul.f32 %v3855_v6, %v4996_v12  ;;  %v5007_v9 = vld [vmem:[#allocation22_spill] sm:$0xff] }
  0xe6   :  { %2310 = vmatprep.subr.bf16.mxu0 %v4993_v51  ;;  %2423 = vmatprep.subr.bf16.mxu1 %v4995_v1  ;;  %v371_v43 = vmul.f32 %v3853_v27, %v4997_v26  ;;  %v4504_v48 = vpack.c.bf16 %v468_v22, %v464_v4  ;;  %3864 = vrsqrt.f32 %v324_v54  ;;  %v369_v40 = vmul.f32 %v3855_v6, %v4998_v31  ;;  %v5002_v4 = vld [vmem:[#allocation51_spill] sm:$0xff]  ;;  %v5003_v6 = vld [vmem:[#allocation52_spill] sm:$0xff]  ;;  %v5008_v15 = vld [vmem:[#allocation18_spill] sm:$0xff] }
  0xe7   :  { %v373_v42 = vmul.f32 %v3853_v27, %v4999_v44  ;;  %v5000_v58 = vcombine.low %v4294_v35, %v4992_v47  ;;  %v5001_v57 = vcombine.low %v4302_v62, %v4994_v63  ;;  %3866 = vrsqrt.f32 %v323_v20  ;;  %v5005_v27 = vld [vmem:[#allocation53_spill] sm:$0xff]  ;;  %v5009_v51 = vld [vmem:[#allocation24_spill] sm:$0xff] }
  0xe8   :  { %v3587_v0 = vcombine.high %v4459_v33, %v4461_v50  ;;  %v3450_v61 = vcombine.low %v4495_v18, %v4497_v25  ;;  %v310_v19 = vmul.f32 0.001953125, %v293_v53  ;;  %v5004_v32 = vcombine.high %v5002_v4, %v5003_v6  ;;  %v4531_v20 = vld [vmem:[#allocation7 + $0x408] sm:$0xff]  ;;  %2131 = vmatmul.mubr.bf16.gmra.mxu0 %v4481_v36  ;;  %v4544_v53 = vpop.eup %3860 }
  0xe9   :  { %2311 = vmatpush1.bf16.msra.mxu0 %v5000_v58  ;;  %2424 = vmatpush1.bf16.msra.mxu1 %v5001_v57  ;;  %v5006_v35 = vcombine.high %v4318_v2, %v5005_v27  ;;  %v4524_v22 = vpack.c.bf16 %v475_v49, %v471_v23  ;;  %v4526_v62 = vpack.c.bf16 %v477_v24, %v473_v60  ;;  %v309_v54 = vmul.f32 0.001953125, %v288_v11  ;;  %v5010_v49 = vld [vmem:[#allocation20_spill] sm:$0xff]  ;;  %v4645_v50 = vld [vmem:[#allocation7 + $0x348] sm:$0xff] }
  0xea   :  { %2312 = vmatprep.subr.bf16.mxu0 %v5004_v32  ;;  %v376_v34 = vmul.f32 %v3859_v29, %v5007_v9  ;;  %v470_v14 = vmul.f32 %v4286_v52, %v367_v56  ;;  %v474_v37 = vmul.f32 %v4286_v52, %v371_v43  ;;  %v380_v47 = vmul.f32 %v4473_v39, %v5008_v15  ;;  %v5017_v32 = vld [vmem:[#allocation21_spill] sm:$0xff] }
  0xeb   :  { %2425 = vmatprep.subr.bf16.mxu1 %v5006_v35  ;;  %v378_v63 = vmul.f32 %v3859_v29, %v5009_v51  ;;  %2244 = vmatmul.mubr.bf16.gmra.mxu1 %v4504_v48  ;;  %v472_v1 = vmul.f32 %v4306_v45, %v369_v40  ;;  %v476_v23 = vmul.f32 %v4306_v45, %v373_v42  ;;  %v326_v26 = vadd.f32 1e-05, %v310_v19  ;;  %v4556_v31 = vpop.eup %3862  ;;  %v5013_v40 = vld [vmem:[#allocation54_spill] sm:$0xff]  ;;  %v5015_v42 = vld [vmem:[#allocation55_spill] sm:$0xff] }
  0xec   :  { %v382_v60 = vmul.f32 %v4473_v39, %v5010_v49  ;;  %v5011_v24 = vcombine.low %v5002_v4, %v5003_v6  ;;  %v5012_v12 = vcombine.low %v4318_v2, %v5005_v27  ;;  %v3451_v56 = vcombine.high %v4495_v18, %v4497_v25  ;;  %v4568_v4 = vld [vmem:[#allocation7 + $0x3c8] sm:$0xff]  ;;  %2140 = vmatprep.mubr.bf16.mxu0 %v4524_v22  ;;  %v5019_v51 = vld [vmem:[#allocation23_spill] sm:$0xff]  ;;  %v5035_v25 = vld [vmem:[#allocation38_spill] sm:$0xff] }
  0xed   :  { %v479_v43 = vmul.f32 %v4282_v46, %v376_v34  ;;  %v483_v11 = vmul.f32 %v4282_v46, %v380_v47  ;;  %v5014_v44 = vcombine.high %v4326_v28, %v5013_v40  ;;  %v5016_v58 = vcombine.high %v4338_v41, %v5015_v42  ;;  %v4570_v6 = vld [vmem:[#allocation7 + $0x3e8] sm:$0xff]  ;;  %2253 = vmatprep.mubr.bf16.mxu1 %v4526_v62 }
  0xee   :  { %2313 = vmatpush1.bf16.msra.mxu0 %v5011_v24  ;;  %2426 = vmatpush1.bf16.msra.mxu1 %v5012_v12  ;;  %v3578_v2 = vcombine.low %v4531_v20, %v4533_v3  ;;  %v3579_v57 = vcombine.high %v4531_v20, %v4533_v3  ;;  %v325_v19 = vadd.f32 1e-05, %v309_v54  ;;  %v375_v27 = vmul.f32 %v3859_v29, %v5017_v32  ;;  %v5018_v34 = vld [vmem:[#allocation17_spill] sm:$0xff]  ;;  %v5020_v24 = vld [vmem:[#allocation19_spill] sm:$0xff]  ;;  %v5036_v20 = vld [vmem:[#allocation34_spill] sm:$0xff] }
  0xef   :  { %2314 = vmatprep.subr.bf16.mxu0 %v5014_v44  ;;  %2427 = vmatprep.subr.bf16.mxu1 %v5016_v58  ;;  %v481_v35 = vmul.f32 %v4284_v55, %v378_v63  ;;  %v485_v9 = vmul.f32 %v4284_v55, %v382_v60  ;;  %v379_v15 = vmul.f32 %v4473_v39, %v5018_v34  ;;  %3868 = vrsqrt.f32 %v326_v26  ;;  %v4606_v26 = vld [vmem:[#allocation7 + $0x388] sm:$0xff] }
  0xf0   :  { %v4579_v47 = vpack.c.bf16 %v474_v37, %v470_v14  ;;  %v4581_v54 = vpack.c.bf16 %v476_v23, %v472_v1  ;;  %v377_v49 = vmul.f32 %v3859_v29, %v5019_v51  ;;  %v381_v12 = vmul.f32 %v4473_v39, %v5020_v24  ;;  %v4598_v37 = vld [vmem:[#allocation7 + $0x7c8] sm:$0xff]  ;;  %v5023_v1 = vld [vmem:[#allocation56_spill] sm:$0xff] }
  0xf1   :  { %v5021_v44 = vcombine.low %v4326_v28, %v5013_v40  ;;  %v5022_v63 = vcombine.low %v4338_v41, %v5015_v42  ;;  %v4592_v60 = vpack.c.bf16 %v483_v11, %v479_v43  ;;  %v3570_v14 = vcombine.low %v4568_v4, %v4570_v6  ;;  %v4600_v39 = vld [vmem:[#allocation7 + $0x7e8] sm:$0xff]  ;;  %v5026_v11 = vld [vmem:[#allocation30_spill] sm:$0xff]  ;;  %v5028_v51 = vld [vmem:[#allocation32_spill] sm:$0xff] }
  0xf2   :  { %v3571_v29 = vcombine.high %v4568_v4, %v4570_v6  ;;  %v5024_v28 = vld [vmem:[#allocation57_spill] sm:$0xff]  ;;  %3870 = vrsqrt.f32 %v325_v19  ;;  %v478_v41 = vmul.f32 %v4286_v52, %v375_v27  ;;  %v384_v40 = vmul.f32 %v4556_v31, %v5026_v11  ;;  %v5027_v42 = vld [vmem:[#allocation26_spill] sm:$0xff]  ;;  %v5029_v19 = vld [vmem:[#allocation28_spill] sm:$0xff]  ;;  %2141 = vmatmul.mubr.bf16.gmra.mxu0 %v4579_v47 }
  0xf3   :  { %2315 = vmatpush1.bf16.msra.mxu0 %v5021_v44  ;;  %2428 = vmatpush1.bf16.msra.mxu1 %v5022_v63  ;;  %v5025_v23 = vcombine.high %v5023_v1, %v5024_v28  ;;  %v4608_v43 = vld [vmem:[#allocation7 + $0x3a8] sm:$0xff]  ;;  %v388_v58 = vmul.f32 %v4544_v53, %v5027_v42  ;;  %v4614_v32 = vpack.c.bf16 %v485_v9, %v481_v35  ;;  %v4627_v9 = vpop.eup %3864 }
  0xf4   :  { %2429 = vmatprep.subr.bf16.mxu1 %v3587_v0  ;;  %v482_v34 = vmul.f32 %v4286_v52, %v379_v15  ;;  %v386_v0 = vmul.f32 %v4556_v31, %v5028_v51  ;;  %v390_v27 = vmul.f32 %v4544_v53, %v5029_v19  ;;  %2254 = vmatmul.mubr.bf16.gmra.mxu1 %v4581_v54  ;;  %v3867_v11 = vpop.eup %3866  ;;  %v5033_v19 = vld [vmem:[#allocation31_spill] sm:$0xff]  ;;  %v5040_v6 = vld [vmem:[#allocation33_spill] sm:$0xff] }
  0xf5   :  { %2316 = vmatprep.subr.bf16.mxu0 %v5025_v23  ;;  %v3698_v24 = vcombine.low %v4598_v37, %v4600_v39  ;;  %v480_v44 = vmul.f32 %v4306_v45, %v377_v49  ;;  %v484_v35 = vmul.f32 %v4306_v45, %v381_v12  ;;  %v5030_v15 = vcombine.low %v5023_v1, %v5024_v28  ;;  %v4641_v12 = vld [vmem:[#allocation7 + $0x788] sm:$0xff]  ;;  %v5034_v23 = vld [vmem:[#allocation27_spill] sm:$0xff] }
  0xf6   :  { %v3699_v63 = vcombine.high %v4598_v37, %v4600_v39  ;;  %v3563_v49 = vcombine.high %v4606_v26, %v4608_v43  ;;  %v787_v1 = vld [vmem:[#allocation7 + $0x7a8] sm:$0xff]  ;;  %v487_v28 = vmul.f32 %v4282_v46, %v384_v40  ;;  %v491_v33 = vmul.f32 %v4282_v46, %v388_v58  ;;  %2150 = vmatprep.mubr.bf16.mxu0 %v4592_v60 }
  0xf7   :  { %2317 = vmatpush1.bf16.msra.mxu0 %v5030_v15  ;;  %2430 = vmatpush1.bf16.msra.mxu1 %v3586_v21  ;;  %v4647_v21 = vld [vmem:[#allocation7 + $0x368] sm:$0xff]  ;;  %v4653_v42 = vpack.c.bf16 %v482_v34, %v478_v41  ;;  %v4657_v40 = vpack.c.bf16 %v484_v35, %v480_v44  ;;  %v385_v15 = vmul.f32 %v4556_v31, %v5033_v19 }
  0xf8   :  { %2318 = vmatprep.subr.bf16.mxu0 %v3451_v56  ;;  %2431 = vmatprep.subr.bf16.mxu1 %v3579_v57  ;;  %v5031_v37 = vld [vmem:[#allocation29_spill] sm:$0xff]  ;;  %v489_v56 = vmul.f32 %v4284_v55, %v386_v0  ;;  %v493_v57 = vmul.f32 %v4284_v55, %v390_v27  ;;  %v3690_v41 = vcombine.low %v4641_v12, %v787_v1  ;;  %v5047_v0 = vld [vmem:[#allocation44_spill] sm:$0xff] }
  0xf9   :  { %v383_v39 = vmul.f32 %v4556_v31, %v5031_v37  ;;  %2263 = vmatprep.mubr.bf16.mxu1 %v4614_v32  ;;  %v5032_v58 = vld [vmem:[#allocation25_spill] sm:$0xff]  ;;  %v389_v37 = vmul.f32 %v4544_v53, %v5034_v23  ;;  %v3691_v34 = vcombine.high %v4641_v12, %v787_v1  ;;  %v4675_v31 = vpack.c.bf16 %v491_v33, %v487_v28  ;;  %v5038_v23 = vld [vmem:[#allocation36_spill] sm:$0xff] }
  0xfa   :  { %v387_v51 = vmul.f32 %v4544_v53, %v5032_v58  ;;  %v775_v53 = vld [vmem:[#allocation7 + $0x748] sm:$0xff]  ;;  %v4679_v44 = vpack.c.bf16 %v493_v57, %v489_v56  ;;  %v396_v3 = vmul.f32 %v4627_v9, %v5036_v20  ;;  %v398_v12 = vmul.f32 %v4627_v9, %v5038_v23  ;;  %2151 = vmatmul.mubr.bf16.gmra.mxu0 %v4653_v42 }
  0xfb   :  { %2319 = vmatpush1.bf16.msra.mxu0 %v3450_v61  ;;  %2432 = vmatpush1.bf16.msra.mxu1 %v3578_v2  ;;  %v779_v27 = vld [vmem:[#allocation7 + $0x768] sm:$0xff]  ;;  %v486_v18 = vmul.f32 %v4286_v52, %v383_v39  ;;  %v392_v61 = vmul.f32 %v3867_v11, %v5035_v25  ;;  %v5037_v2 = vld [vmem:[#allocation40_spill] sm:$0xff]  ;;  %v492_v1 = vmul.f32 %v4306_v45, %v389_v37 }
  0xfc   :  { %2320 = vmatprep.subr.bf16.mxu0 %v3571_v29  ;;  %2433 = vmatprep.subr.bf16.mxu1 %v3699_v63  ;;  %v394_v35 = vmul.f32 %v3867_v11, %v5037_v2  ;;  %v490_v29 = vmul.f32 %v4286_v52, %v387_v51  ;;  %v488_v63 = vmul.f32 %v4306_v45, %v385_v15  ;;  %v4696_v39 = vld [vmem:[#allocation7 + $0x308] sm:$0xff]  ;;  %v4699_v58 = vpop.eup %3868  ;;  %v5042_v2 = vld [vmem:[#allocation35_spill] sm:$0xff] }
  0xfd   :  { %2264 = vmatmul.mubr.bf16.gmra.mxu1 %v4657_v40  ;;  %v3555_v28 = vcombine.high %v4645_v50, %v4647_v21  ;;  %v3682_v33 = vcombine.low %v775_v53, %v779_v27  ;;  %v5039_v56 = vld [vmem:[#allocation37_spill] sm:$0xff]  ;;  %v3683_v51 = vcombine.high %v775_v53, %v779_v27  ;;  %v495_v4 = vmul.f32 %v4282_v46, %v392_v61  ;;  %v5041_v27 = vld [vmem:[#allocation39_spill] sm:$0xff] }
  0xfe   :  { %v391_v57 = vmul.f32 %v3867_v11, %v5039_v56  ;;  %v643_v19 = vld [vmem:[#allocation7 + $0x328] sm:$0xff]  ;;  %2160 = vmatprep.mubr.bf16.mxu0 %v4675_v31  ;;  %2273 = vmatprep.mubr.bf16.mxu1 %v4679_v44  ;;  %v499_v25 = vmul.f32 %v4282_v46, %v396_v3  ;;  %v497_v20 = vmul.f32 %v4284_v55, %v394_v35 }
  0xff   :  { %2321 = vmatpush2.bf16.msra.mxu0 %v3570_v14  ;;  %2434 = vmatpush2.bf16.msra.mxu1 %v3698_v24  ;;  %v767_v15 = vld [vmem:[#allocation7 + $0x708] sm:$0xff]  ;;  %v395_v14 = vmul.f32 %v4627_v9, %v5040_v6  ;;  %v3871_v24 = vpop.eup %3870  ;;  %v4711_v53 = vpack.c.bf16 %v492_v1, %v488_v63  ;;  %v393_v61 = vmul.f32 %v3867_v11, %v5041_v27  ;;  %v5044_v1 = vld [vmem:[#allocation46_spill] sm:$0xff] }
 0x100   :  { %2322 = vmatprep.subr.bf16.mxu0 %v3563_v49  ;;  %2435 = vmatprep.subr.bf16.mxu1 %v3691_v34  ;;  %v771_v37 = vld [vmem:[#allocation7 + $0x728] sm:$0xff]  ;;  %v501_v49 = vmul.f32 %v4284_v55, %v398_v12  ;;  %v4709_v34 = vpack.c.bf16 %v490_v29, %v486_v18  ;;  %v397_v23 = vmul.f32 %v4627_v9, %v5042_v2  ;;  %v5045_v27 = vld [vmem:[#allocation42_spill] sm:$0xff]  ;;  %v5046_v2 = vld [vmem:[#allocation48_spill] sm:$0xff] }
 0x101   :  { %v5043_v56 = vcombine.low %v4606_v26, %v4608_v43  ;;  %v3547_v3 = vcombine.high %v4696_v39, %v643_v19  ;;  %v3675_v6 = vcombine.high %v767_v15, %v771_v37  ;;  %v631_v35 = vld [vmem:[#allocation7 + $0x2c8] sm:$0xff]  ;;  %v494_v12 = vmul.f32 %v4286_v52, %v391_v57 }
 0x102   :  { %v635_v18 = vld [vmem:[#allocation7 + $0x2e8] sm:$0xff]  ;;  %v498_v11 = vmul.f32 %v4286_v52, %v395_v14  ;;  %v400_v9 = vmul.f32 %v3871_v24, %v5044_v1  ;;  %v404_v26 = vmul.f32 %v4699_v58, %v5045_v27  ;;  %v4725_v43 = vpack.c.bf16 %v499_v25, %v495_v4  ;;  %2161 = vmatmul.mubr.bf16.gmra.mxu0 %v4709_v34 }
 0x103   :  { %2323 = vmatpush2.bf16.msra.mxu0 %v5043_v56  ;;  %2436 = vmatpush2.bf16.msra.mxu1 %v3690_v41  ;;  %v759_v29 = vld [vmem:[#allocation7 + $0x6c8] sm:$0xff]  ;;  %v4727_v41 = vpack.c.bf16 %v501_v49, %v497_v20  ;;  %v402_v56 = vmul.f32 %v3871_v24, %v5046_v2  ;;  %v3546_v57 = vcombine.low %v4696_v39, %v643_v19 }
 0x104   :  { %2324 = vmatprep.subr.bf16.mxu0 %v3555_v28  ;;  %2437 = vmatprep.subr.bf16.mxu1 %v3683_v51  ;;  %v763_v63 = vld [vmem:[#allocation7 + $0x6e8] sm:$0xff]  ;;  %v406_v28 = vmul.f32 %v4699_v58, %v5047_v0  ;;  %v496_v51 = vmul.f32 %v4306_v45, %v393_v61  ;;  %v500_v14 = vmul.f32 %v4306_v45, %v397_v23 }
 0x105   :  { %2274 = vmatmul.mubr.bf16.gmra.mxu1 %v4711_v53  ;;  %v5048_v4 = vcombine.low %v4645_v50, %v4647_v21  ;;  %v3674_v25 = vcombine.low %v767_v15, %v771_v37  ;;  %v3539_v20 = vcombine.high %v631_v35, %v635_v18  ;;  %v3667_v49 = vcombine.high %v759_v29, %v763_v63  ;;  %v623_v1 = vld [vmem:[#allocation7 + $0x288] sm:$0xff] }
 0x106   :  { %v4740_v0 = vpack.c.bf16 %v498_v11, %v494_v12  ;;  %v503_v27 = vmul.f32 %v4282_v46, %v400_v9  ;;  %v507_v39 = vmul.f32 %v4282_v46, %v404_v26  ;;  %2170 = vmatprep.mubr.bf16.mxu0 %v4725_v43  ;;  %2283 = vmatprep.mubr.bf16.mxu1 %v4727_v41  ;;  %v627_v19 = vld [vmem:[#allocation7 + $0x2a8] sm:$0xff]  ;;  %v5051_v12 = vld [vmem:[#allocation47_spill] sm:$0xff] }
 0x107   :  { %2325 = vmatpush2.bf16.msra.mxu0 %v5048_v4  ;;  %2438 = vmatpush2.bf16.msra.mxu1 %v3682_v33  ;;  %v751_v50 = vld [vmem:[#allocation7 + $0x688] sm:$0xff]  ;;  %v505_v33 = vmul.f32 %v4284_v55, %v402_v56  ;;  %v509_v15 = vmul.f32 %v4284_v55, %v406_v28  ;;  %v4749_v23 = vpack.c.bf16 %v500_v14, %v496_v51  ;;  %v5052_v11 = vld [vmem:[#allocation43_spill] sm:$0xff] }
 0x108   :  { %2326 = vmatprep.subr.bf16.mxu0 %v3547_v3  ;;  %2439 = vmatprep.subr.bf16.mxu1 %v3675_v6  ;;  %v755_v21 = vld [vmem:[#allocation7 + $0x6a8] sm:$0xff]  ;;  %v401_v46 = vmul.f32 %v3871_v24, %v5051_v12  ;;  %v405_v9 = vmul.f32 %v4699_v58, %v5052_v11  ;;  %v3538_v26 = vcombine.low %v631_v35, %v635_v18 }
 0x109   :  { %v5049_v37 = vld [vmem:[#allocation45_spill] sm:$0xff]  ;;  %v3666_v2 = vcombine.low %v759_v29, %v763_v63  ;;  %v3531_v56 = vcombine.high %v623_v1, %v627_v19  ;;  %v3659_v55 = vcombine.high %v751_v50, %v755_v21  ;;  %v4756_v4 = vpack.c.bf16 %v507_v39, %v503_v27 }
 0x10a   :  { %v399_v61 = vmul.f32 %v3871_v24, %v5049_v37  ;;  %v5050_v3 = vld [vmem:[#allocation41_spill] sm:$0xff]  ;;  %v4758_v51 = vpack.c.bf16 %v509_v15, %v505_v33  ;;  %2171 = vmatmul.mubr.bf16.gmra.mxu0 %v4740_v0  ;;  %v504_v35 = vmul.f32 %v4306_v45, %v401_v46  ;;  %v508_v18 = vmul.f32 %v4306_v45, %v405_v9  ;;  %v604_v15 = vld [vmem:[#allocation7 + $0x1f0] sm:$0xff] }
 0x10b   :  { %v403_v6 = vmul.f32 %v4699_v58, %v5050_v3  ;;  %2327 = vmatpush2.bf16.msra.mxu0 %v3546_v57  ;;  %2440 = vmatpush2.bf16.msra.mxu1 %v3674_v25  ;;  %v615_v28 = vld [vmem:[#allocation7 + $0x248] sm:$0xff]  ;;  %v3530_v29 = vcombine.low %v623_v1, %v627_v19  ;;  %v3658_v63 = vcombine.low %v751_v50, %v755_v21  ;;  %v600_v50 = vld [vmem:[#allocation7 + $0x1d0] sm:$0xff] }
 0x10c   :  { %2328 = vmatprep.subr.bf16.mxu0 %v3539_v20  ;;  %2441 = vmatprep.subr.bf16.mxu1 %v3667_v49  ;;  %v619_v14 = vld [vmem:[#allocation7 + $0x268] sm:$0xff]  ;;  %v502_v24 = vmul.f32 %v4286_v52, %v399_v61  ;;  %v728_v61 = vld [vmem:[#allocation7 + $0x5d0] sm:$0xff]  ;;  %v3509_v11 = vcombine.high %v600_v50, %v604_v15 }
 0x10d   :  { %v743_v37 = vld [vmem:[#allocation7 + $0x648] sm:$0xff]  ;;  %2284 = vmatmul.mubr.bf16.gmra.mxu1 %v4749_v23  ;;  %v506_v58 = vmul.f32 %v4286_v52, %v403_v6  ;;  %v3523_v57 = vcombine.high %v615_v28, %v619_v14  ;;  %2180 = vmatprep.mubr.bf16.mxu0 %v4756_v4  ;;  %v4770_v52 = vpack.c.bf16 %v508_v18, %v504_v35  ;;  %v732_v6 = vld [vmem:[#allocation7 + $0x5f0] sm:$0xff] }
 0x10e   :  { %v747_v3 = vld [vmem:[#allocation7 + $0x668] sm:$0xff]  ;;  %2293 = vmatprep.mubr.bf16.mxu1 %v4758_v51  ;;  %v3522_v1 = vcombine.low %v615_v28, %v619_v14  ;;  %v3637_v9 = vcombine.high %v728_v61, %v732_v6  ;;  %v3508_v28 = vcombine.low %v600_v50, %v604_v15  ;;  %v3636_v14 = vcombine.low %v728_v61, %v732_v6  ;;  %v712_v35 = vld [vmem:[#allocation7 + $0x550] sm:$0xff] }
 0x10f   :  { %2329 = vmatpush2.bf16.msra.mxu0 %v3538_v26  ;;  %2442 = vmatpush2.bf16.msra.mxu1 %v3666_v2  ;;  %v3651_v25 = vcombine.high %v743_v37, %v747_v3  ;;  %v607_v20 = vld [vmem:[#allocation7 + $0x208] sm:$0xff]  ;;  %v4768_v49 = vpack.c.bf16 %v506_v58, %v502_v24  ;;  %v3650_v19 = vcombine.low %v743_v37, %v747_v3  ;;  %v592_v26 = vld [vmem:[#allocation7 + $0x190] sm:$0xff] }
 0x110   :  { %2330 = vmatprep.subr.bf16.mxu0 %v3531_v56  ;;  %2443 = vmatprep.subr.bf16.mxu1 %v3659_v55  ;;  %v611_v27 = vld [vmem:[#allocation7 + $0x228] sm:$0xff]  ;;  %v596_v2 = vld [vmem:[#allocation7 + $0x1b0] sm:$0xff] }
 0x111   :  { %v735_v39 = vld [vmem:[#allocation7 + $0x608] sm:$0xff]  ;;  %v3515_v21 = vcombine.high %v607_v20, %v611_v27  ;;  %v3514_v12 = vcombine.low %v607_v20, %v611_v27  ;;  %v720_v56 = vld [vmem:[#allocation7 + $0x590] sm:$0xff]  ;;  %v3501_v3 = vcombine.high %v592_v26, %v596_v2 }
 0x112   :  { %v739_v45 = vld [vmem:[#allocation7 + $0x628] sm:$0xff]  ;;  %2181 = vmatmul.mubr.bf16.gmra.mxu0 %v4768_v49  ;;  %v724_v55 = vld [vmem:[#allocation7 + $0x5b0] sm:$0xff] }
 0x113   :  { %2331 = vmatpush2.bf16.msra.mxu0 %v3530_v29  ;;  %2444 = vmatpush2.bf16.msra.mxu1 %v3658_v63  ;;  %v3643_v33 = vcombine.high %v735_v39, %v739_v45  ;;  %v3642_v46 = vcombine.low %v735_v39, %v739_v45  ;;  %v584_v37 = vld [vmem:[#allocation7 + $0x150] sm:$0xff]  ;;  %v3629_v24 = vcombine.high %v720_v56, %v724_v55 }
 0x114   :  { %2332 = vmatprep.subr.bf16.mxu0 %v3523_v57  ;;  %2445 = vmatprep.subr.bf16.mxu1 %v3651_v25  ;;  %v588_v58 = vld [vmem:[#allocation7 + $0x170] sm:$0xff]  ;;  %v3500_v29 = vcombine.low %v592_v26, %v596_v2  ;;  %v3628_v63 = vcombine.low %v720_v56, %v724_v55 }
 0x115   :  { %2294 = vmatmul.mubr.bf16.gmra.mxu1 %v4770_v52  ;;  %2336 = vmatprep.mubr.bf16.mxu0 %v4390_v13  ;;  %v716_v18 = vld [vmem:[#allocation7 + $0x570] sm:$0xff]  ;;  %v3493_v57 = vcombine.high %v584_v37, %v588_v58 }
 0x116   :  { %2449 = vmatprep.mubr.bf16.mxu1 %v4392_v8  ;;  %v3621_v25 = vcombine.high %v712_v35, %v716_v18  ;;  %v576_v20 = vld [vmem:[#allocation7 + $0x110] sm:$0xff] }
 0x117   :  { %2333 = vmatpush2.bf16.msra.mxu0 %v3522_v1  ;;  %2446 = vmatpush2.bf16.msra.mxu1 %v3650_v19  ;;  %v580_v27 = vld [vmem:[#allocation7 + $0x130] sm:$0xff]  ;;  %v3492_v1 = vcombine.low %v584_v37, %v588_v58  ;;  %v3620_v19 = vcombine.low %v712_v35, %v716_v18 }
 0x118   :  { %2334 = vmatprep.subr.bf16.mxu0 %v3515_v21  ;;  %2447 = vmatprep.subr.bf16.mxu1 %v3643_v33  ;;  %v704_v39 = vld [vmem:[#allocation7 + $0x510] sm:$0xff]  ;;  %v3485_v21 = vcombine.high %v576_v20, %v580_v27 }
 0x119   :  { %v708_v45 = vld [vmem:[#allocation7 + $0x530] sm:$0xff] }
 0x11a   :  { %v568_v50 = vld [vmem:[#allocation7 + $0xd0] sm:$0xff]  ;;  %v3613_v33 = vcombine.high %v704_v39, %v708_v45 }
 0x11b   :  { %2335 = vmatpush2.bf16.msra.mxu0 %v3514_v12  ;;  %2448 = vmatpush2.bf16.msra.mxu1 %v3642_v46  ;;  %v572_v15 = vld [vmem:[#allocation7 + $0xf0] sm:$0xff]  ;;  %v3484_v12 = vcombine.low %v576_v20, %v580_v27  ;;  %v3612_v46 = vcombine.low %v704_v39, %v708_v45 }
 0x11c   :  { %2530 = vmatprep.subr.bf16.mxu0 %v3509_v11  ;;  %2643 = vmatprep.subr.bf16.mxu1 %v3637_v9  ;;  %v696_v61 = vld [vmem:[#allocation7 + $0x4d0] sm:$0xff]  ;;  %v3477_v11 = vcombine.high %v568_v50, %v572_v15 }
 0x11d   :  { %v700_v6 = vld [vmem:[#allocation7 + $0x4f0] sm:$0xff] }
 0x11e   :  { %2337 = vmatmul.mubr.bf16.vlgmr.msra.gmra.mxu0 %v4394_v10  ;;  %2450 = vmatmul.mubr.bf16.vlgmr.msra.gmra.mxu1 %v4396_v17  ;;  %v3605_v9 = vcombine.high %v696_v61, %v700_v6  ;;  %v560_v26 = vld [vmem:[#allocation7 + $0x90] sm:$0xff] }
 0x11f   :  { %2531 = vmatpush1.bf16.msra.mxu0 %v3508_v28  ;;  %2644 = vmatpush1.bf16.msra.mxu1 %v3636_v14  ;;  %v564_v2 = vld [vmem:[#allocation7 + $0xb0] sm:$0xff]  ;;  %v3476_v28 = vcombine.low %v568_v50, %v572_v15  ;;  %v3604_v14 = vcombine.low %v696_v61, %v700_v6 }
 0x120   :  { %2346 = vmatprep.mubr.bf16.mxu0 %v4408_v38  ;;  %2459 = vmatprep.mubr.bf16.mxu1 %v4410_v30  ;;  %v688_v56 = vld [vmem:[#allocation7 + $0x490] sm:$0xff] }
 0x121   :  { %2532 = vmatprep.subr.bf16.mxu0 %v3501_v3  ;;  %2645 = vmatprep.subr.bf16.mxu1 %v3629_v24  ;;  %v692_v55 = vld [vmem:[#allocation7 + $0x4b0] sm:$0xff]  ;;  %v3469_v3 = vcombine.high %v560_v26, %v564_v2 }
 0x122   :  { %v552_v37 = vld [vmem:[#allocation7 + $0x50] sm:$0xff]  ;;  %v3597_v24 = vcombine.high %v688_v56, %v692_v55 }
 0x123   :  { %2533 = vmatpush1.bf16.msra.mxu0 %v3500_v29  ;;  %2646 = vmatpush1.bf16.msra.mxu1 %v3628_v63  ;;  %v556_v58 = vld [vmem:[#allocation7 + $0x70] sm:$0xff]  ;;  %v3468_v29 = vcombine.low %v560_v26, %v564_v2  ;;  %v3596_v63 = vcombine.low %v688_v56, %v692_v55 }
 0x124   :  { %2534 = vmatprep.subr.bf16.mxu0 %v3493_v57  ;;  %2647 = vmatprep.subr.bf16.mxu1 %v3621_v25  ;;  %v680_v35 = vld [vmem:[#allocation7 + $0x450] sm:$0xff]  ;;  %v3461_v57 = vcombine.high %v552_v37, %v556_v58 }
 0x125   :  { %v684_v18 = vld [vmem:[#allocation7 + $0x470] sm:$0xff] }
 0x126   :  { %2347 = vmatmul.mubr.bf16.gmra.mxu0 %v4424_v5  ;;  %2460 = vmatmul.mubr.bf16.gmra.mxu1 %v4434_v59  ;;  %v3589_v25 = vcombine.high %v680_v35, %v684_v18  ;;  %v544_v20 = vld [vmem:[#allocation7 + $0x10] sm:$0xff] }
 0x127   :  { %2535 = vmatpush1.bf16.msra.mxu0 %v3492_v1  ;;  %2648 = vmatpush1.bf16.msra.mxu1 %v3620_v19  ;;  %v548_v27 = vld [vmem:[#allocation7 + $0x30] sm:$0xff]  ;;  %v3460_v1 = vcombine.low %v552_v37, %v556_v58  ;;  %v3588_v19 = vcombine.low %v680_v35, %v684_v18 }
 0x128   :  { %2356 = vmatprep.mubr.bf16.mxu0 %v4455_v16  ;;  %2469 = vmatprep.mubr.bf16.mxu1 %v4463_v7  ;;  %v672_v39 = vld [vmem:[#allocation7 + $0x410] sm:$0xff] }
 0x129   :  { %2536 = vmatprep.subr.bf16.mxu0 %v3485_v21  ;;  %2649 = vmatprep.subr.bf16.mxu1 %v3613_v33  ;;  %v676_v45 = vld [vmem:[#allocation7 + $0x430] sm:$0xff]  ;;  %v3453_v21 = vcombine.high %v544_v20, %v548_v27 }
 0x12a   :  { %v664_v50 = vld [vmem:[#allocation7 + $0x3d0] sm:$0xff]  ;;  %v3581_v33 = vcombine.high %v672_v39, %v676_v45 }
 0x12b   :  { %2537 = vmatpush1.bf16.msra.mxu0 %v3484_v12  ;;  %2650 = vmatpush1.bf16.msra.mxu1 %v3612_v46  ;;  %v668_v15 = vld [vmem:[#allocation7 + $0x3f0] sm:$0xff]  ;;  %v3452_v12 = vcombine.low %v544_v20, %v548_v27  ;;  %v3580_v46 = vcombine.low %v672_v39, %v676_v45 }
 0x12c   :  { %2538 = vmatprep.subr.bf16.mxu0 %v3477_v11  ;;  %2651 = vmatprep.subr.bf16.mxu1 %v3605_v9  ;;  %v792_v61 = vld [vmem:[#allocation7 + $0x7d0] sm:$0xff]  ;;  %v3573_v11 = vcombine.high %v664_v50, %v668_v15 }
 0x12d   :  { %v796_v6 = vld [vmem:[#allocation7 + $0x7f0] sm:$0xff] }
 0x12e   :  { %2357 = vmatmul.mubr.bf16.gmra.mxu0 %v4481_v36  ;;  %2470 = vmatmul.mubr.bf16.gmra.mxu1 %v4504_v48  ;;  %v3701_v9 = vcombine.high %v792_v61, %v796_v6  ;;  %v656_v26 = vld [vmem:[#allocation7 + $0x390] sm:$0xff] }
 0x12f   :  { %2539 = vmatpush1.bf16.msra.mxu0 %v3476_v28  ;;  %2652 = vmatpush1.bf16.msra.mxu1 %v3604_v14  ;;  %v660_v2 = vld [vmem:[#allocation7 + $0x3b0] sm:$0xff]  ;;  %v3572_v28 = vcombine.low %v664_v50, %v668_v15  ;;  %v3700_v14 = vcombine.low %v792_v61, %v796_v6 }
 0x130   :  { %2366 = vmatprep.mubr.bf16.mxu0 %v4524_v22  ;;  %2479 = vmatprep.mubr.bf16.mxu1 %v4526_v62  ;;  %v784_v56 = vld [vmem:[#allocation7 + $0x790] sm:$0xff] }
 0x131   :  { %2540 = vmatprep.subr.bf16.mxu0 %v3469_v3  ;;  %2653 = vmatprep.subr.bf16.mxu1 %v3597_v24  ;;  %v788_v55 = vld [vmem:[#allocation7 + $0x7b0] sm:$0xff]  ;;  %v3565_v3 = vcombine.high %v656_v26, %v660_v2 }
 0x132   :  { %v648_v37 = vld [vmem:[#allocation7 + $0x350] sm:$0xff]  ;;  %v3693_v24 = vcombine.high %v784_v56, %v788_v55 }
 0x133   :  { %2541 = vmatpush1.bf16.msra.mxu0 %v3468_v29  ;;  %2654 = vmatpush1.bf16.msra.mxu1 %v3596_v63  ;;  %v652_v58 = vld [vmem:[#allocation7 + $0x370] sm:$0xff]  ;;  %v3564_v29 = vcombine.low %v656_v26, %v660_v2  ;;  %v3692_v63 = vcombine.low %v784_v56, %v788_v55 }
 0x134   :  { %2542 = vmatprep.subr.bf16.mxu0 %v3461_v57  ;;  %2655 = vmatprep.subr.bf16.mxu1 %v3589_v25  ;;  %v776_v35 = vld [vmem:[#allocation7 + $0x750] sm:$0xff]  ;;  %v3557_v57 = vcombine.high %v648_v37, %v652_v58 }
 0x135   :  { %v780_v18 = vld [vmem:[#allocation7 + $0x770] sm:$0xff] }
 0x136   :  { %2367 = vmatmul.mubr.bf16.gmra.mxu0 %v4579_v47  ;;  %2480 = vmatmul.mubr.bf16.gmra.mxu1 %v4581_v54  ;;  %v3685_v25 = vcombine.high %v776_v35, %v780_v18  ;;  %v640_v20 = vld [vmem:[#allocation7 + $0x310] sm:$0xff] }
 0x137   :  { %2543 = vmatpush1.bf16.msra.mxu0 %v3460_v1  ;;  %2656 = vmatpush1.bf16.msra.mxu1 %v3588_v19  ;;  %v644_v27 = vld [vmem:[#allocation7 + $0x330] sm:$0xff]  ;;  %v3556_v1 = vcombine.low %v648_v37, %v652_v58  ;;  %v3684_v19 = vcombine.low %v776_v35, %v780_v18 }
 0x138   :  { %2376 = vmatprep.mubr.bf16.mxu0 %v4592_v60  ;;  %2489 = vmatprep.mubr.bf16.mxu1 %v4614_v32  ;;  %v768_v39 = vld [vmem:[#allocation7 + $0x710] sm:$0xff] }
 0x139   :  { %2544 = vmatprep.subr.bf16.mxu0 %v3453_v21  ;;  %2657 = vmatprep.subr.bf16.mxu1 %v3581_v33  ;;  %v772_v45 = vld [vmem:[#allocation7 + $0x730] sm:$0xff]  ;;  %v3549_v21 = vcombine.high %v640_v20, %v644_v27 }
 0x13a   :  { %v632_v50 = vld [vmem:[#allocation7 + $0x2d0] sm:$0xff]  ;;  %v3677_v33 = vcombine.high %v768_v39, %v772_v45 }
 0x13b   :  { %2545 = vmatpush1.bf16.msra.mxu0 %v3452_v12  ;;  %2658 = vmatpush1.bf16.msra.mxu1 %v3580_v46  ;;  %v636_v15 = vld [vmem:[#allocation7 + $0x2f0] sm:$0xff]  ;;  %v3548_v12 = vcombine.low %v640_v20, %v644_v27  ;;  %v3676_v46 = vcombine.low %v768_v39, %v772_v45 }
 0x13c   :  { %2546 = vmatprep.subr.bf16.mxu0 %v3573_v11  ;;  %2659 = vmatprep.subr.bf16.mxu1 %v3701_v9  ;;  %v760_v61 = vld [vmem:[#allocation7 + $0x6d0] sm:$0xff]  ;;  %v3541_v11 = vcombine.high %v632_v50, %v636_v15 }
 0x13d   :  { %v764_v6 = vld [vmem:[#allocation7 + $0x6f0] sm:$0xff] }
 0x13e   :  { %2377 = vmatmul.mubr.bf16.gmra.mxu0 %v4653_v42  ;;  %2490 = vmatmul.mubr.bf16.gmra.mxu1 %v4657_v40  ;;  %v3669_v9 = vcombine.high %v760_v61, %v764_v6  ;;  %v624_v26 = vld [vmem:[#allocation7 + $0x290] sm:$0xff] }
 0x13f   :  { %2547 = vmatpush2.bf16.msra.mxu0 %v3572_v28  ;;  %2660 = vmatpush2.bf16.msra.mxu1 %v3700_v14  ;;  %v628_v2 = vld [vmem:[#allocation7 + $0x2b0] sm:$0xff]  ;;  %v3540_v28 = vcombine.low %v632_v50, %v636_v15  ;;  %v3668_v14 = vcombine.low %v760_v61, %v764_v6  ;;  %v601_v50 = vld [vmem:[#allocation7 + $0x1d8] sm:$0xff] }
 0x140   :  { %2386 = vmatprep.mubr.bf16.mxu0 %v4675_v31  ;;  %2499 = vmatprep.mubr.bf16.mxu1 %v4679_v44  ;;  %v752_v56 = vld [vmem:[#allocation7 + $0x690] sm:$0xff]  ;;  %v605_v15 = vld [vmem:[#allocation7 + $0x1f8] sm:$0xff] }
 0x141   :  { %2548 = vmatprep.subr.bf16.mxu0 %v3565_v3  ;;  %2661 = vmatprep.subr.bf16.mxu1 %v3693_v24  ;;  %v756_v55 = vld [vmem:[#allocation7 + $0x6b0] sm:$0xff]  ;;  %v3533_v3 = vcombine.high %v624_v26, %v628_v2  ;;  %v729_v61 = vld [vmem:[#allocation7 + $0x5d8] sm:$0xff] }
 0x142   :  { %v616_v37 = vld [vmem:[#allocation7 + $0x250] sm:$0xff]  ;;  %v3661_v24 = vcombine.high %v752_v56, %v756_v55  ;;  %v733_v6 = vld [vmem:[#allocation7 + $0x5f8] sm:$0xff] }
 0x143   :  { %2549 = vmatpush2.bf16.msra.mxu0 %v3564_v29  ;;  %2662 = vmatpush2.bf16.msra.mxu1 %v3692_v63  ;;  %v620_v58 = vld [vmem:[#allocation7 + $0x270] sm:$0xff]  ;;  %v3532_v29 = vcombine.low %v624_v26, %v628_v2  ;;  %v3660_v63 = vcombine.low %v752_v56, %v756_v55  ;;  %v593_v26 = vld [vmem:[#allocation7 + $0x198] sm:$0xff] }
 0x144   :  { %2550 = vmatprep.subr.bf16.mxu0 %v3557_v57  ;;  %2663 = vmatprep.subr.bf16.mxu1 %v3685_v25  ;;  %v744_v35 = vld [vmem:[#allocation7 + $0x650] sm:$0xff]  ;;  %v3525_v57 = vcombine.high %v616_v37, %v620_v58  ;;  %v597_v2 = vld [vmem:[#allocation7 + $0x1b8] sm:$0xff] }
 0x145   :  { %v748_v18 = vld [vmem:[#allocation7 + $0x670] sm:$0xff]  ;;  %v721_v56 = vld [vmem:[#allocation7 + $0x598] sm:$0xff] }
 0x146   :  { %2387 = vmatmul.mubr.bf16.gmra.mxu0 %v4709_v34  ;;  %2500 = vmatmul.mubr.bf16.gmra.mxu1 %v4711_v53  ;;  %v3653_v25 = vcombine.high %v744_v35, %v748_v18  ;;  %v608_v20 = vld [vmem:[#allocation7 + $0x210] sm:$0xff]  ;;  %v725_v55 = vld [vmem:[#allocation7 + $0x5b8] sm:$0xff] }
 0x147   :  { %2551 = vmatpush2.bf16.msra.mxu0 %v3556_v1  ;;  %2664 = vmatpush2.bf16.msra.mxu1 %v3684_v19  ;;  %v612_v27 = vld [vmem:[#allocation7 + $0x230] sm:$0xff]  ;;  %v3524_v1 = vcombine.low %v616_v37, %v620_v58  ;;  %v3652_v19 = vcombine.low %v744_v35, %v748_v18  ;;  %v585_v37 = vld [vmem:[#allocation7 + $0x158] sm:$0xff] }
 0x148   :  { %2396 = vmatprep.mubr.bf16.mxu0 %v4725_v43  ;;  %2509 = vmatprep.mubr.bf16.mxu1 %v4727_v41  ;;  %v736_v39 = vld [vmem:[#allocation7 + $0x610] sm:$0xff]  ;;  %v589_v58 = vld [vmem:[#allocation7 + $0x178] sm:$0xff] }
 0x149   :  { %2552 = vmatprep.subr.bf16.mxu0 %v3549_v21  ;;  %2665 = vmatprep.subr.bf16.mxu1 %v3677_v33  ;;  %v740_v45 = vld [vmem:[#allocation7 + $0x630] sm:$0xff]  ;;  %v3517_v21 = vcombine.high %v608_v20, %v612_v27  ;;  %v713_v35 = vld [vmem:[#allocation7 + $0x558] sm:$0xff] }
 0x14a   :  { %v3645_v33 = vcombine.high %v736_v39, %v740_v45  ;;  %v717_v18 = vld [vmem:[#allocation7 + $0x578] sm:$0xff] }
 0x14b   :  { %2553 = vmatpush2.bf16.msra.mxu0 %v3548_v12  ;;  %2666 = vmatpush2.bf16.msra.mxu1 %v3676_v46  ;;  %v3516_v12 = vcombine.low %v608_v20, %v612_v27  ;;  %v3644_v46 = vcombine.low %v736_v39, %v740_v45  ;;  %v577_v20 = vld [vmem:[#allocation7 + $0x118] sm:$0xff] }
 0x14c   :  { %2554 = vmatprep.subr.bf16.mxu0 %v3541_v11  ;;  %2667 = vmatprep.subr.bf16.mxu1 %v3669_v9  ;;  %v3511_v11 = vcombine.high %v601_v50, %v605_v15  ;;  %v3639_v9 = vcombine.high %v729_v61, %v733_v6  ;;  %v581_v27 = vld [vmem:[#allocation7 + $0x138] sm:$0xff] }
 0x14d   :  { %v705_v39 = vld [vmem:[#allocation7 + $0x518] sm:$0xff] }
 0x14e   :  { %2397 = vmatmul.mubr.bf16.gmra.mxu0 %v4740_v0  ;;  %2510 = vmatmul.mubr.bf16.gmra.mxu1 %v4749_v23  ;;  %v709_v45 = vld [vmem:[#allocation7 + $0x538] sm:$0xff] }
 0x14f   :  { %2555 = vmatpush2.bf16.msra.mxu0 %v3540_v28  ;;  %2668 = vmatpush2.bf16.msra.mxu1 %v3668_v14  ;;  %v3510_v28 = vcombine.low %v601_v50, %v605_v15  ;;  %v3638_v14 = vcombine.low %v729_v61, %v733_v6  ;;  %v569_v50 = vld [vmem:[#allocation7 + $0xd8] sm:$0xff] }
 0x150   :  { %2406 = vmatprep.mubr.bf16.mxu0 %v4756_v4  ;;  %2519 = vmatprep.mubr.bf16.mxu1 %v4758_v51  ;;  %v573_v15 = vld [vmem:[#allocation7 + $0xf8] sm:$0xff] }
 0x151   :  { %2556 = vmatprep.subr.bf16.mxu0 %v3533_v3  ;;  %2669 = vmatprep.subr.bf16.mxu1 %v3661_v24  ;;  %v3503_v3 = vcombine.high %v593_v26, %v597_v2  ;;  %v3631_v24 = vcombine.high %v721_v56, %v725_v55  ;;  %v697_v61 = vld [vmem:[#allocation7 + $0x4d8] sm:$0xff] }
 0x152   :  { %v701_v6 = vld [vmem:[#allocation7 + $0x4f8] sm:$0xff] }
 0x153   :  { %2557 = vmatpush2.bf16.msra.mxu0 %v3532_v29  ;;  %2670 = vmatpush2.bf16.msra.mxu1 %v3660_v63  ;;  %v3502_v29 = vcombine.low %v593_v26, %v597_v2  ;;  %v3630_v63 = vcombine.low %v721_v56, %v725_v55  ;;  %v561_v26 = vld [vmem:[#allocation7 + $0x98] sm:$0xff] }
 0x154   :  { %2558 = vmatprep.subr.bf16.mxu0 %v3525_v57  ;;  %2671 = vmatprep.subr.bf16.mxu1 %v3653_v25  ;;  %v3495_v57 = vcombine.high %v585_v37, %v589_v58  ;;  %v3623_v25 = vcombine.high %v713_v35, %v717_v18  ;;  %v565_v2 = vld [vmem:[#allocation7 + $0xb8] sm:$0xff] }
 0x155   :  { %v689_v56 = vld [vmem:[#allocation7 + $0x498] sm:$0xff] }
 0x156   :  { %2407 = vmatmul.mubr.bf16.gmra.mxu0 %v4768_v49  ;;  %2520 = vmatmul.mubr.bf16.gmra.mxu1 %v4770_v52  ;;  %v693_v55 = vld [vmem:[#allocation7 + $0x4b8] sm:$0xff] }
 0x157   :  { %2559 = vmatpush2.bf16.msra.mxu0 %v3524_v1  ;;  %2672 = vmatpush2.bf16.msra.mxu1 %v3652_v19  ;;  %v3494_v1 = vcombine.low %v585_v37, %v589_v58  ;;  %v3622_v19 = vcombine.low %v713_v35, %v717_v18  ;;  %v553_v37 = vld [vmem:[#allocation7 + $0x58] sm:$0xff] }
 0x158   :  { %2562 = vmatprep.mubr.bf16.mxu0 %v4390_v13  ;;  %2675 = vmatprep.mubr.bf16.mxu1 %v4392_v8  ;;  %v557_v58 = vld [vmem:[#allocation7 + $0x78] sm:$0xff] }
 0x159   :  { %2560 = vmatprep.subr.bf16.mxu0 %v3517_v21  ;;  %2673 = vmatprep.subr.bf16.mxu1 %v3645_v33  ;;  %v3487_v21 = vcombine.high %v577_v20, %v581_v27  ;;  %v3615_v33 = vcombine.high %v705_v39, %v709_v45  ;;  %v681_v35 = vld [vmem:[#allocation7 + $0x458] sm:$0xff] }
 0x15a   :  { %v685_v18 = vld [vmem:[#allocation7 + $0x478] sm:$0xff] }
 0x15b   :  { %2561 = vmatpush2.bf16.msra.mxu0 %v3516_v12  ;;  %2674 = vmatpush2.bf16.msra.mxu1 %v3644_v46  ;;  %v3486_v12 = vcombine.low %v577_v20, %v581_v27  ;;  %v3614_v46 = vcombine.low %v705_v39, %v709_v45  ;;  %v545_v20 = vld [vmem:[#allocation7 + $0x18] sm:$0xff] }
 0x15c   :  { %2756 = vmatprep.subr.bf16.mxu0 %v3511_v11  ;;  %2869 = vmatprep.subr.bf16.mxu1 %v3639_v9  ;;  %v3479_v11 = vcombine.high %v569_v50, %v573_v15  ;;  %v3607_v9 = vcombine.high %v697_v61, %v701_v6  ;;  %v549_v27 = vld [vmem:[#allocation7 + $0x38] sm:$0xff] }
 0x15d   :  { %v673_v39 = vld [vmem:[#allocation7 + $0x418] sm:$0xff] }
 0x15e   :  { %2563 = vmatmul.mubr.bf16.vlgmr.msra.gmra.mxu0 %v4394_v10  ;;  %2676 = vmatmul.mubr.bf16.vlgmr.msra.gmra.mxu1 %v4396_v17  ;;  %v677_v45 = vld [vmem:[#allocation7 + $0x438] sm:$0xff] }
 0x15f   :  { %2757 = vmatpush1.bf16.msra.mxu0 %v3510_v28  ;;  %2870 = vmatpush1.bf16.msra.mxu1 %v3638_v14  ;;  %v3478_v28 = vcombine.low %v569_v50, %v573_v15  ;;  %v3606_v14 = vcombine.low %v697_v61, %v701_v6  ;;  %v665_v50 = vld [vmem:[#allocation7 + $0x3d8] sm:$0xff] }
 0x160   :  { %2572 = vmatprep.mubr.bf16.mxu0 %v4408_v38  ;;  %2685 = vmatprep.mubr.bf16.mxu1 %v4410_v30  ;;  %v669_v15 = vld [vmem:[#allocation7 + $0x3f8] sm:$0xff] }
 0x161   :  { %2758 = vmatprep.subr.bf16.mxu0 %v3503_v3  ;;  %2871 = vmatprep.subr.bf16.mxu1 %v3631_v24  ;;  %v3471_v3 = vcombine.high %v561_v26, %v565_v2  ;;  %v3599_v24 = vcombine.high %v689_v56, %v693_v55  ;;  %v793_v61 = vld [vmem:[#allocation7 + $0x7d8] sm:$0xff] }
 0x162   :  { %v797_v6 = vld [vmem:[#allocation7 + $0x7f8] sm:$0xff] }
 0x163   :  { %2759 = vmatpush1.bf16.msra.mxu0 %v3502_v29  ;;  %2872 = vmatpush1.bf16.msra.mxu1 %v3630_v63  ;;  %v3470_v29 = vcombine.low %v561_v26, %v565_v2  ;;  %v3598_v63 = vcombine.low %v689_v56, %v693_v55  ;;  %v657_v26 = vld [vmem:[#allocation7 + $0x398] sm:$0xff] }
 0x164   :  { %2760 = vmatprep.subr.bf16.mxu0 %v3495_v57  ;;  %2873 = vmatprep.subr.bf16.mxu1 %v3623_v25  ;;  %v3463_v57 = vcombine.high %v553_v37, %v557_v58  ;;  %v3591_v25 = vcombine.high %v681_v35, %v685_v18  ;;  %v661_v2 = vld [vmem:[#allocation7 + $0x3b8] sm:$0xff] }
 0x165   :  { %v785_v56 = vld [vmem:[#allocation7 + $0x798] sm:$0xff] }
 0x166   :  { %2573 = vmatmul.mubr.bf16.gmra.mxu0 %v4424_v5  ;;  %2686 = vmatmul.mubr.bf16.gmra.mxu1 %v4434_v59  ;;  %v789_v55 = vld [vmem:[#allocation7 + $0x7b8] sm:$0xff] }
 0x167   :  { %2761 = vmatpush1.bf16.msra.mxu0 %v3494_v1  ;;  %2874 = vmatpush1.bf16.msra.mxu1 %v3622_v19  ;;  %v3462_v1 = vcombine.low %v553_v37, %v557_v58  ;;  %v3590_v19 = vcombine.low %v681_v35, %v685_v18  ;;  %v649_v37 = vld [vmem:[#allocation7 + $0x358] sm:$0xff] }
 0x168   :  { %2582 = vmatprep.mubr.bf16.mxu0 %v4455_v16  ;;  %2695 = vmatprep.mubr.bf16.mxu1 %v4463_v7  ;;  %v653_v58 = vld [vmem:[#allocation7 + $0x378] sm:$0xff] }
 0x169   :  { %2762 = vmatprep.subr.bf16.mxu0 %v3487_v21  ;;  %2875 = vmatprep.subr.bf16.mxu1 %v3615_v33  ;;  %v3455_v21 = vcombine.high %v545_v20, %v549_v27  ;;  %v3583_v33 = vcombine.high %v673_v39, %v677_v45  ;;  %v777_v35 = vld [vmem:[#allocation7 + $0x758] sm:$0xff] }
 0x16a   :  { %v781_v18 = vld [vmem:[#allocation7 + $0x778] sm:$0xff] }
 0x16b   :  { %2763 = vmatpush1.bf16.msra.mxu0 %v3486_v12  ;;  %2876 = vmatpush1.bf16.msra.mxu1 %v3614_v46  ;;  %v3454_v12 = vcombine.low %v545_v20, %v549_v27  ;;  %v3582_v46 = vcombine.low %v673_v39, %v677_v45  ;;  %v641_v20 = vld [vmem:[#allocation7 + $0x318] sm:$0xff] }
 0x16c   :  { %2764 = vmatprep.subr.bf16.mxu0 %v3479_v11  ;;  %2877 = vmatprep.subr.bf16.mxu1 %v3607_v9  ;;  %v3575_v11 = vcombine.high %v665_v50, %v669_v15  ;;  %v3703_v9 = vcombine.high %v793_v61, %v797_v6  ;;  %v645_v27 = vld [vmem:[#allocation7 + $0x338] sm:$0xff] }
 0x16d   :  { %v769_v39 = vld [vmem:[#allocation7 + $0x718] sm:$0xff] }
 0x16e   :  { %2583 = vmatmul.mubr.bf16.gmra.mxu0 %v4481_v36  ;;  %2696 = vmatmul.mubr.bf16.gmra.mxu1 %v4504_v48  ;;  %v773_v45 = vld [vmem:[#allocation7 + $0x738] sm:$0xff] }
 0x16f   :  { %2765 = vmatpush1.bf16.msra.mxu0 %v3478_v28  ;;  %2878 = vmatpush1.bf16.msra.mxu1 %v3606_v14  ;;  %v3574_v28 = vcombine.low %v665_v50, %v669_v15  ;;  %v3702_v14 = vcombine.low %v793_v61, %v797_v6  ;;  %v633_v50 = vld [vmem:[#allocation7 + $0x2d8] sm:$0xff] }
 0x170   :  { %2592 = vmatprep.mubr.bf16.mxu0 %v4524_v22  ;;  %2705 = vmatprep.mubr.bf16.mxu1 %v4526_v62  ;;  %v637_v15 = vld [vmem:[#allocation7 + $0x2f8] sm:$0xff] }
 0x171   :  { %2766 = vmatprep.subr.bf16.mxu0 %v3471_v3  ;;  %2879 = vmatprep.subr.bf16.mxu1 %v3599_v24  ;;  %v3567_v3 = vcombine.high %v657_v26, %v661_v2  ;;  %v3695_v24 = vcombine.high %v785_v56, %v789_v55  ;;  %v761_v61 = vld [vmem:[#allocation7 + $0x6d8] sm:$0xff] }
 0x172   :  { %v765_v6 = vld [vmem:[#allocation7 + $0x6f8] sm:$0xff] }
 0x173   :  { %2767 = vmatpush1.bf16.msra.mxu0 %v3470_v29  ;;  %2880 = vmatpush1.bf16.msra.mxu1 %v3598_v63  ;;  %v3566_v29 = vcombine.low %v657_v26, %v661_v2  ;;  %v3694_v63 = vcombine.low %v785_v56, %v789_v55  ;;  %v625_v26 = vld [vmem:[#allocation7 + $0x298] sm:$0xff] }
 0x174   :  { %2768 = vmatprep.subr.bf16.mxu0 %v3463_v57  ;;  %2881 = vmatprep.subr.bf16.mxu1 %v3591_v25  ;;  %v3559_v57 = vcombine.high %v649_v37, %v653_v58  ;;  %v3687_v25 = vcombine.high %v777_v35, %v781_v18  ;;  %v629_v2 = vld [vmem:[#allocation7 + $0x2b8] sm:$0xff] }
 0x175   :  { %v753_v56 = vld [vmem:[#allocation7 + $0x698] sm:$0xff] }
 0x176   :  { %2593 = vmatmul.mubr.bf16.gmra.mxu0 %v4579_v47  ;;  %2706 = vmatmul.mubr.bf16.gmra.mxu1 %v4581_v54  ;;  %v757_v55 = vld [vmem:[#allocation7 + $0x6b8] sm:$0xff] }
 0x177   :  { %2769 = vmatpush1.bf16.msra.mxu0 %v3462_v1  ;;  %2882 = vmatpush1.bf16.msra.mxu1 %v3590_v19  ;;  %v3558_v1 = vcombine.low %v649_v37, %v653_v58  ;;  %v3686_v19 = vcombine.low %v777_v35, %v781_v18  ;;  %v617_v37 = vld [vmem:[#allocation7 + $0x258] sm:$0xff] }
 0x178   :  { %2602 = vmatprep.mubr.bf16.mxu0 %v4592_v60  ;;  %2715 = vmatprep.mubr.bf16.mxu1 %v4614_v32  ;;  %v621_v58 = vld [vmem:[#allocation7 + $0x278] sm:$0xff] }
 0x179   :  { %2770 = vmatprep.subr.bf16.mxu0 %v3455_v21  ;;  %2883 = vmatprep.subr.bf16.mxu1 %v3583_v33  ;;  %v3551_v21 = vcombine.high %v641_v20, %v645_v27  ;;  %v3679_v33 = vcombine.high %v769_v39, %v773_v45  ;;  %v745_v35 = vld [vmem:[#allocation7 + $0x658] sm:$0xff] }
 0x17a   :  { %v749_v18 = vld [vmem:[#allocation7 + $0x678] sm:$0xff] }
 0x17b   :  { %2771 = vmatpush1.bf16.msra.mxu0 %v3454_v12  ;;  %2884 = vmatpush1.bf16.msra.mxu1 %v3582_v46  ;;  %v3550_v12 = vcombine.low %v641_v20, %v645_v27  ;;  %v3678_v46 = vcombine.low %v769_v39, %v773_v45  ;;  %v609_v20 = vld [vmem:[#allocation7 + $0x218] sm:$0xff] }
 0x17c   :  { %2772 = vmatprep.subr.bf16.mxu0 %v3575_v11  ;;  %2885 = vmatprep.subr.bf16.mxu1 %v3703_v9  ;;  %v3543_v11 = vcombine.high %v633_v50, %v637_v15  ;;  %v3671_v9 = vcombine.high %v761_v61, %v765_v6  ;;  %v613_v27 = vld [vmem:[#allocation7 + $0x238] sm:$0xff] }
 0x17d   :  { %v737_v39 = vld [vmem:[#allocation7 + $0x618] sm:$0xff] }
 0x17e   :  { %2603 = vmatmul.mubr.bf16.gmra.mxu0 %v4653_v42  ;;  %2716 = vmatmul.mubr.bf16.gmra.mxu1 %v4657_v40  ;;  %v741_v45 = vld [vmem:[#allocation7 + $0x638] sm:$0xff] }
 0x17f   :  { %2773 = vmatpush2.bf16.msra.mxu0 %v3574_v28  ;;  %2886 = vmatpush2.bf16.msra.mxu1 %v3702_v14  ;;  %v3542_v28 = vcombine.low %v633_v50, %v637_v15  ;;  %v3670_v14 = vcombine.low %v761_v61, %v765_v6  ;;  %v3519_v50 = vcombine.high %v609_v20, %v613_v27 }
 0x180   :  { %2612 = vmatprep.mubr.bf16.mxu0 %v4675_v31  ;;  %2725 = vmatprep.mubr.bf16.mxu1 %v4679_v44  ;;  %v3646_v15 = vcombine.low %v737_v39, %v741_v45 }
 0x181   :  { %2774 = vmatprep.subr.bf16.mxu0 %v3567_v3  ;;  %2887 = vmatprep.subr.bf16.mxu1 %v3695_v24  ;;  %v3535_v3 = vcombine.high %v625_v26, %v629_v2  ;;  %v3663_v24 = vcombine.high %v753_v56, %v757_v55 }
 0x183   :  { %2775 = vmatpush2.bf16.msra.mxu0 %v3566_v29  ;;  %2888 = vmatpush2.bf16.msra.mxu1 %v3694_v63  ;;  %v3534_v29 = vcombine.low %v625_v26, %v629_v2  ;;  %v3662_v63 = vcombine.low %v753_v56, %v757_v55 }
 0x184   :  { %2776 = vmatprep.subr.bf16.mxu0 %v3559_v57  ;;  %2889 = vmatprep.subr.bf16.mxu1 %v3687_v25  ;;  %v3527_v57 = vcombine.high %v617_v37, %v621_v58  ;;  %v3655_v25 = vcombine.high %v745_v35, %v749_v18 }
 0x186   :  { %2613 = vmatmul.mubr.bf16.gmra.mxu0 %v4709_v34  ;;  %2726 = vmatmul.mubr.bf16.gmra.mxu1 %v4711_v53 }
 0x187   :  { %2777 = vmatpush2.bf16.msra.mxu0 %v3558_v1  ;;  %2890 = vmatpush2.bf16.msra.mxu1 %v3686_v19  ;;  %v3526_v1 = vcombine.low %v617_v37, %v621_v58  ;;  %v3654_v19 = vcombine.low %v745_v35, %v749_v18 }
 0x188   :  { %2622 = vmatprep.mubr.bf16.mxu0 %v4725_v43  ;;  %2735 = vmatprep.mubr.bf16.mxu1 %v4727_v41 }
 0x189   :  { %2778 = vmatprep.subr.bf16.mxu0 %v3551_v21  ;;  %2891 = vmatprep.subr.bf16.mxu1 %v3679_v33  ;;  %v3647_v21 = vcombine.high %v737_v39, %v741_v45  ;;  %v3518_v33 = vcombine.low %v609_v20, %v613_v27 }
 0x18b   :  { %2779 = vmatpush2.bf16.msra.mxu0 %v3550_v12  ;;  %2892 = vmatpush2.bf16.msra.mxu1 %v3678_v46 }
 0x18c   :  { %2780 = vmatprep.subr.bf16.mxu0 %v3543_v11  ;;  %2893 = vmatprep.subr.bf16.mxu1 %v3671_v9 }
 0x18e   :  { %2623 = vmatmul.mubr.bf16.gmra.mxu0 %v4740_v0  ;;  %2736 = vmatmul.mubr.bf16.gmra.mxu1 %v4749_v23 }
 0x18f   :  { %2781 = vmatpush2.bf16.msra.mxu0 %v3542_v28  ;;  %2894 = vmatpush2.bf16.msra.mxu1 %v3670_v14 }
 0x190   :  { %2632 = vmatprep.mubr.bf16.mxu0 %v4756_v4  ;;  %2745 = vmatprep.mubr.bf16.mxu1 %v4758_v51 }
 0x191   :  { %2782 = vmatprep.subr.bf16.mxu0 %v3535_v3  ;;  %2895 = vmatprep.subr.bf16.mxu1 %v3663_v24 }
 0x193   :  { %2783 = vmatpush2.bf16.msra.mxu0 %v3534_v29  ;;  %2896 = vmatpush2.bf16.msra.mxu1 %v3662_v63 }
 0x194   :  { %2784 = vmatprep.subr.bf16.mxu0 %v3527_v57  ;;  %2897 = vmatprep.subr.bf16.mxu1 %v3655_v25 }
 0x196   :  { %2633 = vmatmul.mubr.bf16.gmra.mxu0 %v4768_v49  ;;  %2746 = vmatmul.mubr.bf16.gmra.mxu1 %v4770_v52 }
 0x197   :  { %2785 = vmatpush2.bf16.msra.mxu0 %v3526_v1  ;;  %2898 = vmatpush2.bf16.msra.mxu1 %v3654_v19 }
 0x198   :  { %2788 = vmatprep.mubr.bf16.mxu0 %v4390_v13  ;;  %2901 = vmatprep.mubr.bf16.mxu1 %v4392_v8  ;;  %v2112_v61 = vpop.f32.mrf.mxu0  ;;  %v2225_v6 = vpop.f32.mrf.mxu1 }
 0x199   :  { %2786 = vmatprep.subr.bf16.mxu0 %v3519_v50  ;;  %2899 = vmatprep.subr.bf16.mxu1 %v3647_v21  ;;  %v2226_v11 = vadd.f32 %v2225_v6, %v2112_v61 }
 0x19a   :  { %v2114_v12 = vpop.f32.mrf.mxu0  ;;  %v2227_v46 = vpop.f32.mrf.mxu1 }
 0x19b   :  { %2787 = vmatpush2.bf16.msra.mxu0 %v3518_v33  ;;  %2900 = vmatpush2.bf16.msra.mxu1 %v3646_v15  ;;  %v2228_v13 = vadd.f32 %v2227_v46, %v2114_v12 }
 0x19c   :  { %v2116_v9 = vpop.f32.mrf.mxu0  ;;  %v2229_v8 = vpop.f32.mrf.mxu1 }
 0x19d   :  { %v3768_v26 = vpack.c.bf16 %v2228_v13, %v2226_v11  ;;  %v2230_v55 = vadd.f32 %v2229_v8, %v2116_v9 }
 0x19e   :  { %2789 = vmatmul.mubr.bf16.vlgmr.msra.gmra.mxu0 %v4394_v10  ;;  %2902 = vmatmul.mubr.bf16.vlgmr.msra.gmra.mxu1 %v4396_v17  ;;  %v2118_v2 = vpop.f32.mrf.mxu0  ;;  %v2231_v56 = vpop.f32.mrf.mxu1 }
 0x19f   :  { %2798 = vmatprep.mubr.bf16.mxu0 %v4408_v38  ;;  %2911 = vmatprep.mubr.bf16.mxu1 %v4410_v30  ;;  %3366 = vst [vmem:[#allocation8] sm:$0xff] %v3768_v26  ;;  %v2232_v28 = vadd.f32 %v2231_v56, %v2118_v2 }
 0x1a0   :  { %v2122_v14 = vpop.f32.mrf.mxu0 }
 0x1a1   :  { %v3772_v17 = vpack.c.bf16 %v2232_v28, %v2230_v55 }
 0x1a2   :  { %v2235_v10 = vpop.f32.mrf.mxu1  ;;  %v2124_v38 = vpop.f32.mrf.mxu0 }
 0x1a3   :  { %3370 = vst [vmem:[#allocation8 + $0x20] sm:$0xff] %v3772_v17  ;;  %v2236_v37 = vadd.f32 %v2235_v10, %v2122_v14 }
 0x1a4   :  { %v2237_v30 = vpop.f32.mrf.mxu1  ;;  %v2126_v24 = vpop.f32.mrf.mxu0 }
 0x1a5   :  { %v2238_v3 = vadd.f32 %v2237_v30, %v2124_v38 }
 0x1a6   :  { %2799 = vmatmul.mubr.bf16.gmra.mxu0 %v4424_v5  ;;  %2912 = vmatmul.mubr.bf16.gmra.mxu1 %v4434_v59  ;;  %v2239_v58 = vpop.f32.mrf.mxu1  ;;  %v2128_v18 = vpop.f32.mrf.mxu0 }
 0x1a7   :  { %2808 = vmatprep.mubr.bf16.mxu0 %v4455_v16  ;;  %2921 = vmatprep.mubr.bf16.mxu1 %v4463_v7  ;;  %v3776_v35 = vpack.c.bf16 %v2238_v3, %v2236_v37  ;;  %v2240_v63 = vadd.f32 %v2239_v58, %v2126_v24 }
 0x1a8   :  { %v2241_v29 = vpop.f32.mrf.mxu1  ;;  %v2132_v57 = vpop.f32.mrf.mxu0 }
 0x1a9   :  { %3374 = vst [vmem:[#allocation8 + $0x40] sm:$0xff] %v3776_v35  ;;  %v2242_v5 = vadd.f32 %v2241_v29, %v2128_v18 }
 0x1aa   :  { %v2134_v7 = vpop.f32.mrf.mxu0 }
 0x1ab   :  { %v2245_v59 = vpop.f32.mrf.mxu1  ;;  %v3780_v16 = vpack.c.bf16 %v2242_v5, %v2240_v63 }
 0x1ac   :  { %v2246_v20 = vadd.f32 %v2245_v59, %v2132_v57  ;;  %v2136_v39 = vpop.f32.mrf.mxu0 }
 0x1ad   :  { %v2247_v25 = vpop.f32.mrf.mxu1  ;;  %3378 = vst [vmem:[#allocation8 + $0x60] sm:$0xff] %v3780_v16 }
 0x1ae   :  { %2809 = vmatmul.mubr.bf16.gmra.mxu0 %v4481_v36  ;;  %2922 = vmatmul.mubr.bf16.gmra.mxu1 %v4504_v48  ;;  %v2248_v27 = vadd.f32 %v2247_v25, %v2134_v7  ;;  %v2138_v19 = vpop.f32.mrf.mxu0 }
 0x1af   :  { %2818 = vmatprep.mubr.bf16.mxu0 %v4524_v22  ;;  %2931 = vmatprep.mubr.bf16.mxu1 %v4526_v62  ;;  %v2249_v45 = vpop.f32.mrf.mxu1 }
 0x1b0   :  { %v3784_v1 = vpack.c.bf16 %v2248_v27, %v2246_v20  ;;  %v2250_v21 = vadd.f32 %v2249_v45, %v2136_v39 }
 0x1b1   :  { %v2251_v50 = vpop.f32.mrf.mxu1 }
 0x1b2   :  { %3382 = vst [vmem:[#allocation8 + $0x80] sm:$0xff] %v3784_v1  ;;  %v2252_v36 = vadd.f32 %v2251_v50, %v2138_v19  ;;  %v2142_v33 = vpop.f32.mrf.mxu0 }
 0x1b4   :  { %v2255_v48 = vpop.f32.mrf.mxu1  ;;  %v3788_v22 = vpack.c.bf16 %v2252_v36, %v2250_v21  ;;  %v2144_v62 = vpop.f32.mrf.mxu0 }
 0x1b5   :  { %v2256_v61 = vadd.f32 %v2255_v48, %v2142_v33 }
 0x1b6   :  { %2819 = vmatmul.mubr.bf16.gmra.mxu0 %v4579_v47  ;;  %2932 = vmatmul.mubr.bf16.gmra.mxu1 %v4581_v54  ;;  %v2257_v15 = vpop.f32.mrf.mxu1  ;;  %3386 = vst [vmem:[#allocation8 + $0xa0] sm:$0xff] %v3788_v22  ;;  %v2146_v12 = vpop.f32.mrf.mxu0 }
 0x1b7   :  { %2828 = vmatprep.mubr.bf16.mxu0 %v4592_v60  ;;  %2941 = vmatprep.mubr.bf16.mxu1 %v4614_v32  ;;  %v2258_v6 = vadd.f32 %v2257_v15, %v2144_v62 }
 0x1b8   :  { %v2259_v46 = vpop.f32.mrf.mxu1  ;;  %v2148_v13 = vpop.f32.mrf.mxu0 }
 0x1b9   :  { %v3792_v11 = vpack.c.bf16 %v2258_v6, %v2256_v61  ;;  %v2260_v8 = vadd.f32 %v2259_v46, %v2146_v12 }
 0x1ba   :  { %v2261_v9 = vpop.f32.mrf.mxu1  ;;  %v2152_v26 = vpop.f32.mrf.mxu0 }
 0x1bb   :  { %3390 = vst [vmem:[#allocation8 + $0xc0] sm:$0xff] %v3792_v11  ;;  %v2262_v47 = vadd.f32 %v2261_v9, %v2148_v13 }
 0x1bc   :  { %v2154_v32 = vpop.f32.mrf.mxu0 }
 0x1bd   :  { %v2265_v54 = vpop.f32.mrf.mxu1  ;;  %v3796_v60 = vpack.c.bf16 %v2262_v47, %v2260_v8 }
 0x1be   :  { %2829 = vmatmul.mubr.bf16.gmra.mxu0 %v4653_v42  ;;  %2942 = vmatmul.mubr.bf16.gmra.mxu1 %v4657_v40  ;;  %v2266_v56 = vadd.f32 %v2265_v54, %v2152_v26  ;;  %v2156_v28 = vpop.f32.mrf.mxu0 }
 0x1bf   :  { %2838 = vmatprep.mubr.bf16.mxu0 %v4675_v31  ;;  %2951 = vmatprep.mubr.bf16.mxu1 %v4679_v44  ;;  %v2267_v2 = vpop.f32.mrf.mxu1  ;;  %3394 = vst [vmem:[#allocation8 + $0xe0] sm:$0xff] %v3796_v60 }
 0x1c0   :  { %v2268_v55 = vadd.f32 %v2267_v2, %v2154_v32  ;;  %v2158_v17 = vpop.f32.mrf.mxu0 }
 0x1c1   :  { %v2269_v14 = vpop.f32.mrf.mxu1 }
 0x1c2   :  { %v3800_v10 = vpack.c.bf16 %v2268_v55, %v2266_v56  ;;  %v2270_v30 = vadd.f32 %v2269_v14, %v2156_v28  ;;  %v2162_v37 = vpop.f32.mrf.mxu0 }
 0x1c3   :  { %v2271_v38 = vpop.f32.mrf.mxu1 }
 0x1c4   :  { %3398 = vst [vmem:[#allocation8 + $0x100] sm:$0xff] %v3800_v10  ;;  %v2272_v42 = vadd.f32 %v2271_v38, %v2158_v17  ;;  %v2164_v44 = vpop.f32.mrf.mxu0 }
 0x1c5   :  { %v2275_v40 = vpop.f32.mrf.mxu1 }
 0x1c6   :  { %2839 = vmatmul.mubr.bf16.gmra.mxu0 %v4709_v34  ;;  %2952 = vmatmul.mubr.bf16.gmra.mxu1 %v4711_v53  ;;  %v3804_v31 = vpack.c.bf16 %v2272_v42, %v2270_v30  ;;  %v2276_v24 = vadd.f32 %v2275_v40, %v2162_v37  ;;  %v2166_v35 = vpop.f32.mrf.mxu0 }
 0x1c7   :  { %2848 = vmatprep.mubr.bf16.mxu0 %v4725_v43  ;;  %2961 = vmatprep.mubr.bf16.mxu1 %v4727_v41  ;;  %v2277_v3 = vpop.f32.mrf.mxu1 }
 0x1c8   :  { %3402 = vst [vmem:[#allocation8 + $0x120] sm:$0xff] %v3804_v31  ;;  %v2278_v58 = vadd.f32 %v2277_v3, %v2164_v44  ;;  %v2168_v63 = vpop.f32.mrf.mxu0 }
 0x1c9   :  { %v2279_v18 = vpop.f32.mrf.mxu1 }
 0x1ca   :  { %v3808_v29 = vpack.c.bf16 %v2278_v58, %v2276_v24  ;;  %v2280_v57 = vadd.f32 %v2279_v18, %v2166_v35  ;;  %v2172_v59 = vpop.f32.mrf.mxu0 }
 0x1cb   :  { %v2281_v5 = vpop.f32.mrf.mxu1 }
 0x1cc   :  { %3406 = vst [vmem:[#allocation8 + $0x140] sm:$0xff] %v3808_v29  ;;  %v2282_v34 = vadd.f32 %v2281_v5, %v2168_v63  ;;  %v2174_v41 = vpop.f32.mrf.mxu0 }
 0x1cd   :  { %v2285_v53 = vpop.f32.mrf.mxu1 }
 0x1ce   :  { %2849 = vmatmul.mubr.bf16.gmra.mxu0 %v4740_v0  ;;  %2962 = vmatmul.mubr.bf16.gmra.mxu1 %v4749_v23  ;;  %v3812_v43 = vpack.c.bf16 %v2282_v34, %v2280_v57  ;;  %v2286_v7 = vadd.f32 %v2285_v53, %v2172_v59  ;;  %v2176_v20 = vpop.f32.mrf.mxu0 }
 0x1cf   :  { %2858 = vmatprep.mubr.bf16.mxu0 %v4756_v4  ;;  %2971 = vmatprep.mubr.bf16.mxu1 %v4758_v51  ;;  %v2287_v16 = vpop.f32.mrf.mxu1 }
 0x1d0   :  { %3410 = vst [vmem:[#allocation8 + $0x160] sm:$0xff] %v3812_v43  ;;  %v2288_v25 = vadd.f32 %v2287_v16, %v2174_v41  ;;  %v2178_v45 = vpop.f32.mrf.mxu0 }
 0x1d1   :  { %v2289_v27 = vpop.f32.mrf.mxu1 }
 0x1d2   :  { %v3816_v39 = vpack.c.bf16 %v2288_v25, %v2286_v7  ;;  %v2290_v19 = vadd.f32 %v2289_v27, %v2176_v20  ;;  %v2182_v50 = vpop.f32.mrf.mxu0 }
 0x1d3   :  { %v2291_v1 = vpop.f32.mrf.mxu1 }
 0x1d4   :  { %3414 = vst [vmem:[#allocation8 + $0x180] sm:$0xff] %v3816_v39  ;;  %v2292_v0 = vadd.f32 %v2291_v1, %v2178_v45  ;;  %v2184_v51 = vpop.f32.mrf.mxu0 }
 0x1d5   :  { %v2295_v23 = vpop.f32.mrf.mxu1 }
 0x1d6   :  { %2859 = vmatmul.mubr.bf16.gmra.mxu0 %v4768_v49  ;;  %2972 = vmatmul.mubr.bf16.gmra.mxu1 %v4770_v52  ;;  %v3820_v4 = vpack.c.bf16 %v2292_v0, %v2290_v19  ;;  %v2296_v36 = vadd.f32 %v2295_v23, %v2182_v50  ;;  %v2186_v48 = vpop.f32.mrf.mxu0 }
 0x1d7   :  { %v2297_v21 = vpop.f32.mrf.mxu1 }
 0x1d8   :  { %3418 = vst [vmem:[#allocation8 + $0x1a0] sm:$0xff] %v3820_v4  ;;  %v2298_v33 = vadd.f32 %v2297_v21, %v2184_v51  ;;  %v2188_v15 = vpop.f32.mrf.mxu0 }
 0x1d9   :  { %v2299_v22 = vpop.f32.mrf.mxu1 }
 0x1da   :  { %v3824_v62 = vpack.c.bf16 %v2298_v33, %v2296_v36  ;;  %v2300_v6 = vadd.f32 %v2299_v22, %v2186_v48 }
 0x1db   :  { %v2301_v61 = vpop.f32.mrf.mxu1 }
 0x1dc   :  { %3422 = vst [vmem:[#allocation8 + $0x1c0] sm:$0xff] %v3824_v62  ;;  %v2302_v12 = vadd.f32 %v2301_v61, %v2188_v15 }
 0x1de   :  { %v2338_v46 = vpop.f32.mrf.mxu0  ;;  %v2451_v11 = vpop.f32.mrf.mxu1  ;;  %v3828_v13 = vpack.c.bf16 %v2302_v12, %v2300_v6 }
 0x1df   :  { %v2452_v52 = vadd.f32 %v2451_v11, %v2338_v46 }
 0x1e0   :  { %v2340_v49 = vpop.f32.mrf.mxu0  ;;  %v2453_v9 = vpop.f32.mrf.mxu1  ;;  %3426 = vst [vmem:[#allocation8 + $0x1e0] sm:$0xff] %v3828_v13 }
 0x1e1   :  { %v2454_v8 = vadd.f32 %v2453_v9, %v2340_v49 }
 0x1e2   :  { %v2342_v47 = vpop.f32.mrf.mxu0  ;;  %v2455_v26 = vpop.f32.mrf.mxu1 }
 0x1e3   :  { %v3769_v54 = vpack.c.bf16 %v2454_v8, %v2452_v52  ;;  %v2456_v2 = vadd.f32 %v2455_v26, %v2342_v47 }
 0x1e4   :  { %v2344_v60 = vpop.f32.mrf.mxu0  ;;  %v2457_v32 = vpop.f32.mrf.mxu1 }
 0x1e5   :  { %3367 = vst [vmem:[#allocation8 + $0x8] sm:$0xff] %v3769_v54  ;;  %v2458_v56 = vadd.f32 %v2457_v32, %v2344_v60 }
 0x1e6   :  { %v2348_v55 = vpop.f32.mrf.mxu0  ;;  %v2461_v28 = vpop.f32.mrf.mxu1 }
 0x1e7   :  { %v3773_v14 = vpack.c.bf16 %v2458_v56, %v2456_v2  ;;  %v2462_v38 = vadd.f32 %v2461_v28, %v2348_v55 }
 0x1e8   :  { %v2350_v10 = vpop.f32.mrf.mxu0  ;;  %v2463_v17 = vpop.f32.mrf.mxu1 }
 0x1e9   :  { %3371 = vst [vmem:[#allocation8 + $0x28] sm:$0xff] %v3773_v14  ;;  %v2464_v30 = vadd.f32 %v2463_v17, %v2350_v10 }
 0x1ea   :  { %v2352_v42 = vpop.f32.mrf.mxu0  ;;  %v2465_v37 = vpop.f32.mrf.mxu1 }
 0x1eb   :  { %v3777_v40 = vpack.c.bf16 %v2464_v30, %v2462_v38  ;;  %v2466_v3 = vadd.f32 %v2465_v37, %v2352_v42 }
 0x1ec   :  { %v2354_v31 = vpop.f32.mrf.mxu0  ;;  %v2467_v44 = vpop.f32.mrf.mxu1 }
 0x1ed   :  { %3375 = vst [vmem:[#allocation8 + $0x48] sm:$0xff] %v3777_v40  ;;  %v2468_v24 = vadd.f32 %v2467_v44, %v2354_v31 }
 0x1ee   :  { %v2358_v58 = vpop.f32.mrf.mxu0  ;;  %v2471_v35 = vpop.f32.mrf.mxu1 }
 0x1ef   :  { %v3781_v18 = vpack.c.bf16 %v2468_v24, %v2466_v3  ;;  %v2472_v5 = vadd.f32 %v2471_v35, %v2358_v58 }
 0x1f0   :  { %v2360_v29 = vpop.f32.mrf.mxu0  ;;  %v2473_v63 = vpop.f32.mrf.mxu1 }
 0x1f1   :  { %3379 = vst [vmem:[#allocation8 + $0x68] sm:$0xff] %v3781_v18  ;;  %v2474_v57 = vadd.f32 %v2473_v63, %v2360_v29 }
 0x1f2   :  { %v2362_v34 = vpop.f32.mrf.mxu0  ;;  %v2475_v59 = vpop.f32.mrf.mxu1 }
 0x1f3   :  { %v3785_v53 = vpack.c.bf16 %v2474_v57, %v2472_v5  ;;  %v2476_v16 = vadd.f32 %v2475_v59, %v2362_v34 }
 0x1f4   :  { %v2364_v43 = vpop.f32.mrf.mxu0  ;;  %v2477_v41 = vpop.f32.mrf.mxu1 }
 0x1f5   :  { %3383 = vst [vmem:[#allocation8 + $0x88] sm:$0xff] %v3785_v53  ;;  %v2478_v7 = vadd.f32 %v2477_v41, %v2364_v43 }
 0x1f6   :  { %v2368_v25 = vpop.f32.mrf.mxu0  ;;  %v2481_v20 = vpop.f32.mrf.mxu1 }
 0x1f7   :  { %v3789_v27 = vpack.c.bf16 %v2478_v7, %v2476_v16  ;;  %v2482_v1 = vadd.f32 %v2481_v20, %v2368_v25 }
 0x1f8   :  { %v2370_v39 = vpop.f32.mrf.mxu0  ;;  %v2483_v45 = vpop.f32.mrf.mxu1 }
 0x1f9   :  { %3387 = vst [vmem:[#allocation8 + $0xa8] sm:$0xff] %v3789_v27  ;;  %v2484_v19 = vadd.f32 %v2483_v45, %v2370_v39 }
 0x1fa   :  { %v2372_v0 = vpop.f32.mrf.mxu0  ;;  %v2485_v50 = vpop.f32.mrf.mxu1 }
 0x1fb   :  { %v3793_v23 = vpack.c.bf16 %v2484_v19, %v2482_v1  ;;  %v2486_v21 = vadd.f32 %v2485_v50, %v2372_v0 }
 0x1fc   :  { %v2374_v4 = vpop.f32.mrf.mxu0  ;;  %v2487_v51 = vpop.f32.mrf.mxu1 }
 0x1fd   :  { %3391 = vst [vmem:[#allocation8 + $0xc8] sm:$0xff] %v3793_v23  ;;  %v2488_v36 = vadd.f32 %v2487_v51, %v2374_v4 }
 0x1fe   :  { %v2378_v33 = vpop.f32.mrf.mxu0  ;;  %v2491_v48 = vpop.f32.mrf.mxu1 }
 0x1ff   :  { %v3797_v22 = vpack.c.bf16 %v2488_v36, %v2486_v21  ;;  %v2492_v61 = vadd.f32 %v2491_v48, %v2378_v33 }
 0x200   :  { %v2380_v62 = vpop.f32.mrf.mxu0  ;;  %v2493_v15 = vpop.f32.mrf.mxu1 }
 0x201   :  { %3395 = vst [vmem:[#allocation8 + $0xe8] sm:$0xff] %v3797_v22  ;;  %v2494_v6 = vadd.f32 %v2493_v15, %v2380_v62 }
 0x202   :  { %v2382_v12 = vpop.f32.mrf.mxu0  ;;  %v2495_v46 = vpop.f32.mrf.mxu1 }
 0x203   :  { %v3801_v11 = vpack.c.bf16 %v2494_v6, %v2492_v61  ;;  %v2496_v9 = vadd.f32 %v2495_v46, %v2382_v12 }
 0x204   :  { %v2384_v13 = vpop.f32.mrf.mxu0  ;;  %v2497_v49 = vpop.f32.mrf.mxu1 }
 0x205   :  { %3399 = vst [vmem:[#allocation8 + $0x108] sm:$0xff] %v3801_v11  ;;  %v2498_v52 = vadd.f32 %v2497_v49, %v2384_v13 }
 0x206   :  { %v2388_v8 = vpop.f32.mrf.mxu0  ;;  %v2501_v47 = vpop.f32.mrf.mxu1 }
 0x207   :  { %v3805_v26 = vpack.c.bf16 %v2498_v52, %v2496_v9  ;;  %v2502_v32 = vadd.f32 %v2501_v47, %v2388_v8 }
 0x208   :  { %v2390_v54 = vpop.f32.mrf.mxu0  ;;  %v2503_v60 = vpop.f32.mrf.mxu1 }
 0x209   :  { %3403 = vst [vmem:[#allocation8 + $0x128] sm:$0xff] %v3805_v26  ;;  %v2504_v2 = vadd.f32 %v2503_v60, %v2390_v54 }
 0x20a   :  { %v2392_v56 = vpop.f32.mrf.mxu0  ;;  %v2505_v55 = vpop.f32.mrf.mxu1 }
 0x20b   :  { %v3809_v28 = vpack.c.bf16 %v2504_v2, %v2502_v32  ;;  %v2506_v17 = vadd.f32 %v2505_v55, %v2392_v56 }
 0x20c   :  { %v2394_v14 = vpop.f32.mrf.mxu0  ;;  %v2507_v10 = vpop.f32.mrf.mxu1 }
 0x20d   :  { %3407 = vst [vmem:[#allocation8 + $0x148] sm:$0xff] %v3809_v28  ;;  %v2508_v38 = vadd.f32 %v2507_v10, %v2394_v14 }
 0x20e   :  { %v2398_v30 = vpop.f32.mrf.mxu0  ;;  %v2511_v42 = vpop.f32.mrf.mxu1 }
 0x20f   :  { %v3813_v37 = vpack.c.bf16 %v2508_v38, %v2506_v17  ;;  %v2512_v44 = vadd.f32 %v2511_v42, %v2398_v30 }
 0x210   :  { %v2400_v40 = vpop.f32.mrf.mxu0  ;;  %v2513_v31 = vpop.f32.mrf.mxu1 }
 0x211   :  { %3411 = vst [vmem:[#allocation8 + $0x168] sm:$0xff] %v3813_v37  ;;  %v2514_v3 = vadd.f32 %v2513_v31, %v2400_v40 }
 0x212   :  { %v2402_v24 = vpop.f32.mrf.mxu0  ;;  %v2515_v58 = vpop.f32.mrf.mxu1 }
 0x213   :  { %v3817_v35 = vpack.c.bf16 %v2514_v3, %v2512_v44  ;;  %v2516_v63 = vadd.f32 %v2515_v58, %v2402_v24 }
 0x214   :  { %v2404_v18 = vpop.f32.mrf.mxu0  ;;  %v2517_v29 = vpop.f32.mrf.mxu1 }
 0x215   :  { %3415 = vst [vmem:[#allocation8 + $0x188] sm:$0xff] %v3817_v35  ;;  %v2518_v5 = vadd.f32 %v2517_v29, %v2404_v18 }
 0x216   :  { %v2408_v57 = vpop.f32.mrf.mxu0  ;;  %v2521_v34 = vpop.f32.mrf.mxu1 }
 0x217   :  { %v3821_v59 = vpack.c.bf16 %v2518_v5, %v2516_v63  ;;  %v2522_v41 = vadd.f32 %v2521_v34, %v2408_v57 }
 0x218   :  { %v2410_v53 = vpop.f32.mrf.mxu0  ;;  %v2523_v43 = vpop.f32.mrf.mxu1 }
 0x219   :  { %3419 = vst [vmem:[#allocation8 + $0x1a8] sm:$0xff] %v3821_v59  ;;  %v2524_v16 = vadd.f32 %v2523_v43, %v2410_v53 }
 0x21a   :  { %v2412_v7 = vpop.f32.mrf.mxu0  ;;  %v2525_v25 = vpop.f32.mrf.mxu1 }
 0x21b   :  { %v3825_v20 = vpack.c.bf16 %v2524_v16, %v2522_v41  ;;  %v2526_v45 = vadd.f32 %v2525_v25, %v2412_v7 }
 0x21c   :  { %v2414_v27 = vpop.f32.mrf.mxu0  ;;  %v2527_v39 = vpop.f32.mrf.mxu1 }
 0x21d   :  { %3423 = vst [vmem:[#allocation8 + $0x1c8] sm:$0xff] %v3825_v20  ;;  %v2528_v1 = vadd.f32 %v2527_v39, %v2414_v27 }
 0x21e   :  { %v2564_v19 = vpop.f32.mrf.mxu0  ;;  %v2677_v0 = vpop.f32.mrf.mxu1 }
 0x21f   :  { %v3829_v50 = vpack.c.bf16 %v2528_v1, %v2526_v45  ;;  %v2678_v51 = vadd.f32 %v2677_v0, %v2564_v19 }
 0x220   :  { %v2566_v23 = vpop.f32.mrf.mxu0  ;;  %v2679_v4 = vpop.f32.mrf.mxu1 }
 0x221   :  { %3427 = vst [vmem:[#allocation8 + $0x1e8] sm:$0xff] %v3829_v50  ;;  %v2680_v21 = vadd.f32 %v2679_v4, %v2566_v23 }
 0x222   :  { %v2568_v36 = vpop.f32.mrf.mxu0  ;;  %v2681_v33 = vpop.f32.mrf.mxu1 }
 0x223   :  { %v3770_v48 = vpack.c.bf16 %v2680_v21, %v2678_v51  ;;  %v2682_v15 = vadd.f32 %v2681_v33, %v2568_v36 }
 0x224   :  { %v2570_v22 = vpop.f32.mrf.mxu0  ;;  %v2683_v62 = vpop.f32.mrf.mxu1 }
 0x225   :  { %3368 = vst [vmem:[#allocation8 + $0x10] sm:$0xff] %v3770_v48  ;;  %v2684_v61 = vadd.f32 %v2683_v62, %v2570_v22 }
 0x226   :  { %v2574_v6 = vpop.f32.mrf.mxu0  ;;  %v2687_v12 = vpop.f32.mrf.mxu1 }
 0x227   :  { %v3774_v46 = vpack.c.bf16 %v2684_v61, %v2682_v15  ;;  %v2688_v49 = vadd.f32 %v2687_v12, %v2574_v6 }
 0x228   :  { %v2576_v11 = vpop.f32.mrf.mxu0  ;;  %v2689_v13 = vpop.f32.mrf.mxu1 }
 0x229   :  { %3372 = vst [vmem:[#allocation8 + $0x30] sm:$0xff] %v3774_v46  ;;  %v2690_v9 = vadd.f32 %v2689_v13, %v2576_v11 }
 0x22a   :  { %v2578_v52 = vpop.f32.mrf.mxu0  ;;  %v2691_v8 = vpop.f32.mrf.mxu1 }
 0x22b   :  { %v3778_v47 = vpack.c.bf16 %v2690_v9, %v2688_v49  ;;  %v2692_v60 = vadd.f32 %v2691_v8, %v2578_v52 }
 0x22c   :  { %v2580_v26 = vpop.f32.mrf.mxu0  ;;  %v2693_v54 = vpop.f32.mrf.mxu1 }
 0x22d   :  { %3376 = vst [vmem:[#allocation8 + $0x50] sm:$0xff] %v3778_v47  ;;  %v2694_v32 = vadd.f32 %v2693_v54, %v2580_v26 }
 0x22e   :  { %v2584_v2 = vpop.f32.mrf.mxu0  ;;  %v2697_v56 = vpop.f32.mrf.mxu1 }
 0x22f   :  { %v3782_v55 = vpack.c.bf16 %v2694_v32, %v2692_v60  ;;  %v2698_v10 = vadd.f32 %v2697_v56, %v2584_v2 }
 0x230   :  { %v2586_v28 = vpop.f32.mrf.mxu0  ;;  %v2699_v14 = vpop.f32.mrf.mxu1 }
 0x231   :  { %3380 = vst [vmem:[#allocation8 + $0x70] sm:$0xff] %v3782_v55  ;;  %v2700_v17 = vadd.f32 %v2699_v14, %v2586_v28 }
 0x232   :  { %v2588_v38 = vpop.f32.mrf.mxu0  ;;  %v2701_v30 = vpop.f32.mrf.mxu1 }
 0x233   :  { %v3786_v42 = vpack.c.bf16 %v2700_v17, %v2698_v10  ;;  %v2702_v31 = vadd.f32 %v2701_v30, %v2588_v38 }
 0x234   :  { %v2590_v37 = vpop.f32.mrf.mxu0  ;;  %v2703_v40 = vpop.f32.mrf.mxu1 }
 0x235   :  { %3384 = vst [vmem:[#allocation8 + $0x90] sm:$0xff] %v3786_v42  ;;  %v2704_v44 = vadd.f32 %v2703_v40, %v2590_v37 }
 0x236   :  { %v2594_v3 = vpop.f32.mrf.mxu0  ;;  %v2707_v24 = vpop.f32.mrf.mxu1 }
 0x237   :  { %v3790_v58 = vpack.c.bf16 %v2704_v44, %v2702_v31  ;;  %v2708_v29 = vadd.f32 %v2707_v24, %v2594_v3 }
 0x238   :  { %v2596_v35 = vpop.f32.mrf.mxu0  ;;  %v2709_v18 = vpop.f32.mrf.mxu1 }
 0x239   :  { %3388 = vst [vmem:[#allocation8 + $0xb0] sm:$0xff] %v3790_v58  ;;  %v2710_v63 = vadd.f32 %v2709_v18, %v2596_v35 }
 0x23a   :  { %v2598_v5 = vpop.f32.mrf.mxu0  ;;  %v2711_v57 = vpop.f32.mrf.mxu1 }
 0x23b   :  { %v3794_v34 = vpack.c.bf16 %v2710_v63, %v2708_v29  ;;  %v2712_v43 = vadd.f32 %v2711_v57, %v2598_v5 }
 0x23c   :  { %v2600_v59 = vpop.f32.mrf.mxu0  ;;  %v2713_v53 = vpop.f32.mrf.mxu1 }
 0x23d   :  { %3392 = vst [vmem:[#allocation8 + $0xd0] sm:$0xff] %v3794_v34  ;;  %v2714_v41 = vadd.f32 %v2713_v53, %v2600_v59 }
 0x23e   :  { %v2604_v16 = vpop.f32.mrf.mxu0  ;;  %v2717_v7 = vpop.f32.mrf.mxu1 }
 0x23f   :  { %v3798_v25 = vpack.c.bf16 %v2714_v41, %v2712_v43  ;;  %v2718_v39 = vadd.f32 %v2717_v7, %v2604_v16 }
 0x240   :  { %v2606_v20 = vpop.f32.mrf.mxu0  ;;  %v2719_v27 = vpop.f32.mrf.mxu1 }
 0x241   :  { %3396 = vst [vmem:[#allocation8 + $0xf0] sm:$0xff] %v3798_v25  ;;  %v2720_v45 = vadd.f32 %v2719_v27, %v2606_v20 }
 0x242   :  { %v2608_v1 = vpop.f32.mrf.mxu0  ;;  %v2721_v19 = vpop.f32.mrf.mxu1 }
 0x243   :  { %v3802_v0 = vpack.c.bf16 %v2720_v45, %v2718_v39  ;;  %v2722_v4 = vadd.f32 %v2721_v19, %v2608_v1 }
 0x244   :  { %v2610_v50 = vpop.f32.mrf.mxu0  ;;  %v2723_v23 = vpop.f32.mrf.mxu1 }
 0x245   :  { %3400 = vst [vmem:[#allocation8 + $0x110] sm:$0xff] %v3802_v0  ;;  %v2724_v51 = vadd.f32 %v2723_v23, %v2610_v50 }
 0x246   :  { %v2614_v21 = vpop.f32.mrf.mxu0  ;;  %v2727_v36 = vpop.f32.mrf.mxu1 }
 0x247   :  { %v3806_v33 = vpack.c.bf16 %v2724_v51, %v2722_v4  ;;  %v2728_v62 = vadd.f32 %v2727_v36, %v2614_v21 }
 0x248   :  { %v2616_v48 = vpop.f32.mrf.mxu0  ;;  %v2729_v22 = vpop.f32.mrf.mxu1 }
 0x249   :  { %3404 = vst [vmem:[#allocation8 + $0x130] sm:$0xff] %v3806_v33  ;;  %v2730_v15 = vadd.f32 %v2729_v22, %v2616_v48 }
 0x24a   :  { %v2618_v61 = vpop.f32.mrf.mxu0  ;;  %v2731_v6 = vpop.f32.mrf.mxu1 }
 0x24b   :  { %v3810_v12 = vpack.c.bf16 %v2730_v15, %v2728_v62  ;;  %v2732_v13 = vadd.f32 %v2731_v6, %v2618_v61 }
 0x24c   :  { %v2620_v46 = vpop.f32.mrf.mxu0  ;;  %v2733_v11 = vpop.f32.mrf.mxu1 }
 0x24d   :  { %3408 = vst [vmem:[#allocation8 + $0x150] sm:$0xff] %v3810_v12  ;;  %v2734_v49 = vadd.f32 %v2733_v11, %v2620_v46 }
 0x24e   :  { %v2624_v9 = vpop.f32.mrf.mxu0  ;;  %v2737_v52 = vpop.f32.mrf.mxu1 }
 0x24f   :  { %v3814_v8 = vpack.c.bf16 %v2734_v49, %v2732_v13  ;;  %v2738_v54 = vadd.f32 %v2737_v52, %v2624_v9 }
 0x250   :  { %v2626_v47 = vpop.f32.mrf.mxu0  ;;  %v2739_v26 = vpop.f32.mrf.mxu1 }
 0x251   :  { %3412 = vst [vmem:[#allocation8 + $0x170] sm:$0xff] %v3814_v8  ;;  %v2740_v60 = vadd.f32 %v2739_v26, %v2626_v47 }
 0x252   :  { %v2628_v32 = vpop.f32.mrf.mxu0  ;;  %v2741_v2 = vpop.f32.mrf.mxu1 }
 0x253   :  { %v3818_v56 = vpack.c.bf16 %v2740_v60, %v2738_v54  ;;  %v2742_v14 = vadd.f32 %v2741_v2, %v2628_v32 }
 0x254   :  { %v2630_v55 = vpop.f32.mrf.mxu0  ;;  %v2743_v28 = vpop.f32.mrf.mxu1 }
 0x255   :  { %3416 = vst [vmem:[#allocation8 + $0x190] sm:$0xff] %v3818_v56  ;;  %v2744_v10 = vadd.f32 %v2743_v28, %v2630_v55 }
 0x256   :  { %v2634_v17 = vpop.f32.mrf.mxu0  ;;  %v2747_v38 = vpop.f32.mrf.mxu1 }
 0x257   :  { %v3822_v30 = vpack.c.bf16 %v2744_v10, %v2742_v14  ;;  %v2748_v40 = vadd.f32 %v2747_v38, %v2634_v17 }
 0x258   :  { %v2636_v42 = vpop.f32.mrf.mxu0  ;;  %v2749_v37 = vpop.f32.mrf.mxu1 }
 0x259   :  { %3420 = vst [vmem:[#allocation8 + $0x1b0] sm:$0xff] %v3822_v30  ;;  %v2750_v31 = vadd.f32 %v2749_v37, %v2636_v42 }
 0x25a   :  { %v2638_v44 = vpop.f32.mrf.mxu0  ;;  %v2751_v3 = vpop.f32.mrf.mxu1 }
 0x25b   :  { %v3826_v24 = vpack.c.bf16 %v2750_v31, %v2748_v40  ;;  %v2752_v18 = vadd.f32 %v2751_v3, %v2638_v44 }
 0x25c   :  { %v2640_v58 = vpop.f32.mrf.mxu0  ;;  %v2753_v35 = vpop.f32.mrf.mxu1 }
 0x25d   :  { %3424 = vst [vmem:[#allocation8 + $0x1d0] sm:$0xff] %v3826_v24  ;;  %v2754_v29 = vadd.f32 %v2753_v35, %v2640_v58 }
 0x25e   :  { %v2790_v63 = vpop.f32.mrf.mxu0  ;;  %v2903_v5 = vpop.f32.mrf.mxu1 }
 0x25f   :  { %v3830_v57 = vpack.c.bf16 %v2754_v29, %v2752_v18  ;;  %v2904_v53 = vadd.f32 %v2903_v5, %v2790_v63 }
 0x260   :  { %v2792_v34 = vpop.f32.mrf.mxu0  ;;  %v2905_v59 = vpop.f32.mrf.mxu1 }
 0x261   :  { %3428 = vst [vmem:[#allocation8 + $0x1f0] sm:$0xff] %v3830_v57  ;;  %v2906_v43 = vadd.f32 %v2905_v59, %v2792_v34 }
 0x262   :  { %v2794_v41 = vpop.f32.mrf.mxu0  ;;  %v2907_v16 = vpop.f32.mrf.mxu1 }
 0x263   :  { %v3771_v7 = vpack.c.bf16 %v2906_v43, %v2904_v53  ;;  %v2908_v27 = vadd.f32 %v2907_v16, %v2794_v41 }
 0x264   :  { %v2796_v25 = vpop.f32.mrf.mxu0  ;;  %v2909_v20 = vpop.f32.mrf.mxu1 }
 0x265   :  { %3369 = vst [vmem:[#allocation8 + $0x18] sm:$0xff] %v3771_v7  ;;  %v2910_v39 = vadd.f32 %v2909_v20, %v2796_v25 }
 0x266   :  { %v2800_v45 = vpop.f32.mrf.mxu0  ;;  %v2913_v1 = vpop.f32.mrf.mxu1 }
 0x267   :  { %v3775_v19 = vpack.c.bf16 %v2910_v39, %v2908_v27  ;;  %v2914_v23 = vadd.f32 %v2913_v1, %v2800_v45 }
 0x268   :  { %v2802_v0 = vpop.f32.mrf.mxu0  ;;  %v2915_v50 = vpop.f32.mrf.mxu1 }
 0x269   :  { %3373 = vst [vmem:[#allocation8 + $0x38] sm:$0xff] %v3775_v19  ;;  %v2916_v4 = vadd.f32 %v2915_v50, %v2802_v0 }
 0x26a   :  { %v2804_v51 = vpop.f32.mrf.mxu0  ;;  %v2917_v21 = vpop.f32.mrf.mxu1 }
 0x26b   :  { %v3779_v36 = vpack.c.bf16 %v2916_v4, %v2914_v23  ;;  %v2918_v22 = vadd.f32 %v2917_v21, %v2804_v51 }
 0x26c   :  { %v2806_v33 = vpop.f32.mrf.mxu0  ;;  %v2919_v48 = vpop.f32.mrf.mxu1 }
 0x26d   :  { %3377 = vst [vmem:[#allocation8 + $0x58] sm:$0xff] %v3779_v36  ;;  %v2920_v62 = vadd.f32 %v2919_v48, %v2806_v33 }
 0x26e   :  { %v2810_v15 = vpop.f32.mrf.mxu0  ;;  %v2923_v61 = vpop.f32.mrf.mxu1 }
 0x26f   :  { %v3783_v6 = vpack.c.bf16 %v2920_v62, %v2918_v22  ;;  %v2924_v11 = vadd.f32 %v2923_v61, %v2810_v15 }
 0x270   :  { %v2812_v12 = vpop.f32.mrf.mxu0  ;;  %v2925_v46 = vpop.f32.mrf.mxu1 }
 0x271   :  { %3381 = vst [vmem:[#allocation8 + $0x78] sm:$0xff] %v3783_v6  ;;  %v2926_v13 = vadd.f32 %v2925_v46, %v2812_v12 }
 0x272   :  { %v2814_v49 = vpop.f32.mrf.mxu0  ;;  %v2927_v9 = vpop.f32.mrf.mxu1 }
 0x273   :  { %v3787_v52 = vpack.c.bf16 %v2926_v13, %v2924_v11  ;;  %v2928_v26 = vadd.f32 %v2927_v9, %v2814_v49 }
 0x274   :  { %v2816_v8 = vpop.f32.mrf.mxu0  ;;  %v2929_v47 = vpop.f32.mrf.mxu1 }
 0x275   :  { %3385 = vst [vmem:[#allocation8 + $0x98] sm:$0xff] %v3787_v52  ;;  %v2930_v54 = vadd.f32 %v2929_v47, %v2816_v8 }
 0x276   :  { %v2820_v60 = vpop.f32.mrf.mxu0  ;;  %v2933_v32 = vpop.f32.mrf.mxu1 }
 0x277   :  { %v3791_v2 = vpack.c.bf16 %v2930_v54, %v2928_v26  ;;  %v2934_v28 = vadd.f32 %v2933_v32, %v2820_v60 }
 0x278   :  { %v2822_v56 = vpop.f32.mrf.mxu0  ;;  %v2935_v55 = vpop.f32.mrf.mxu1 }
 0x279   :  { %3389 = vst [vmem:[#allocation8 + $0xb8] sm:$0xff] %v3791_v2  ;;  %v2936_v14 = vadd.f32 %v2935_v55, %v2822_v56 }
 0x27a   :  { %v2824_v10 = vpop.f32.mrf.mxu0  ;;  %v2937_v17 = vpop.f32.mrf.mxu1 }
 0x27b   :  { %v3795_v38 = vpack.c.bf16 %v2936_v14, %v2934_v28  ;;  %v2938_v37 = vadd.f32 %v2937_v17, %v2824_v10 }
 0x27c   :  { %v2826_v30 = vpop.f32.mrf.mxu0  ;;  %v2939_v42 = vpop.f32.mrf.mxu1 }
 0x27d   :  { %3393 = vst [vmem:[#allocation8 + $0xd8] sm:$0xff] %v3795_v38  ;;  %v2940_v40 = vadd.f32 %v2939_v42, %v2826_v30 }
 0x27e   :  { %v2830_v31 = vpop.f32.mrf.mxu0  ;;  %v2943_v44 = vpop.f32.mrf.mxu1 }
 0x27f   :  { %v3799_v3 = vpack.c.bf16 %v2940_v40, %v2938_v37  ;;  %v2944_v35 = vadd.f32 %v2943_v44, %v2830_v31 }
 0x280   :  { %v2832_v24 = vpop.f32.mrf.mxu0  ;;  %v2945_v58 = vpop.f32.mrf.mxu1 }
 0x281   :  { %3397 = vst [vmem:[#allocation8 + $0xf8] sm:$0xff] %v3799_v3  ;;  %v2946_v18 = vadd.f32 %v2945_v58, %v2832_v24 }
 0x282   :  { %v2834_v29 = vpop.f32.mrf.mxu0  ;;  %v2947_v63 = vpop.f32.mrf.mxu1 }
 0x283   :  { %v3803_v5 = vpack.c.bf16 %v2946_v18, %v2944_v35  ;;  %v2948_v59 = vadd.f32 %v2947_v63, %v2834_v29 }
 0x284   :  { %v2836_v57 = vpop.f32.mrf.mxu0  ;;  %v2949_v34 = vpop.f32.mrf.mxu1 }
 0x285   :  { %3401 = vst [vmem:[#allocation8 + $0x118] sm:$0xff] %v3803_v5  ;;  %v2950_v53 = vadd.f32 %v2949_v34, %v2836_v57 }
 0x286   :  { %v2840_v43 = vpop.f32.mrf.mxu0  ;;  %v2953_v41 = vpop.f32.mrf.mxu1 }
 0x287   :  { %v3807_v16 = vpack.c.bf16 %v2950_v53, %v2948_v59  ;;  %v2954_v20 = vadd.f32 %v2953_v41, %v2840_v43 }
 0x288   :  { %v2842_v7 = vpop.f32.mrf.mxu0  ;;  %v2955_v25 = vpop.f32.mrf.mxu1 }
 0x289   :  { %3405 = vst [vmem:[#allocation8 + $0x138] sm:$0xff] %v3807_v16  ;;  %v2956_v27 = vadd.f32 %v2955_v25, %v2842_v7 }
 0x28a   :  { %v2844_v39 = vpop.f32.mrf.mxu0  ;;  %v2957_v45 = vpop.f32.mrf.mxu1 }
 0x28b   :  { %v3811_v1 = vpack.c.bf16 %v2956_v27, %v2954_v20  ;;  %v2958_v50 = vadd.f32 %v2957_v45, %v2844_v39 }
 0x28c   :  { %v2846_v19 = vpop.f32.mrf.mxu0  ;;  %v2959_v0 = vpop.f32.mrf.mxu1 }
 0x28d   :  { %3409 = vst [vmem:[#allocation8 + $0x158] sm:$0xff] %v3811_v1  ;;  %v2960_v23 = vadd.f32 %v2959_v0, %v2846_v19 }
 0x28e   :  { %v2850_v4 = vpop.f32.mrf.mxu0  ;;  %v2963_v51 = vpop.f32.mrf.mxu1 }
 0x28f   :  { %v3815_v21 = vpack.c.bf16 %v2960_v23, %v2958_v50  ;;  %v2964_v48 = vadd.f32 %v2963_v51, %v2850_v4 }
 0x290   :  { %v2852_v36 = vpop.f32.mrf.mxu0  ;;  %v2965_v33 = vpop.f32.mrf.mxu1 }
 0x291   :  { %3413 = vst [vmem:[#allocation8 + $0x178] sm:$0xff] %v3815_v21  ;;  %v2966_v22 = vadd.f32 %v2965_v33, %v2852_v36 }
 0x292   :  { %v2854_v62 = vpop.f32.mrf.mxu0  ;;  %v2967_v15 = vpop.f32.mrf.mxu1 }
 0x293   :  { %v3819_v61 = vpack.c.bf16 %v2966_v22, %v2964_v48  ;;  %v2968_v46 = vadd.f32 %v2967_v15, %v2854_v62 }
 0x294   :  { %v2856_v6 = vpop.f32.mrf.mxu0  ;;  %v2969_v12 = vpop.f32.mrf.mxu1 }
 0x295   :  { %3417 = vst [vmem:[#allocation8 + $0x198] sm:$0xff] %v3819_v61  ;;  %v2970_v11 = vadd.f32 %v2969_v12, %v2856_v6 }
 0x296   :  { %v2860_v13 = vpop.f32.mrf.mxu0  ;;  %v2973_v49 = vpop.f32.mrf.mxu1 }
 0x297   :  { %v3823_v9 = vpack.c.bf16 %v2970_v11, %v2968_v46  ;;  %v2974_v47 = vadd.f32 %v2973_v49, %v2860_v13 }
 0x298   :  { %v2862_v52 = vpop.f32.mrf.mxu0  ;;  %v2975_v8 = vpop.f32.mrf.mxu1 }
 0x299   :  { %3421 = vst [vmem:[#allocation8 + $0x1b8] sm:$0xff] %v3823_v9  ;;  %v2976_v26 = vadd.f32 %v2975_v8, %v2862_v52 }
 0x29a   :  { %v2864_v54 = vpop.f32.mrf.mxu0  ;;  %v2977_v60 = vpop.f32.mrf.mxu1 }
 0x29b   :  { %v3827_v32 = vpack.c.bf16 %v2976_v26, %v2974_v47  ;;  %v2978_v55 = vadd.f32 %v2977_v60, %v2864_v54 }
 0x29c   :  { %v2866_v2 = vpop.f32.mrf.mxu0  ;;  %v2979_v56 = vpop.f32.mrf.mxu1 }
 0x29d   :  { %3425 = vst [vmem:[#allocation8 + $0x1d8] sm:$0xff] %v3827_v32  ;;  %v2980_v28 = vadd.f32 %v2979_v56, %v2866_v2 }
 0x29f   :  { %v3831_v14 = vpack.c.bf16 %v2980_v28, %v2978_v55 }
 0x2a1   :  { %3429 = vst [vmem:[#allocation8 + $0x1f8] sm:$0xff] %v3831_v14 }
 0x2a2   :  { %3943 = shalt.err (!%p3940_p5)
}
 0x2a3   :  { %3441 = dma.vmem_to_hbm [thread:$0]  %s3436_s2, 8192, %s4879_s3, [#allocation4], %s3963_s1, %s3963_s1, %s3964_s27  }
 0x2a4   :  { %3956 = dma.done.wait [#allocation4], 8192  }
 0x2a5   :  { %3957 = vsyncadd [#allocation4], 4294959104 }
 0x2a6   :  { %3445 = vsyncpa [#allocation3], 1 }
 0x2a7   :  { %3446 = vsyncpa [#allocation6], 1 }
 0x2a8   :  { %3447 = vsyncpa [#allocation4], 1 }

</bundles_post_ra>
